<compile_context>
chip_gen: v5e
topology: v5e:2x2
jax: 0.10.0
libtpu: 0.0.40
codegen_flags: <defaults>
</compile_context>

<pallas_src>
import numpy as np

import jax
import jax.numpy as jnp
from jax.experimental import pallas as pl
from jax.experimental.pallas import tpu as pltpu


# ---------------------------------------------------------------------------
# Fused forward kernel: one grid step == one block of B images
# ---------------------------------------------------------------------------
def _cnn_kernel(x_ref,
                r1_ref, b1_ref, s1_ref,
                r2_ref, b2_ref, s2_ref,
                w1_ref, fb1_ref, w2_ref, fb2_ref, w3_ref, fb3_ref,
                o_ref):
    f32 = jnp.float32
    B = o_ref.shape[0]                       # images per grid step (static)

    # ---- conv1 + bias + ReLU + 2x2 maxpool (rows & cols), fully fused ----
    # x_ref block is (B, 7, 112): row r of an image holds input rows 4r..4r+3.
    # LHS row (b, q) = input rows 4q..4q+5 of image b  (q = pooled-row pair).
    lhs1 = jnp.concatenate(
        [jnp.concatenate([x_ref[b, 0:6, :], x_ref[b, 1:7, 0:56]], axis=1)
         for b in range(B)], axis=0)                                   # (B*6, 168)
    t1 = jnp.dot(lhs1, r1_ref[...], preferred_element_type=f32)        # (B*6, 1024)
    # row pooling: max over output-row parity (aligned 256-lane blocks)
    m1 = jnp.concatenate([jnp.maximum(t1[:, 0:256], t1[:, 256:512]),
                          jnp.maximum(t1[:, 512:768], t1[:, 768:1024])],
                         axis=1)                                        # (B*6, 512)
    h1 = jnp.maximum(m1 + b1_ref[...], 0.0)
    # column pooling: fused even|odd selector matmul + aligned-half max
    p1 = jnp.dot(h1, s1_ref[...], preferred_element_type=f32)          # (B*6, 512)
    y1 = jnp.maximum(p1[:, 0:256], p1[:, 256:512])                     # (B*6, 256)
    # y1 row (b, q): lanes [0..77] = pooled row 2q, [128..205] = pooled row 2q+1

    # ---- conv2 + bias + ReLU + 2x2 maxpool, fully fused -------------------
    # LHS row (b, p2) = pooled-conv1 rows 2p2..2p2+3 of image b.
    lhs2 = jnp.concatenate(
        [jnp.concatenate([y1[b * 6:b * 6 + 5, :],
                          y1[b * 6 + 1:b * 6 + 6, :]], axis=1)
         for b in range(B)], axis=0)                                   # (B*5, 512)
    t2 = jnp.dot(lhs2, r2_ref[...], preferred_element_type=f32)        # (B*5, 512)
    h2 = jnp.maximum(jnp.maximum(t2[:, 0:256], t2[:, 256:512])
                     + b2_ref[...], 0.0)                               # (B*5, 256)
    p2 = jnp.dot(h2, s2_ref[...], preferred_element_type=f32)          # (B*5, 256)
    y2 = jnp.maximum(p2[:, 0:128], p2[:, 128:256])                     # (B*5, 128)
    # y2 row (b, p2): lane 5*co + pw (0..79 valid)

    # ---- fully-connected head, batched over the B images ------------------
    zin = jnp.concatenate(
        [jnp.concatenate([y2[b * 5 + ph:b * 5 + ph + 1, :] for ph in range(5)],
                         axis=1)
         for b in range(B)], axis=0)                                   # (B, 640)
    z = jnp.maximum(jnp.dot(zin, w1_ref[...], preferred_element_type=f32)
                    + fb1_ref[...], 0.0)                               # (B, 120)
    z = jnp.maximum(jnp.dot(z, w2_ref[...], preferred_element_type=f32)
                    + fb2_ref[...], 0.0)                               # (B, 84)
    o_ref[...] = (jnp.dot(z, w3_ref[...], preferred_element_type=f32)
                  + fb3_ref[...])                                      # (B, 10)


# ---------------------------------------------------------------------------
# One-time host-side weight re-layout (done once, NOT per forward)
# ---------------------------------------------------------------------------
def prepare_params(p):
    f32 = np.float32
    w1 = np.asarray(p["conv1_w"], f32)          # (6, 1, 3, 3)
    c1b = np.asarray(p["conv1_b"], f32)         # (6,)
    w2 = np.asarray(p["conv2_w"], f32)          # (16, 6, 3, 3)
    c2b = np.asarray(p["conv2_b"], f32)         # (16,)
    fc1_w = np.asarray(p["fc1_w"], f32)         # (120, 400)

    # conv1 structured RHS: LHS k = 28*s + w  (s = input-row offset 0..5),
    # output lane 256*r + 26*co + ow = conv1 output row (4q + r), r = 0..3.
    ow1 = np.arange(26)
    R1 = np.zeros((168, 1024), f32)
    for r in range(4):
        for co in range(6):
            for i in range(3):
                for j in range(3):
                    R1[28 * (r + i) + ow1 + j, 256 * r + 26 * co + ow1] += w1[co, 0, i, j]

    B1 = np.zeros((1, 512), f32)                # bias for both row-pooled halves
    for co in range(6):
        B1[0, 26 * co + ow1] = c1b[co]
        B1[0, 256 + 26 * co + ow1] = c1b[co]

    # pool1 column selector: even cols -> lanes [0..255], odd cols -> [256..511]
    pw1 = np.arange(13)
    S1 = np.zeros((512, 512), f32)
    for ci in range(6):
        S1[26 * ci + 2 * pw1, 13 * ci + pw1] = 1.0                # row 2q, even
        S1[256 + 26 * ci + 2 * pw1, 128 + 13 * ci + pw1] = 1.0    # row 2q+1, even
        S1[26 * ci + 2 * pw1 + 1, 256 + 13 * ci + pw1] = 1.0      # row 2q, odd
        S1[256 + 26 * ci + 2 * pw1 + 1, 384 + 13 * ci + pw1] = 1.0  # row 2q+1, odd

    # conv2 structured RHS: LHS k = 128*s + 13*ci + pw (s = pooled-row offset 0..3)
    ow2 = np.arange(11)
    R2 = np.zeros((512, 512), f32)
    for co in range(16):
        for ci in range(6):
            for i in range(3):
                for j in range(3):
                    w = w2[co, ci, i, j]
                    R2[128 * i + 13 * ci + ow2 + j, 11 * co + ow2] += w          # even row
                    R2[128 * (i + 1) + 13 * ci + ow2 + j, 256 + 11 * co + ow2] += w  # odd row

    B2 = np.zeros((1, 256), f32)
    for co in range(16):
        B2[0, 11 * co + ow2] = c2b[co]

    pw2 = np.arange(5)
    S2 = np.zeros((256, 256), f32)
    for co in range(16):
        S2[11 * co + 2 * pw2, 5 * co + pw2] = 1.0
        S2[11 * co + 2 * pw2 + 1, 128 + 5 * co + pw2] = 1.0

    # fc1 permuted to the kernel's (B, 640) layout: zin[b, 128*ph + 5*co + pw]
    W1 = np.zeros((640, 120), f32)
    for ph in range(5):
        for co in range(16):
            for pw in range(5):
                W1[128 * ph + 5 * co + pw, :] = fc1_w[:, 25 * co + 5 * ph + pw]

    kp = {
        "R1": R1, "B1": B1, "S1": S1,
        "R2": R2, "B2": B2, "S2": S2,
        "W1": W1, "fb1": np.asarray(p["fc1_b"], f32)[None, :],
        "W2": np.asarray(p["fc2_w"], f32).T,
        "fb2": np.asarray(p["fc2_b"], f32)[None, :],
        "W3": np.asarray(p["fc3_w"], f32).T,
        "fb3": np.asarray(p["fc3_b"], f32)[None, :],
    }
    return {k: jnp.asarray(v) for k, v in kp.items()}


_CONST_ORDER = ("R1", "B1", "S1", "R2", "B2", "S2",
                "W1", "fb1", "W2", "fb2", "W3", "fb3")


def cnn_forward(x, kparams, block_batch=8):
    """x: (N, 1, 28, 28) float32 -> logits (N, 10).  One fused pallas_call."""
    N = x.shape[0]
    B = block_batch if (N % block_batch == 0) else N   # demo-safe fallback
    # Row-quad layout: (N, 7, 112); row r holds input rows 4r..4r+3 (free reshape).
    xq = x.reshape(N, 7, 112)
    consts = [kparams[k] for k in _CONST_ORDER]

    def const_spec(a):
        # Constant index map -> single-buffer it (saves VMEM + pipeline bookkeeping).
        return pl.BlockSpec(a.shape, lambda n: (0, 0),
                            pipeline_mode=pl.Buffered(1))

    out = pl.pallas_call(
        _cnn_kernel,
        out_shape=jax.ShapeDtypeStruct((N, 10), jnp.float32),
        grid=(N // B,),
        in_specs=[pl.BlockSpec((B, 7, 112), lambda n: (n, 0, 0))]
                 + [const_spec(a) for a in consts],
        out_specs=pl.BlockSpec((B, 10), lambda n: (n, 0)),
        compiler_params=pltpu.CompilerParams(
            dimension_semantics=("parallel",)),
    )(xq, *consts)
    return out


# ---------------------------------------------------------------------------
# Pure-JAX reference (same semantics as the PyTorch module)
# ---------------------------------------------------------------------------
def cnn_reference(x, p):
    hp = jax.lax.Precision.HIGHEST
    dn = ("NCHW", "OIHW", "NCHW")
    y = jax.lax.conv_general_dilated(x, p["conv1_w"], (1, 1), "VALID",
                                     dimension_numbers=dn, precision=hp)
    y = jnp.maximum(y + p["conv1_b"][None, :, None, None], 0.0)
    y = jax.lax.reduce_window(y, -jnp.inf, jax.lax.max,
                              (1, 1, 2, 2), (1, 1, 2, 2), "VALID")
    y = jax.lax.conv_general_dilated(y, p["conv2_w"], (1, 1), "VALID",
                                     dimension_numbers=dn, precision=hp)
    y = jnp.maximum(y + p["conv2_b"][None, :, None, None], 0.0)
    y = jax.lax.reduce_window(y, -jnp.inf, jax.lax.max,
                              (1, 1, 2, 2), (1, 1, 2, 2), "VALID")
    f = y.reshape(y.shape[0], -1)
    f = jnp.maximum(jnp.dot(f, p["fc1_w"].T, precision=hp) + p["fc1_b"], 0.0)
    f = jnp.maximum(jnp.dot(f, p["fc2_w"].T, precision=hp) + p["fc2_b"], 0.0)
    return jnp.dot(f, p["fc3_w"].T, precision=hp) + p["fc3_b"]


# ---------------------------------------------------------------------------
# Deterministic parameter init (PyTorch-style uniform(-1/sqrt(fan_in), +))
# ---------------------------------------------------------------------------
def init_params(key):
    def uniform(k, shape, fan_in):
        bound = 1.0 / jnp.sqrt(jnp.float32(fan_in))
        return jax.random.uniform(k, shape, jnp.float32, -bound, bound)

    ks = jax.random.split(key, 10)
    return {
        "conv1_w": uniform(ks[0], (6, 1, 3, 3), 1 * 3 * 3),
        "conv1_b": uniform(ks[1], (6,), 1 * 3 * 3),
        "conv2_w": uniform(ks[2], (16, 6, 3, 3), 6 * 3 * 3),
        "conv2_b": uniform(ks[3], (16,), 6 * 3 * 3),
        "fc1_w": uniform(ks[4], (120, 400), 400),
        "fc1_b": uniform(ks[5], (120,), 400),
        "fc2_w": uniform(ks[6], (84, 120), 120),
        "fc2_b": uniform(ks[7], (84,), 120),
        "fc3_w": uniform(ks[8], (10, 84), 84),
        "fc3_b": uniform(ks[9], (10,), 84),
    }


if __name__ == "__main__":
    key = jax.random.PRNGKey(0)
    pkey, xkey = jax.random.split(key)
    params = init_params(pkey)
    kparams = prepare_params(params)          # one-time weight re-layout

    # forward geometry implies 28x28 single-channel input (LeNet-style);
    # N=16 with B=8 -> grid length 2 (even, keeps both v7x TensorCores busy).
    x = jax.random.normal(xkey, (16, 1, 28, 28), jnp.float32)

    fwd = jax.jit(lambda xx, kp: cnn_forward(xx, kp, block_batch=8))
    out = jax.block_until_ready(fwd(x, kparams))
    assert out.shape == (16, 10), out.shape

    ref = jax.block_until_ready(cnn_reference(x, params))
    # Tolerance documented: kernel matmuls run at default MXU f32 precision,
    # reference at Precision.HIGHEST.
    assert jnp.allclose(out, ref, atol=1e-2, rtol=1e-2), \
        float(jnp.max(jnp.abs(out - ref)))

    print("KERNEL_OK")
</pallas_src>

<mosaic_0001>
module attributes {stable_mosaic.version = 11 : i64} {
  func.func @_cnn_kernel(%arg0: i32, %arg1: memref<8x7x112xf32, #tpu.memory_space<vmem>>, %arg2: memref<168x1024xf32, #tpu.memory_space<vmem>>, %arg3: memref<1x512xf32, #tpu.memory_space<vmem>>, %arg4: memref<512x512xf32, #tpu.memory_space<vmem>>, %arg5: memref<512x512xf32, #tpu.memory_space<vmem>>, %arg6: memref<1x256xf32, #tpu.memory_space<vmem>>, %arg7: memref<256x256xf32, #tpu.memory_space<vmem>>, %arg8: memref<640x120xf32, #tpu.memory_space<vmem>>, %arg9: memref<1x120xf32, #tpu.memory_space<vmem>>, %arg10: memref<120x84xf32, #tpu.memory_space<vmem>>, %arg11: memref<1x84xf32, #tpu.memory_space<vmem>>, %arg12: memref<84x10xf32, #tpu.memory_space<vmem>>, %arg13: memref<1x10xf32, #tpu.memory_space<vmem>>, %arg14: memref<8x10xf32, #tpu.memory_space<vmem>>) attributes {dimension_semantics = [#tpu.dimension_semantics<parallel>], iteration_bounds = array<i64: 2>, scalar_prefetch = 0 : i64, scratch_operands = 0 : i64, tpu.core_type = #tpu.core_type<tc>, window_params = [{transform_indices = @transform_0, window_bounds = array<i64: 8, 7, 112>}, {pipeline_mode = #tpu.pipeline_mode<synchronous>, transform_indices = @transform_1, window_bounds = array<i64: 168, 1024>}, {pipeline_mode = #tpu.pipeline_mode<synchronous>, transform_indices = @transform_2, window_bounds = array<i64: 1, 512>}, {pipeline_mode = #tpu.pipeline_mode<synchronous>, transform_indices = @transform_3, window_bounds = array<i64: 512, 512>}, {pipeline_mode = #tpu.pipeline_mode<synchronous>, transform_indices = @transform_4, window_bounds = array<i64: 512, 512>}, {pipeline_mode = #tpu.pipeline_mode<synchronous>, transform_indices = @transform_5, window_bounds = array<i64: 1, 256>}, {pipeline_mode = #tpu.pipeline_mode<synchronous>, transform_indices = @transform_6, window_bounds = array<i64: 256, 256>}, {pipeline_mode = #tpu.pipeline_mode<synchronous>, transform_indices = @transform_7, window_bounds = array<i64: 640, 120>}, {pipeline_mode = #tpu.pipeline_mode<synchronous>, transform_indices = @transform_8, window_bounds = array<i64: 1, 120>}, {pipeline_mode = #tpu.pipeline_mode<synchronous>, transform_indices = @transform_9, window_bounds = array<i64: 120, 84>}, {pipeline_mode = #tpu.pipeline_mode<synchronous>, transform_indices = @transform_10, window_bounds = array<i64: 1, 84>}, {pipeline_mode = #tpu.pipeline_mode<synchronous>, transform_indices = @transform_11, window_bounds = array<i64: 84, 10>}, {pipeline_mode = #tpu.pipeline_mode<synchronous>, transform_indices = @transform_12, window_bounds = array<i64: 1, 10>}, {transform_indices = @transform_13, window_bounds = array<i64: 8, 10>}]} {
    %c0 = arith.constant 0 : index
    %c0_0 = arith.constant 0 : index
    %c0_1 = arith.constant 0 : index
    %0 = vector.load %arg1[%c0, %c0_0, %c0_1] : memref<8x7x112xf32, #tpu.memory_space<vmem>>, vector<1x6x112xf32>
    %1 = vector.shape_cast %0 : vector<1x6x112xf32> to vector<6x112xf32>
    %c0_2 = arith.constant 0 : index
    %c1 = arith.constant 1 : index
    %c0_3 = arith.constant 0 : index
    %2 = vector.load %arg1[%c0_2, %c1, %c0_3] : memref<8x7x112xf32, #tpu.memory_space<vmem>>, vector<1x6x56xf32>
    %3 = vector.shape_cast %2 : vector<1x6x56xf32> to vector<6x56xf32>
    %4 = tpu.concatenate %1, %3 in 1 : vector<6x112xf32>, vector<6x56xf32> -> vector<6x168xf32>
    %c1_4 = arith.constant 1 : index
    %c0_5 = arith.constant 0 : index
    %c0_6 = arith.constant 0 : index
    %5 = vector.load %arg1[%c1_4, %c0_5, %c0_6] : memref<8x7x112xf32, #tpu.memory_space<vmem>>, vector<1x6x112xf32>
    %6 = vector.shape_cast %5 : vector<1x6x112xf32> to vector<6x112xf32>
    %c1_7 = arith.constant 1 : index
    %c1_8 = arith.constant 1 : index
    %c0_9 = arith.constant 0 : index
    %7 = vector.load %arg1[%c1_7, %c1_8, %c0_9] : memref<8x7x112xf32, #tpu.memory_space<vmem>>, vector<1x6x56xf32>
    %8 = vector.shape_cast %7 : vector<1x6x56xf32> to vector<6x56xf32>
    %9 = tpu.concatenate %6, %8 in 1 : vector<6x112xf32>, vector<6x56xf32> -> vector<6x168xf32>
    %c2 = arith.constant 2 : index
    %c0_10 = arith.constant 0 : index
    %c0_11 = arith.constant 0 : index
    %10 = vector.load %arg1[%c2, %c0_10, %c0_11] : memref<8x7x112xf32, #tpu.memory_space<vmem>>, vector<1x6x112xf32>
    %11 = vector.shape_cast %10 : vector<1x6x112xf32> to vector<6x112xf32>
    %c2_12 = arith.constant 2 : index
    %c1_13 = arith.constant 1 : index
    %c0_14 = arith.constant 0 : index
    %12 = vector.load %arg1[%c2_12, %c1_13, %c0_14] : memref<8x7x112xf32, #tpu.memory_space<vmem>>, vector<1x6x56xf32>
    %13 = vector.shape_cast %12 : vector<1x6x56xf32> to vector<6x56xf32>
    %14 = tpu.concatenate %11, %13 in 1 : vector<6x112xf32>, vector<6x56xf32> -> vector<6x168xf32>
    %c3 = arith.constant 3 : index
    %c0_15 = arith.constant 0 : index
    %c0_16 = arith.constant 0 : index
    %15 = vector.load %arg1[%c3, %c0_15, %c0_16] : memref<8x7x112xf32, #tpu.memory_space<vmem>>, vector<1x6x112xf32>
    %16 = vector.shape_cast %15 : vector<1x6x112xf32> to vector<6x112xf32>
    %c3_17 = arith.constant 3 : index
    %c1_18 = arith.constant 1 : index
    %c0_19 = arith.constant 0 : index
    %17 = vector.load %arg1[%c3_17, %c1_18, %c0_19] : memref<8x7x112xf32, #tpu.memory_space<vmem>>, vector<1x6x56xf32>
    %18 = vector.shape_cast %17 : vector<1x6x56xf32> to vector<6x56xf32>
    %19 = tpu.concatenate %16, %18 in 1 : vector<6x112xf32>, vector<6x56xf32> -> vector<6x168xf32>
    %c4 = arith.constant 4 : index
    %c0_20 = arith.constant 0 : index
    %c0_21 = arith.constant 0 : index
    %20 = vector.load %arg1[%c4, %c0_20, %c0_21] : memref<8x7x112xf32, #tpu.memory_space<vmem>>, vector<1x6x112xf32>
    %21 = vector.shape_cast %20 : vector<1x6x112xf32> to vector<6x112xf32>
    %c4_22 = arith.constant 4 : index
    %c1_23 = arith.constant 1 : index
    %c0_24 = arith.constant 0 : index
    %22 = vector.load %arg1[%c4_22, %c1_23, %c0_24] : memref<8x7x112xf32, #tpu.memory_space<vmem>>, vector<1x6x56xf32>
    %23 = vector.shape_cast %22 : vector<1x6x56xf32> to vector<6x56xf32>
    %24 = tpu.concatenate %21, %23 in 1 : vector<6x112xf32>, vector<6x56xf32> -> vector<6x168xf32>
    %c5 = arith.constant 5 : index
    %c0_25 = arith.constant 0 : index
    %c0_26 = arith.constant 0 : index
    %25 = vector.load %arg1[%c5, %c0_25, %c0_26] : memref<8x7x112xf32, #tpu.memory_space<vmem>>, vector<1x6x112xf32>
    %26 = vector.shape_cast %25 : vector<1x6x112xf32> to vector<6x112xf32>
    %c5_27 = arith.constant 5 : index
    %c1_28 = arith.constant 1 : index
    %c0_29 = arith.constant 0 : index
    %27 = vector.load %arg1[%c5_27, %c1_28, %c0_29] : memref<8x7x112xf32, #tpu.memory_space<vmem>>, vector<1x6x56xf32>
    %28 = vector.shape_cast %27 : vector<1x6x56xf32> to vector<6x56xf32>
    %29 = tpu.concatenate %26, %28 in 1 : vector<6x112xf32>, vector<6x56xf32> -> vector<6x168xf32>
    %c6 = arith.constant 6 : index
    %c0_30 = arith.constant 0 : index
    %c0_31 = arith.constant 0 : index
    %30 = vector.load %arg1[%c6, %c0_30, %c0_31] : memref<8x7x112xf32, #tpu.memory_space<vmem>>, vector<1x6x112xf32>
    %31 = vector.shape_cast %30 : vector<1x6x112xf32> to vector<6x112xf32>
    %c6_32 = arith.constant 6 : index
    %c1_33 = arith.constant 1 : index
    %c0_34 = arith.constant 0 : index
    %32 = vector.load %arg1[%c6_32, %c1_33, %c0_34] : memref<8x7x112xf32, #tpu.memory_space<vmem>>, vector<1x6x56xf32>
    %33 = vector.shape_cast %32 : vector<1x6x56xf32> to vector<6x56xf32>
    %34 = tpu.concatenate %31, %33 in 1 : vector<6x112xf32>, vector<6x56xf32> -> vector<6x168xf32>
    %c7 = arith.constant 7 : index
    %c0_35 = arith.constant 0 : index
    %c0_36 = arith.constant 0 : index
    %35 = vector.load %arg1[%c7, %c0_35, %c0_36] : memref<8x7x112xf32, #tpu.memory_space<vmem>>, vector<1x6x112xf32>
    %36 = vector.shape_cast %35 : vector<1x6x112xf32> to vector<6x112xf32>
    %c7_37 = arith.constant 7 : index
    %c1_38 = arith.constant 1 : index
    %c0_39 = arith.constant 0 : index
    %37 = vector.load %arg1[%c7_37, %c1_38, %c0_39] : memref<8x7x112xf32, #tpu.memory_space<vmem>>, vector<1x6x56xf32>
    %38 = vector.shape_cast %37 : vector<1x6x56xf32> to vector<6x56xf32>
    %39 = tpu.concatenate %36, %38 in 1 : vector<6x112xf32>, vector<6x56xf32> -> vector<6x168xf32>
    %40 = tpu.concatenate %4, %9, %14, %19, %24, %29, %34, %39 in 0 : vector<6x168xf32>, vector<6x168xf32>, vector<6x168xf32>, vector<6x168xf32>, vector<6x168xf32>, vector<6x168xf32>, vector<6x168xf32>, vector<6x168xf32> -> vector<48x168xf32>
    %c0_40 = arith.constant 0 : index
    %c0_41 = arith.constant 0 : index
    %41 = vector.load %arg2[%c0_40, %c0_41] : memref<168x1024xf32, #tpu.memory_space<vmem>>, vector<168x1024xf32>
    %cst = arith.constant dense<0.000000e+00> : vector<48x1024xf32>
    %42 = tpu.matmul %40, %41, %cst {dimension_numbers = #tpu.dot_dimension_numbers<[1], [0], [0], [1], [0, 0, 1, 1], [], []>} : vector<48x168xf32>, vector<168x1024xf32>, vector<48x1024xf32> -> vector<48x1024xf32>
    %43 = vector.extract_strided_slice %42 {offsets = [0, 0], sizes = [48, 256], strides = [1, 1]} : vector<48x1024xf32> to vector<48x256xf32>
    %44 = vector.extract_strided_slice %42 {offsets = [0, 256], sizes = [48, 256], strides = [1, 1]} : vector<48x1024xf32> to vector<48x256xf32>
    %45 = arith.maximumf %43, %44 : vector<48x256xf32>
    %46 = vector.extract_strided_slice %42 {offsets = [0, 512], sizes = [48, 256], strides = [1, 1]} : vector<48x1024xf32> to vector<48x256xf32>
    %47 = vector.extract_strided_slice %42 {offsets = [0, 768], sizes = [48, 256], strides = [1, 1]} : vector<48x1024xf32> to vector<48x256xf32>
    %48 = arith.maximumf %46, %47 : vector<48x256xf32>
    %49 = tpu.concatenate %45, %48 in 1 : vector<48x256xf32>, vector<48x256xf32> -> vector<48x512xf32>
    %c0_42 = arith.constant 0 : index
    %c0_43 = arith.constant 0 : index
    %50 = vector.load %arg3[%c0_42, %c0_43] : memref<1x512xf32, #tpu.memory_space<vmem>>, vector<1x512xf32>
    %51 = vector.broadcast %50 : vector<1x512xf32> to vector<48x512xf32>
    %52 = arith.addf %49, %51 : vector<48x512xf32>
    %cst_44 = arith.constant 0.000000e+00 : f32
    %53 = vector.broadcast %cst_44 : f32 to vector<48x512xf32>
    %54 = arith.maximumf %52, %53 : vector<48x512xf32>
    %c0_45 = arith.constant 0 : index
    %c0_46 = arith.constant 0 : index
    %55 = vector.load %arg4[%c0_45, %c0_46] : memref<512x512xf32, #tpu.memory_space<vmem>>, vector<512x512xf32>
    %cst_47 = arith.constant dense<0.000000e+00> : vector<48x512xf32>
    %56 = tpu.matmul %54, %55, %cst_47 {dimension_numbers = #tpu.dot_dimension_numbers<[1], [0], [0], [1], [0, 0, 1, 1], [], []>} : vector<48x512xf32>, vector<512x512xf32>, vector<48x512xf32> -> vector<48x512xf32>
    %57 = vector.extract_strided_slice %56 {offsets = [0, 0], sizes = [48, 256], strides = [1, 1]} : vector<48x512xf32> to vector<48x256xf32>
    %58 = vector.extract_strided_slice %56 {offsets = [0, 256], sizes = [48, 256], strides = [1, 1]} : vector<48x512xf32> to vector<48x256xf32>
    %59 = arith.maximumf %57, %58 : vector<48x256xf32>
    %60 = vector.extract_strided_slice %59 {offsets = [0, 0], sizes = [5, 256], strides = [1, 1]} : vector<48x256xf32> to vector<5x256xf32>
    %61 = vector.extract_strided_slice %59 {offsets = [1, 0], sizes = [5, 256], strides = [1, 1]} : vector<48x256xf32> to vector<5x256xf32>
    %62 = tpu.concatenate %60, %61 in 1 : vector<5x256xf32>, vector<5x256xf32> -> vector<5x512xf32>
    %63 = vector.extract_strided_slice %59 {offsets = [6, 0], sizes = [5, 256], strides = [1, 1]} : vector<48x256xf32> to vector<5x256xf32>
    %64 = vector.extract_strided_slice %59 {offsets = [7, 0], sizes = [5, 256], strides = [1, 1]} : vector<48x256xf32> to vector<5x256xf32>
    %65 = tpu.concatenate %63, %64 in 1 : vector<5x256xf32>, vector<5x256xf32> -> vector<5x512xf32>
    %66 = vector.extract_strided_slice %59 {offsets = [12, 0], sizes = [5, 256], strides = [1, 1]} : vector<48x256xf32> to vector<5x256xf32>
    %67 = vector.extract_strided_slice %59 {offsets = [13, 0], sizes = [5, 256], strides = [1, 1]} : vector<48x256xf32> to vector<5x256xf32>
    %68 = tpu.concatenate %66, %67 in 1 : vector<5x256xf32>, vector<5x256xf32> -> vector<5x512xf32>
    %69 = vector.extract_strided_slice %59 {offsets = [18, 0], sizes = [5, 256], strides = [1, 1]} : vector<48x256xf32> to vector<5x256xf32>
    %70 = vector.extract_strided_slice %59 {offsets = [19, 0], sizes = [5, 256], strides = [1, 1]} : vector<48x256xf32> to vector<5x256xf32>
    %71 = tpu.concatenate %69, %70 in 1 : vector<5x256xf32>, vector<5x256xf32> -> vector<5x512xf32>
    %72 = vector.extract_strided_slice %59 {offsets = [24, 0], sizes = [5, 256], strides = [1, 1]} : vector<48x256xf32> to vector<5x256xf32>
    %73 = vector.extract_strided_slice %59 {offsets = [25, 0], sizes = [5, 256], strides = [1, 1]} : vector<48x256xf32> to vector<5x256xf32>
    %74 = tpu.concatenate %72, %73 in 1 : vector<5x256xf32>, vector<5x256xf32> -> vector<5x512xf32>
    %75 = vector.extract_strided_slice %59 {offsets = [30, 0], sizes = [5, 256], strides = [1, 1]} : vector<48x256xf32> to vector<5x256xf32>
    %76 = vector.extract_strided_slice %59 {offsets = [31, 0], sizes = [5, 256], strides = [1, 1]} : vector<48x256xf32> to vector<5x256xf32>
    %77 = tpu.concatenate %75, %76 in 1 : vector<5x256xf32>, vector<5x256xf32> -> vector<5x512xf32>
    %78 = vector.extract_strided_slice %59 {offsets = [36, 0], sizes = [5, 256], strides = [1, 1]} : vector<48x256xf32> to vector<5x256xf32>
    %79 = vector.extract_strided_slice %59 {offsets = [37, 0], sizes = [5, 256], strides = [1, 1]} : vector<48x256xf32> to vector<5x256xf32>
    %80 = tpu.concatenate %78, %79 in 1 : vector<5x256xf32>, vector<5x256xf32> -> vector<5x512xf32>
    %81 = vector.extract_strided_slice %59 {offsets = [42, 0], sizes = [5, 256], strides = [1, 1]} : vector<48x256xf32> to vector<5x256xf32>
    %82 = vector.extract_strided_slice %59 {offsets = [43, 0], sizes = [5, 256], strides = [1, 1]} : vector<48x256xf32> to vector<5x256xf32>
    %83 = tpu.concatenate %81, %82 in 1 : vector<5x256xf32>, vector<5x256xf32> -> vector<5x512xf32>
    %84 = tpu.concatenate %62, %65, %68, %71, %74, %77, %80, %83 in 0 : vector<5x512xf32>, vector<5x512xf32>, vector<5x512xf32>, vector<5x512xf32>, vector<5x512xf32>, vector<5x512xf32>, vector<5x512xf32>, vector<5x512xf32> -> vector<40x512xf32>
    %c0_48 = arith.constant 0 : index
    %c0_49 = arith.constant 0 : index
    %85 = vector.load %arg5[%c0_48, %c0_49] : memref<512x512xf32, #tpu.memory_space<vmem>>, vector<512x512xf32>
    %cst_50 = arith.constant dense<0.000000e+00> : vector<40x512xf32>
    %86 = tpu.matmul %84, %85, %cst_50 {dimension_numbers = #tpu.dot_dimension_numbers<[1], [0], [0], [1], [0, 0, 1, 1], [], []>} : vector<40x512xf32>, vector<512x512xf32>, vector<40x512xf32> -> vector<40x512xf32>
    %87 = vector.extract_strided_slice %86 {offsets = [0, 0], sizes = [40, 256], strides = [1, 1]} : vector<40x512xf32> to vector<40x256xf32>
    %88 = vector.extract_strided_slice %86 {offsets = [0, 256], sizes = [40, 256], strides = [1, 1]} : vector<40x512xf32> to vector<40x256xf32>
    %89 = arith.maximumf %87, %88 : vector<40x256xf32>
    %c0_51 = arith.constant 0 : index
    %c0_52 = arith.constant 0 : index
    %90 = vector.load %arg6[%c0_51, %c0_52] : memref<1x256xf32, #tpu.memory_space<vmem>>, vector<1x256xf32>
    %91 = vector.broadcast %90 : vector<1x256xf32> to vector<40x256xf32>
    %92 = arith.addf %89, %91 : vector<40x256xf32>
    %cst_53 = arith.constant 0.000000e+00 : f32
    %93 = vector.broadcast %cst_53 : f32 to vector<40x256xf32>
    %94 = arith.maximumf %92, %93 : vector<40x256xf32>
    %c0_54 = arith.constant 0 : index
    %c0_55 = arith.constant 0 : index
    %95 = vector.load %arg7[%c0_54, %c0_55] : memref<256x256xf32, #tpu.memory_space<vmem>>, vector<256x256xf32>
    %cst_56 = arith.constant dense<0.000000e+00> : vector<40x256xf32>
    %96 = tpu.matmul %94, %95, %cst_56 {dimension_numbers = #tpu.dot_dimension_numbers<[1], [0], [0], [1], [0, 0, 1, 1], [], []>} : vector<40x256xf32>, vector<256x256xf32>, vector<40x256xf32> -> vector<40x256xf32>
    %97 = vector.extract_strided_slice %96 {offsets = [0, 0], sizes = [40, 128], strides = [1, 1]} : vector<40x256xf32> to vector<40x128xf32>
    %98 = vector.extract_strided_slice %96 {offsets = [0, 128], sizes = [40, 128], strides = [1, 1]} : vector<40x256xf32> to vector<40x128xf32>
    %99 = arith.maximumf %97, %98 : vector<40x128xf32>
    %100 = vector.extract_strided_slice %99 {offsets = [0, 0], sizes = [1, 128], strides = [1, 1]} : vector<40x128xf32> to vector<1x128xf32>
    %101 = vector.extract_strided_slice %99 {offsets = [1, 0], sizes = [1, 128], strides = [1, 1]} : vector<40x128xf32> to vector<1x128xf32>
    %102 = vector.extract_strided_slice %99 {offsets = [2, 0], sizes = [1, 128], strides = [1, 1]} : vector<40x128xf32> to vector<1x128xf32>
    %103 = vector.extract_strided_slice %99 {offsets = [3, 0], sizes = [1, 128], strides = [1, 1]} : vector<40x128xf32> to vector<1x128xf32>
    %104 = vector.extract_strided_slice %99 {offsets = [4, 0], sizes = [1, 128], strides = [1, 1]} : vector<40x128xf32> to vector<1x128xf32>
    %105 = tpu.concatenate %100, %101, %102, %103, %104 in 1 : vector<1x128xf32>, vector<1x128xf32>, vector<1x128xf32>, vector<1x128xf32>, vector<1x128xf32> -> vector<1x640xf32>
    %106 = vector.extract_strided_slice %99 {offsets = [5, 0], sizes = [1, 128], strides = [1, 1]} : vector<40x128xf32> to vector<1x128xf32>
    %107 = vector.extract_strided_slice %99 {offsets = [6, 0], sizes = [1, 128], strides = [1, 1]} : vector<40x128xf32> to vector<1x128xf32>
    %108 = vector.extract_strided_slice %99 {offsets = [7, 0], sizes = [1, 128], strides = [1, 1]} : vector<40x128xf32> to vector<1x128xf32>
    %109 = vector.extract_strided_slice %99 {offsets = [8, 0], sizes = [1, 128], strides = [1, 1]} : vector<40x128xf32> to vector<1x128xf32>
    %110 = vector.extract_strided_slice %99 {offsets = [9, 0], sizes = [1, 128], strides = [1, 1]} : vector<40x128xf32> to vector<1x128xf32>
    %111 = tpu.concatenate %106, %107, %108, %109, %110 in 1 : vector<1x128xf32>, vector<1x128xf32>, vector<1x128xf32>, vector<1x128xf32>, vector<1x128xf32> -> vector<1x640xf32>
    %112 = vector.extract_strided_slice %99 {offsets = [10, 0], sizes = [1, 128], strides = [1, 1]} : vector<40x128xf32> to vector<1x128xf32>
    %113 = vector.extract_strided_slice %99 {offsets = [11, 0], sizes = [1, 128], strides = [1, 1]} : vector<40x128xf32> to vector<1x128xf32>
    %114 = vector.extract_strided_slice %99 {offsets = [12, 0], sizes = [1, 128], strides = [1, 1]} : vector<40x128xf32> to vector<1x128xf32>
    %115 = vector.extract_strided_slice %99 {offsets = [13, 0], sizes = [1, 128], strides = [1, 1]} : vector<40x128xf32> to vector<1x128xf32>
    %116 = vector.extract_strided_slice %99 {offsets = [14, 0], sizes = [1, 128], strides = [1, 1]} : vector<40x128xf32> to vector<1x128xf32>
    %117 = tpu.concatenate %112, %113, %114, %115, %116 in 1 : vector<1x128xf32>, vector<1x128xf32>, vector<1x128xf32>, vector<1x128xf32>, vector<1x128xf32> -> vector<1x640xf32>
    %118 = vector.extract_strided_slice %99 {offsets = [15, 0], sizes = [1, 128], strides = [1, 1]} : vector<40x128xf32> to vector<1x128xf32>
    %119 = vector.extract_strided_slice %99 {offsets = [16, 0], sizes = [1, 128], strides = [1, 1]} : vector<40x128xf32> to vector<1x128xf32>
    %120 = vector.extract_strided_slice %99 {offsets = [17, 0], sizes = [1, 128], strides = [1, 1]} : vector<40x128xf32> to vector<1x128xf32>
    %121 = vector.extract_strided_slice %99 {offsets = [18, 0], sizes = [1, 128], strides = [1, 1]} : vector<40x128xf32> to vector<1x128xf32>
    %122 = vector.extract_strided_slice %99 {offsets = [19, 0], sizes = [1, 128], strides = [1, 1]} : vector<40x128xf32> to vector<1x128xf32>
    %123 = tpu.concatenate %118, %119, %120, %121, %122 in 1 : vector<1x128xf32>, vector<1x128xf32>, vector<1x128xf32>, vector<1x128xf32>, vector<1x128xf32> -> vector<1x640xf32>
    %124 = vector.extract_strided_slice %99 {offsets = [20, 0], sizes = [1, 128], strides = [1, 1]} : vector<40x128xf32> to vector<1x128xf32>
    %125 = vector.extract_strided_slice %99 {offsets = [21, 0], sizes = [1, 128], strides = [1, 1]} : vector<40x128xf32> to vector<1x128xf32>
    %126 = vector.extract_strided_slice %99 {offsets = [22, 0], sizes = [1, 128], strides = [1, 1]} : vector<40x128xf32> to vector<1x128xf32>
    %127 = vector.extract_strided_slice %99 {offsets = [23, 0], sizes = [1, 128], strides = [1, 1]} : vector<40x128xf32> to vector<1x128xf32>
    %128 = vector.extract_strided_slice %99 {offsets = [24, 0], sizes = [1, 128], strides = [1, 1]} : vector<40x128xf32> to vector<1x128xf32>
    %129 = tpu.concatenate %124, %125, %126, %127, %128 in 1 : vector<1x128xf32>, vector<1x128xf32>, vector<1x128xf32>, vector<1x128xf32>, vector<1x128xf32> -> vector<1x640xf32>
    %130 = vector.extract_strided_slice %99 {offsets = [25, 0], sizes = [1, 128], strides = [1, 1]} : vector<40x128xf32> to vector<1x128xf32>
    %131 = vector.extract_strided_slice %99 {offsets = [26, 0], sizes = [1, 128], strides = [1, 1]} : vector<40x128xf32> to vector<1x128xf32>
    %132 = vector.extract_strided_slice %99 {offsets = [27, 0], sizes = [1, 128], strides = [1, 1]} : vector<40x128xf32> to vector<1x128xf32>
    %133 = vector.extract_strided_slice %99 {offsets = [28, 0], sizes = [1, 128], strides = [1, 1]} : vector<40x128xf32> to vector<1x128xf32>
    %134 = vector.extract_strided_slice %99 {offsets = [29, 0], sizes = [1, 128], strides = [1, 1]} : vector<40x128xf32> to vector<1x128xf32>
    %135 = tpu.concatenate %130, %131, %132, %133, %134 in 1 : vector<1x128xf32>, vector<1x128xf32>, vector<1x128xf32>, vector<1x128xf32>, vector<1x128xf32> -> vector<1x640xf32>
    %136 = vector.extract_strided_slice %99 {offsets = [30, 0], sizes = [1, 128], strides = [1, 1]} : vector<40x128xf32> to vector<1x128xf32>
    %137 = vector.extract_strided_slice %99 {offsets = [31, 0], sizes = [1, 128], strides = [1, 1]} : vector<40x128xf32> to vector<1x128xf32>
    %138 = vector.extract_strided_slice %99 {offsets = [32, 0], sizes = [1, 128], strides = [1, 1]} : vector<40x128xf32> to vector<1x128xf32>
    %139 = vector.extract_strided_slice %99 {offsets = [33, 0], sizes = [1, 128], strides = [1, 1]} : vector<40x128xf32> to vector<1x128xf32>
    %140 = vector.extract_strided_slice %99 {offsets = [34, 0], sizes = [1, 128], strides = [1, 1]} : vector<40x128xf32> to vector<1x128xf32>
    %141 = tpu.concatenate %136, %137, %138, %139, %140 in 1 : vector<1x128xf32>, vector<1x128xf32>, vector<1x128xf32>, vector<1x128xf32>, vector<1x128xf32> -> vector<1x640xf32>
    %142 = vector.extract_strided_slice %99 {offsets = [35, 0], sizes = [1, 128], strides = [1, 1]} : vector<40x128xf32> to vector<1x128xf32>
    %143 = vector.extract_strided_slice %99 {offsets = [36, 0], sizes = [1, 128], strides = [1, 1]} : vector<40x128xf32> to vector<1x128xf32>
    %144 = vector.extract_strided_slice %99 {offsets = [37, 0], sizes = [1, 128], strides = [1, 1]} : vector<40x128xf32> to vector<1x128xf32>
    %145 = vector.extract_strided_slice %99 {offsets = [38, 0], sizes = [1, 128], strides = [1, 1]} : vector<40x128xf32> to vector<1x128xf32>
    %146 = vector.extract_strided_slice %99 {offsets = [39, 0], sizes = [1, 128], strides = [1, 1]} : vector<40x128xf32> to vector<1x128xf32>
    %147 = tpu.concatenate %142, %143, %144, %145, %146 in 1 : vector<1x128xf32>, vector<1x128xf32>, vector<1x128xf32>, vector<1x128xf32>, vector<1x128xf32> -> vector<1x640xf32>
    %148 = tpu.concatenate %105, %111, %117, %123, %129, %135, %141, %147 in 0 : vector<1x640xf32>, vector<1x640xf32>, vector<1x640xf32>, vector<1x640xf32>, vector<1x640xf32>, vector<1x640xf32>, vector<1x640xf32>, vector<1x640xf32> -> vector<8x640xf32>
    %c0_57 = arith.constant 0 : index
    %c0_58 = arith.constant 0 : index
    %149 = vector.load %arg8[%c0_57, %c0_58] : memref<640x120xf32, #tpu.memory_space<vmem>>, vector<640x120xf32>
    %cst_59 = arith.constant dense<0.000000e+00> : vector<8x120xf32>
    %150 = tpu.matmul %148, %149, %cst_59 {dimension_numbers = #tpu.dot_dimension_numbers<[1], [0], [0], [1], [0, 0, 1, 1], [], []>} : vector<8x640xf32>, vector<640x120xf32>, vector<8x120xf32> -> vector<8x120xf32>
    %c0_60 = arith.constant 0 : index
    %c0_61 = arith.constant 0 : index
    %151 = vector.load %arg9[%c0_60, %c0_61] : memref<1x120xf32, #tpu.memory_space<vmem>>, vector<1x120xf32>
    %152 = vector.broadcast %151 : vector<1x120xf32> to vector<8x120xf32>
    %153 = arith.addf %150, %152 : vector<8x120xf32>
    %cst_62 = arith.constant 0.000000e+00 : f32
    %154 = vector.broadcast %cst_62 : f32 to vector<8x120xf32>
    %155 = arith.maximumf %153, %154 : vector<8x120xf32>
    %c0_63 = arith.constant 0 : index
    %c0_64 = arith.constant 0 : index
    %156 = vector.load %arg10[%c0_63, %c0_64] : memref<120x84xf32, #tpu.memory_space<vmem>>, vector<120x84xf32>
    %cst_65 = arith.constant dense<0.000000e+00> : vector<8x84xf32>
    %157 = tpu.matmul %155, %156, %cst_65 {dimension_numbers = #tpu.dot_dimension_numbers<[1], [0], [0], [1], [0, 0, 1, 1], [], []>} : vector<8x120xf32>, vector<120x84xf32>, vector<8x84xf32> -> vector<8x84xf32>
    %c0_66 = arith.constant 0 : index
    %c0_67 = arith.constant 0 : index
    %158 = vector.load %arg11[%c0_66, %c0_67] : memref<1x84xf32, #tpu.memory_space<vmem>>, vector<1x84xf32>
    %159 = vector.broadcast %158 : vector<1x84xf32> to vector<8x84xf32>
    %160 = arith.addf %157, %159 : vector<8x84xf32>
    %cst_68 = arith.constant 0.000000e+00 : f32
    %161 = vector.broadcast %cst_68 : f32 to vector<8x84xf32>
    %162 = arith.maximumf %160, %161 : vector<8x84xf32>
    %c0_69 = arith.constant 0 : index
    %c0_70 = arith.constant 0 : index
    %163 = vector.load %arg12[%c0_69, %c0_70] : memref<84x10xf32, #tpu.memory_space<vmem>>, vector<84x10xf32>
    %cst_71 = arith.constant dense<0.000000e+00> : vector<8x10xf32>
    %164 = tpu.matmul %162, %163, %cst_71 {dimension_numbers = #tpu.dot_dimension_numbers<[1], [0], [0], [1], [0, 0, 1, 1], [], []>} : vector<8x84xf32>, vector<84x10xf32>, vector<8x10xf32> -> vector<8x10xf32>
    %c0_72 = arith.constant 0 : index
    %c0_73 = arith.constant 0 : index
    %165 = vector.load %arg13[%c0_72, %c0_73] : memref<1x10xf32, #tpu.memory_space<vmem>>, vector<1x10xf32>
    %166 = vector.broadcast %165 : vector<1x10xf32> to vector<8x10xf32>
    %167 = arith.addf %164, %166 : vector<8x10xf32>
    %c0_74 = arith.constant 0 : index
    %c0_75 = arith.constant 0 : index
    %168 = vector.load %arg14[%c0_74, %c0_75] : memref<8x10xf32, #tpu.memory_space<vmem>>, vector<8x10xf32>
    tpu.vector_store %arg14[%c0_74, %c0_75], %167 {strides = array<i32>} : memref<8x10xf32, #tpu.memory_space<vmem>>, vector<8x10xf32>,
    return
  }
  func.func @transform_0(%arg0: i32) -> (i32, i32, i32) {
    %c0_i32 = arith.constant 0 : i32
    %c0_i32_0 = arith.constant 0 : i32
    %c0_i32_1 = arith.constant 0 : i32
    return %arg0, %c0_i32, %c0_i32_0 : i32, i32, i32
  }
  func.func @transform_1(%arg0: i32) -> (i32, i32) {
    %c0_i32 = arith.constant 0 : i32
    %c0_i32_0 = arith.constant 0 : i32
    %c0_i32_1 = arith.constant 0 : i32
    return %c0_i32, %c0_i32_0 : i32, i32
  }
  func.func @transform_2(%arg0: i32) -> (i32, i32) {
    %c0_i32 = arith.constant 0 : i32
    %c0_i32_0 = arith.constant 0 : i32
    %c0_i32_1 = arith.constant 0 : i32
    return %c0_i32, %c0_i32_0 : i32, i32
  }
  func.func @transform_3(%arg0: i32) -> (i32, i32) {
    %c0_i32 = arith.constant 0 : i32
    %c0_i32_0 = arith.constant 0 : i32
    %c0_i32_1 = arith.constant 0 : i32
    return %c0_i32, %c0_i32_0 : i32, i32
  }
  func.func @transform_4(%arg0: i32) -> (i32, i32) {
    %c0_i32 = arith.constant 0 : i32
    %c0_i32_0 = arith.constant 0 : i32
    %c0_i32_1 = arith.constant 0 : i32
    return %c0_i32, %c0_i32_0 : i32, i32
  }
  func.func @transform_5(%arg0: i32) -> (i32, i32) {
    %c0_i32 = arith.constant 0 : i32
    %c0_i32_0 = arith.constant 0 : i32
    %c0_i32_1 = arith.constant 0 : i32
    return %c0_i32, %c0_i32_0 : i32, i32
  }
  func.func @transform_6(%arg0: i32) -> (i32, i32) {
    %c0_i32 = arith.constant 0 : i32
    %c0_i32_0 = arith.constant 0 : i32
    %c0_i32_1 = arith.constant 0 : i32
    return %c0_i32, %c0_i32_0 : i32, i32
  }
  func.func @transform_7(%arg0: i32) -> (i32, i32) {
    %c0_i32 = arith.constant 0 : i32
    %c0_i32_0 = arith.constant 0 : i32
    %c0_i32_1 = arith.constant 0 : i32
    return %c0_i32, %c0_i32_0 : i32, i32
  }
  func.func @transform_8(%arg0: i32) -> (i32, i32) {
    %c0_i32 = arith.constant 0 : i32
    %c0_i32_0 = arith.constant 0 : i32
    %c0_i32_1 = arith.constant 0 : i32
    return %c0_i32, %c0_i32_0 : i32, i32
  }
  func.func @transform_9(%arg0: i32) -> (i32, i32) {
    %c0_i32 = arith.constant 0 : i32
    %c0_i32_0 = arith.constant 0 : i32
    %c0_i32_1 = arith.constant 0 : i32
    return %c0_i32, %c0_i32_0 : i32, i32
  }
  func.func @transform_10(%arg0: i32) -> (i32, i32) {
    %c0_i32 = arith.constant 0 : i32
    %c0_i32_0 = arith.constant 0 : i32
    %c0_i32_1 = arith.constant 0 : i32
    return %c0_i32, %c0_i32_0 : i32, i32
  }
  func.func @transform_11(%arg0: i32) -> (i32, i32) {
    %c0_i32 = arith.constant 0 : i32
    %c0_i32_0 = arith.constant 0 : i32
    %c0_i32_1 = arith.constant 0 : i32
    return %c0_i32, %c0_i32_0 : i32, i32
  }
  func.func @transform_12(%arg0: i32) -> (i32, i32) {
    %c0_i32 = arith.constant 0 : i32
    %c0_i32_0 = arith.constant 0 : i32
    %c0_i32_1 = arith.constant 0 : i32
    return %c0_i32, %c0_i32_0 : i32, i32
  }
  func.func @transform_13(%arg0: i32) -> (i32, i32) {
    %c0_i32 = arith.constant 0 : i32
    %c0_i32_0 = arith.constant 0 : i32
    return %arg0, %c0_i32 : i32, i32
  }
}

</mosaic_0001>

<bundles_post_ra>
// kernel: _lambda_.1
= control target key start
LH: loop header
LB: loop body
LE: loop exit
PB: predicated region body
PF: predicated region fallthrough
CT: control target
= control target key end

     0   :  { %s6662_s0 = inlined_call_operand.vmem [shape: f32[16,7,112], index: 0, kind: input, shape index: {}]   ;;  %s6663_s1 = inlined_call_operand.hbm [shape: f32[168,1024], index: 1, kind: input, shape index: {}]   ;;  %s6664_s2 = inlined_call_operand.vmem [shape: f32[1,512], index: 2, kind: input, shape index: {}]   ;;  %s6665_s3 = inlined_call_operand.vmem [shape: f32[512,512], index: 3, kind: input, shape index: {}]   ;;  %s6666_s4 = inlined_call_operand.hbm [shape: f32[512,512], index: 4, kind: input, shape index: {}]   ;;  %s6667_s5 = inlined_call_operand.vmem [shape: f32[1,256], index: 5, kind: input, shape index: {}]   ;;  %s6668_s6 = inlined_call_operand.hbm [shape: f32[256,256], index: 6, kind: input, shape index: {}]   ;;  %s6669_s7 = inlined_call_operand.vmem [shape: f32[640,120], index: 7, kind: input, shape index: {}]   ;;  %s6670_s8 = inlined_call_operand.vmem [shape: f32[1,120], index: 8, kind: input, shape index: {}]   ;;  %s6671_s9 = inlined_call_operand.vmem [shape: f32[120,84], index: 9, kind: input, shape index: {}]   ;;  %s6672_s10 = inlined_call_operand.vmem [shape: f32[1,84], index: 10, kind: input, shape index: {}]   ;;  %s6673_s11 = inlined_call_operand.vmem [shape: f32[84,10], index: 11, kind: input, shape index: {}]   ;;  %s6674_s12 = inlined_call_operand.vmem [shape: f32[1,10], index: 12, kind: input, shape index: {}]   ;;  %s6675_s13 = inlined_call_operand.hbm [shape: f32[16,10], index: 13, kind: output, shape index: {}]  }
   0x1   :  { %6684 = sst [smem:[#allocation26_spill]] %s6663_s1 }
   0x2   :  { %6685 = sst [smem:[#allocation27_spill]] %s6666_s4 }
   0x3   :  { %6686 = sst [smem:[#allocation28_spill]] %s6674_s12 }
   0x4   :  { %18 = vsyncpa [#allocation3], 0 }
   0x5   :  { %19 = vsyncpa [#allocation6], 0 }
   0x6   :  { %20 = vsyncpa [#allocation4], 0 }
   0x7   :  { %22 = vsyncpa [#allocation4 + $0x1], 0  ;;  %s4325_s25 = smov 0   ;;  %s4327_s26 = smov 0  }
   0x8   :  { %s4329_s27 = smov 0   ;;  %s4331_s28 = smov 0  }
   0x9 LB: > { %6687 = sst [smem:[#allocation12_spill]] %s4231_s25  ;;  %s4346_s29 = sadd.s32 4294967295, %s4243_s28   ;;  %s4243_s28 = sphi %s4331_s28, %s6719_s28   ;;  %s4239_s27 = sphi %s4329_s27, %s6721_s27   ;;  %s4235_s26 = sphi %s4327_s26, %s6723_s26   ;;  %s4231_s25 = sphi %s4325_s25, %s6722_s25  }
   0xa   : > { %6688 = sst [smem:[#allocation13_spill]] %s4239_s27  ;;  %s3901_s30 = sadd.s32 4294967294, %s4243_s28  }
   0xb   : > { %6689 = sst [smem:[#allocation14_spill]] %s4243_s28  ;;  %s4350_s14 = sadd.s32 1, %s4243_s28  }
   0xc   : > { %6690 = sst [smem:[#allocation15_spill]] %s4350_s14  ;;  %s313_s15 = sadd.s32 1, %s4239_s27 }
   0xd   : > { %s310_s16 = ssub.s32 %s4243_s28, %s4350_s14  ;;  %p323_p0 = scmp.ne.s32.totalorder %s4239_s27, %s4235_s26 }
   0xe   : > { %p311_p1 = scmp.eq.s32.totalorder %s310_s16, 0  ;;  %p324_p2 = scmp.eq.s32.totalorder %s4346_s29, 1 }
   0xf   : > { %p329_p3 = scmp.ne.s32.totalorder %s4235_s26, %s4231_s25  ;;  %p330_p4 = scmp.eq.s32.totalorder %s3901_s30, 1 }
  0x10   : > { %s4361_s17 = scalar_select %p311_p1, %s4239_s27, %s313_s15  }
  0x11   : > { %p4363_p5 = por %p324_p2, %p323_p0  ;;  %p4367_p6 = por %p330_p4, %p329_p3 }
  0x12   : > { %6691 = sst [smem:[#allocation16_spill]] %s4361_s17  ;;  %p3902_p7 = scmp.ge.s32.totalorder %s4243_s28, 1 }
  0x13   : > { %s6692_s18 = scalar_select %p4363_p5, 1, 0 }
  0x14   : > { %s6694_s19 = scalar_select %p4367_p6, 1, 0 }
  0x15   : > { %6693 = sst [smem:[#allocation17_spill]] %s6692_s18  ;;  %p337_p8 = scmp.lt.s32.totalorder %s4243_s28, 3 }
  0x16   : > { %6695 = sst [smem:[#allocation18_spill]] %s6694_s19  ;;  %p4031_p9 = scmp.eq.s32.totalorder %s4346_s29, 0 }
  0x17   : > { %p4374_p10 = pnand %p3902_p7, %p337_p8  ;;  %s6697_s4 = sld [smem:[#allocation27_spill]] }
  0x18   : > { %s4245_s24 = smov [#allocation5]   ;;  %s6699_s1 = sld [smem:[#allocation26_spill]] }
  0x19   : > { %p4017_p11 = pneg %p4374_p10  ;;  %s370_s30 = sshll.u32 %s4245_s24, 4  ;;  %s371_s30 = int_to_ptr.vmem [resolvable:$true] %s370_s30 }
  0x1a   : > { %s4246_s21 = smov 512   ;;  %s4247_s22 = smov 32  }
  0x1b   : > { %p4385_p12 = pnand %p4031_p9, %p4017_p11  ;;  %s4249_s14 = smov 1024  }
  0x1c   : > { %s4250_s19 = smov 64   ;;  %s385_s17 = sshll.u32 %s6668_s6, 4  ;;  %s386_s17 = int_to_ptr.hbm [resolvable:$true] %s385_s17 }
  0x1d   : > { %s368_s23 = sshll.u32 %s6697_s4, 4  ;;  %s4248_s4 = smov [#allocation2]   ;;  %s369_s23 = int_to_ptr.hbm [resolvable:$true] %s368_s23 }
  0x1e   : > { %s348_s27 = sshll.u32 %s6699_s1, 4  ;;  %s350_s24 = sshll.u32 %s4248_s4, 4  ;;  %s349_s27 = int_to_ptr.hbm [resolvable:$true] %s348_s27  ;;  %s351_s24 = int_to_ptr.vmem [resolvable:$true] %s350_s24 }
  0x1f   : > { %4023 = dma.hbm_to_vmem [thread:$0]  (!%p4385_p12), %s369_s23, 32768, %s371_s30, [#allocation6], %s4246_s21, %s4246_s21, %s4247_s22  }
  0x20   : > { %4020 = dma.hbm_to_vmem [thread:$0]  (!%p4385_p12), %s349_s27, 21504, %s351_s24, [#allocation3], %s4249_s14, %s4249_s14, %s4250_s19  }
  0x21   : > { %s4251_s16 = smov [#allocation7]   ;;  %s4252_s18 = smov 256  }
  0x22   : > { %s387_s1 = sshll.u32 %s4251_s16, 4  ;;  %s4253_s12 = smov 16   ;;  %s388_s1 = int_to_ptr.vmem [resolvable:$true] %s387_s1 }
  0x23   : > { %4026 = dma.hbm_to_vmem [thread:$0]  (!%p4385_p12), %s386_s17, 8192, %s388_s1, [#allocation6], %s4252_s18, %s4252_s18, %s4253_s12  }
  0x24   : > { %430 = sbr.rel (%p4374_p10) target bundleno = 1611 (0x64b), region = 72 }
  0x29   : > { %4218 = dma.done.wait (%p4031_p9), [#allocation3], 21504  }
  0x2a   : > { %4220 = vsyncadd (%p4031_p9), [#allocation3], 4294945792 }
  0x2b   : > { %4222 = dma.done.wait (%p4031_p9), [#allocation6], 40960  }
  0x2c   : > { %4224 = vsyncadd (%p4031_p9), [#allocation6], 4294926336  ;;  %s4412_s4 = sshll.u32 %s4346_s29, 3  ;;  %s4254_s14 = smov 112   ;;  %v720_v2 = vld [vmem:[#allocation2 + $0x3c0] sm:$0xff]  ;;  %v721_v4 = vld [vmem:[#allocation2 + $0x3c8] sm:$0xff] }
  0x2d   : > { %p486_p13 = scmp.lt.s32.totalorder %s4412_s4, 15  ;;  %787 = vmatpush.msra.mxu0 %v720_v2  ;;  %v712_v5 = vld [vmem:[#allocation2 + $0x380] sm:$0xff]  ;;  %v713_v6 = vld [vmem:[#allocation2 + $0x388] sm:$0xff]  ;;  %857 = vmatpush.msra.mxu2 %v721_v4  ;;  %v723_v50 = vld [vmem:[#allocation2 + $0x3d8] sm:$0xff]  ;;  %vm497_vm0 = vcmask 916480   ;;  %vm585_vm1 = vcmask 1045504  }
  0x2e   : > { %v704_v7 = vld [vmem:[#allocation2 + $0x340] sm:$0xff]  ;;  %v705_v8 = vld [vmem:[#allocation2 + $0x348] sm:$0xff]  ;;  %v715_v51 = vld [vmem:[#allocation2 + $0x398] sm:$0xff]  ;;  %vm768_vm2 = vcmask 326656   ;;  %vm588_vm3 = vcmask 1043456   ;;  %vm591_vm4 = vcmask 1041408  }
  0x2f   : > { %s487_s1 = scalar_select %p486_p13, %s4412_s4, 15  ;;  %788 = vmatpush.msra.mxu0 %v712_v5  ;;  %v696_v9 = vld [vmem:[#allocation2 + $0x300] sm:$0xff]  ;;  %858 = vmatpush.msra.mxu2 %v713_v6  ;;  %v697_v12 = vld [vmem:[#allocation2 + $0x308] sm:$0xff]  ;;  %v707_v52 = vld [vmem:[#allocation2 + $0x358] sm:$0xff]  ;;  %vm2265_vm5 = vcmask 1046528   ;;  %vm2383_vm6 = vcmask 1044480  }
  0x30   : > { %v688_v13 = vld [vmem:[#allocation2 + $0x2c0] sm:$0xff]  ;;  %v689_v15 = vld [vmem:[#allocation2 + $0x2c8] sm:$0xff]  ;;  %v699_v53 = vld [vmem:[#allocation2 + $0x318] sm:$0xff]  ;;  %vm2338_vm7 = vcmask 1042432   ;;  %vm2400_vm8 = vcmask 1040384   ;;  %vm3726_vm9 = vcmask 982016  }
  0x31   : > { %s3913_s12 = sshll.u32 %s487_s1, 3  ;;  %789 = vmatpush.msra.mxu0 %v704_v7  ;;  %859 = vmatpush.msra.mxu2 %v705_v8  ;;  %v680_v16 = vld [vmem:[#allocation2 + $0x280] sm:$0xff]  ;;  %v681_v17 = vld [vmem:[#allocation2 + $0x288] sm:$0xff]  ;;  %v762_v54 = vld [vmem:[#allocation2 + $0x510] sm:$0xff]  ;;  %vm3766_vm10 = vcmask 687104   ;;  %s482_s1 = sand.u32 1, %s4235_s26  }
  0x32   : > { %s4419_s28 = scalar_lea.vmem %s6662_s0, %s3913_s12  ;;  %v672_v18 = vld [vmem:[#allocation2 + $0x240] sm:$0xff]  ;;  %v673_v19 = vld [vmem:[#allocation2 + $0x248] sm:$0xff]  ;;  %v691_v55 = vld [vmem:[#allocation2 + $0x2d8] sm:$0xff]  ;;  %s3911_s12 = sshll.u32 %s482_s1, 3  ;;  %vm3793_vm11 = vcmask 80896  }
  0x33   : > { %v3917_v0 = vld [vmem:[%s4419_s28 + $0x11] sm:$0x3f]  ;;  %v3915_v1 = vld [vmem:[%s4419_s28 + $0x9] sm:$0x3f]  ;;  %v492_v10 = vld [vmem:[%s4419_s28 + $0x1] sm:$0x3f]  ;;  %790 = vmatpush.msra.mxu0 %v696_v9  ;;  %860 = vmatpush.msra.mxu2 %v697_v12 }
  0x34   : > { %511 = vrot.lane.b32.xlu1 %v3917_v0, %s4254_s14  ;;  %503 = vrot.lane.b32.xlu0 %v3915_v1, %s4254_s14  ;;  %v3923_v3 = vld [vmem:[%s4419_s28 + $0x29] sm:$0x3f]  ;;  %v3919_v11 = vld [vmem:[%s4419_s28 + $0x19] sm:$0x3f]  ;;  %v664_v20 = vld [vmem:[#allocation2 + $0x200] sm:$0xff]  ;;  %s6714_s18 = sld [smem:[#allocation28_spill]] }
  0x35   : > { %535 = vrot.lane.b32.xlu2 %v3923_v3, %s4254_s14  ;;  %v3921_v14 = vld [vmem:[%s4419_s28 + $0x21] sm:$0x3f]  ;;  %791 = vmatpush.msra.mxu0 %v688_v13  ;;  %v3925_v21 = vld [vmem:[%s4419_s28 + $0x31] sm:$0x3f]  ;;  %v3927_v22 = vld [vmem:[%s4419_s28 + $0x39] sm:$0x3f] }
  0x36   : > { %861 = vmatpush.msra.mxu2 %v689_v15  ;;  %v665_v23 = vld [vmem:[#allocation2 + $0x208] sm:$0xff]  ;;  %v656_v24 = vld [vmem:[#allocation2 + $0x1c0] sm:$0xff]  ;;  %v683_v56 = vld [vmem:[#allocation2 + $0x298] sm:$0xff]  ;;  %s484_s20 = scalar_lea.vmem [#allocation8], %s3911_s12  ;;  %s3796_s15 = scalar_lea.sflag [#allocation4], %s482_s1 }
  0x37   : > { %792 = vmatpush.msra.mxu0 %v680_v16  ;;  %v657_v25 = vld [vmem:[#allocation2 + $0x1c8] sm:$0xff]  ;;  %v648_v26 = vld [vmem:[#allocation2 + $0x180] sm:$0xff]  ;;  %v722_v57 = vld [vmem:[#allocation2 + $0x3d0] sm:$0xff]  ;;  %s3808_s23 = sshll.u32 %s484_s20, 4  ;;  %s4193_s17 = scalar_lea.hbm %s6675_s13, 16  ;;  %s3809_s23 = int_to_ptr.vmem [resolvable:$true] %s3808_s23 }
  0x38   : > { %862 = vmatpush.msra.mxu2 %v681_v17  ;;  %v649_v27 = vld [vmem:[#allocation2 + $0x188] sm:$0xff]  ;;  %v640_v28 = vld [vmem:[#allocation2 + $0x140] sm:$0xff]  ;;  %v714_v58 = vld [vmem:[#allocation2 + $0x390] sm:$0xff] }
  0x39   : > { %793 = vmatpush.msra.mxu0 %v672_v18  ;;  %v641_v29 = vld [vmem:[#allocation2 + $0x148] sm:$0xff]  ;;  %v760_v30 = vld [vmem:[#allocation2 + $0x500] sm:$0xff]  ;;  %v675_v59 = vld [vmem:[#allocation2 + $0x258] sm:$0xff] }
  0x3a   : > { %863 = vmatpush.msra.mxu2 %v673_v19  ;;  %833 = vmatpush.msra.mxu1 %v760_v30  ;;  %v761_v31 = vld [vmem:[#allocation2 + $0x508] sm:$0xff]  ;;  %v632_v32 = vld [vmem:[#allocation2 + $0x100] sm:$0xff]  ;;  %v706_v60 = vld [vmem:[#allocation2 + $0x350] sm:$0xff] }
  0x3b   : > { %794 = vmatpush.msra.mxu0 %v664_v20  ;;  %v633_v33 = vld [vmem:[#allocation2 + $0x108] sm:$0xff]  ;;  %903 = vmatpush.msra.mxu3 %v761_v31  ;;  %v752_v34 = vld [vmem:[#allocation2 + $0x4c0] sm:$0xff]  ;;  %v667_v61 = vld [vmem:[#allocation2 + $0x218] sm:$0xff] }
  0x3c   : > { %494 = vrot.lane.b32.xlu0 %v492_v10, %s4254_s14  ;;  %519 = vrot.lane.b32.xlu1 %v3919_v11, %s4254_s14  ;;  %v753_v35 = vld [vmem:[#allocation2 + $0x4c8] sm:$0xff]  ;;  %v624_v36 = vld [vmem:[#allocation2 + $0xc0] sm:$0xff]  ;;  %v754_v62 = vld [vmem:[#allocation2 + $0x4d0] sm:$0xff] }
  0x3d   : > { %527 = vrot.lane.b32.xlu2 %v3921_v14, %s4254_s14  ;;  %864 = vmatpush.msra.mxu2 %v665_v23  ;;  %v625_v37 = vld [vmem:[#allocation2 + $0xc8] sm:$0xff]  ;;  %v744_v38 = vld [vmem:[#allocation2 + $0x480] sm:$0xff]  ;;  %v698_v63 = vld [vmem:[#allocation2 + $0x310] sm:$0xff] }
  0x3e   : > { %795 = vmatpush.msra.mxu0 %v656_v24  ;;  %834 = vmatpush.msra.mxu1 %v752_v34  ;;  %v745_v39 = vld [vmem:[#allocation2 + $0x488] sm:$0xff]  ;;  %v616_v40 = vld [vmem:[#allocation2 + $0x80] sm:$0xff]  ;;  %v690_v2 = vld [vmem:[#allocation2 + $0x2d0] sm:$0xff] }
  0x3f   : > { %865 = vmatpush.msra.mxu2 %v657_v25  ;;  %904 = vmatpush.msra.mxu3 %v753_v35  ;;  %v617_v41 = vld [vmem:[#allocation2 + $0x88] sm:$0xff]  ;;  %v736_v42 = vld [vmem:[#allocation2 + $0x440] sm:$0xff]  ;;  %v659_v3 = vld [vmem:[#allocation2 + $0x1d8] sm:$0xff] }
  0x40   : > { %796 = vmatpush.msra.mxu0 %v648_v26  ;;  %835 = vmatpush.msra.mxu1 %v744_v38  ;;  %v737_v43 = vld [vmem:[#allocation2 + $0x448] sm:$0xff]  ;;  %v608_v44 = vld [vmem:[#allocation2 + $0x40] sm:$0xff]  ;;  %v682_v4 = vld [vmem:[#allocation2 + $0x290] sm:$0xff] }
  0x41   : > { %866 = vmatpush.msra.mxu2 %v649_v27  ;;  %905 = vmatpush.msra.mxu3 %v745_v39  ;;  %v609_v45 = vld [vmem:[#allocation2 + $0x48] sm:$0xff]  ;;  %v728_v46 = vld [vmem:[#allocation2 + $0x400] sm:$0xff]  ;;  %v651_v5 = vld [vmem:[#allocation2 + $0x198] sm:$0xff] }
  0x42   : > { %797 = vmatpush.msra.mxu0 %v640_v28  ;;  %836 = vmatpush.msra.mxu1 %v736_v42  ;;  %v729_v47 = vld [vmem:[#allocation2 + $0x408] sm:$0xff]  ;;  %v600_v48 = vld [vmem:[#allocation2] sm:$0xff]  ;;  %v674_v6 = vld [vmem:[#allocation2 + $0x250] sm:$0xff] }
  0x43   : > { %867 = vmatpush.msra.mxu2 %v641_v29  ;;  %906 = vmatpush.msra.mxu3 %v737_v43  ;;  %v601_v49 = vld [vmem:[#allocation2 + $0x8] sm:$0xff]  ;;  %v643_v8 = vld [vmem:[#allocation2 + $0x158] sm:$0xff]  ;;  %v491_v9 = vld [vmem:[%s4419_s28] sm:$0x3f] }
  0x44   : > { %543 = vrot.lane.b32.xlu0 %v3925_v21, %s4254_s14  ;;  %551 = vrot.lane.b32.xlu1 %v3927_v22, %s4254_s14  ;;  %v3914_v1 = vld [vmem:[%s4419_s28 + $0x8] sm:$0x3f]  ;;  %v666_v10 = vld [vmem:[#allocation2 + $0x210] sm:$0xff]  ;;  %v635_v22 = vld [vmem:[#allocation2 + $0x118] sm:$0xff] }
  0x45   : > { %798 = vmatpush.msra.mxu0 %v632_v32  ;;  %868 = vmatpush.msra.mxu2 %v633_v33  ;;  %v3916_v13 = vld [vmem:[%s4419_s28 + $0x10] sm:$0x3f]  ;;  %v627_v24 = vld [vmem:[#allocation2 + $0xd8] sm:$0xff] }
  0x46   : > { %837 = vmatpush.msra.mxu1 %v728_v46  ;;  %907 = vmatpush.msra.mxu3 %v729_v47  ;;  %v658_v19 = vld [vmem:[#allocation2 + $0x1d0] sm:$0xff]  ;;  %v3918_v28 = vld [vmem:[%s4419_s28 + $0x18] sm:$0x3f] }
  0x47   : > { %799 = vmatpush.msra.mxu0 %v624_v36  ;;  %869 = vmatpush.msra.mxu2 %v625_v37  ;;  %v746_v21 = vld [vmem:[#allocation2 + $0x490] sm:$0xff]  ;;  %v619_v34 = vld [vmem:[#allocation2 + $0x98] sm:$0xff] }
  0x48   : > { %973 = vmatpush.msrb.mxu3 %v762_v54  ;;  %927 = vmatpush.msrb.mxu1 %v722_v57  ;;  %v650_v23 = vld [vmem:[#allocation2 + $0x190] sm:$0xff]  ;;  %v611_v38 = vld [vmem:[#allocation2 + $0x58] sm:$0xff] }
  0x49   : > { %800 = vmatpush.msra.mxu0 %v616_v40  ;;  %870 = vmatpush.msra.mxu2 %v617_v41  ;;  %v642_v26 = vld [vmem:[#allocation2 + $0x150] sm:$0xff]  ;;  %v603_v41 = vld [vmem:[#allocation2 + $0x18] sm:$0xff] }
  0x4a   : > { %928 = vmatpush.msrb.mxu1 %v714_v58  ;;  %974 = vmatpush.msrb.mxu3 %v754_v62  ;;  %v634_v31 = vld [vmem:[#allocation2 + $0x110] sm:$0xff]  ;;  %v763_v47 = vld [vmem:[#allocation2 + $0x518] sm:$0xff] }
  0x4b   : > { %801 = vmatpush.msra.mxu0 %v608_v44  ;;  %871 = vmatpush.msra.mxu2 %v609_v45  ;;  %v626_v36 = vld [vmem:[#allocation2 + $0xd0] sm:$0xff]  ;;  %v3922_v44 = vld [vmem:[%s4419_s28 + $0x28] sm:$0x3f] }
  0x4c   : > { %929 = vmatpush.msrb.mxu1 %v706_v60  ;;  %975 = vmatpush.msrb.mxu3 %v746_v21  ;;  %v738_v37 = vld [vmem:[#allocation2 + $0x450] sm:$0xff]  ;;  %v756_v21 = vld [vmem:[#allocation2 + $0x4e0] sm:$0xff] }
  0x4d   : > { %802 = vmatpush.msra.mxu0 %v600_v48  ;;  %872 = vmatpush.msra.mxu2 %v601_v49  ;;  %v618_v40 = vld [vmem:[#allocation2 + $0x90] sm:$0xff] }
  0x4e   : > { %930 = vmatpush.msrb.mxu1 %v698_v63  ;;  %976 = vmatpush.msrb.mxu3 %v738_v37  ;;  %v730_v42 = vld [vmem:[#allocation2 + $0x410] sm:$0xff]  ;;  %v645_v37 = vld [vmem:[#allocation2 + $0x168] sm:$0xff] }
  0x4f   : > { %3987 = vmatpush.msrb.mxu2 %v723_v50  ;;  %997 = vmatpush.msrb.mxu0 %v723_v50  ;;  %v610_v46 = vld [vmem:[#allocation2 + $0x50] sm:$0xff] }
  0x50   : > { %931 = vmatpush.msrb.mxu1 %v690_v2  ;;  %977 = vmatpush.msrb.mxu3 %v730_v42  ;;  %v602_v50 = vld [vmem:[#allocation2 + $0x10] sm:$0xff]  ;;  %v717_v2 = vld [vmem:[#allocation2 + $0x3a8] sm:$0xff]  ;;  %v660_v42 = vld [vmem:[#allocation2 + $0x1e0] sm:$0xff] }
  0x51   : > { %3988 = vmatpush.msrb.mxu2 %v715_v51  ;;  %998 = vmatpush.msrb.mxu0 %v715_v51  ;;  %v755_v51 = vld [vmem:[#allocation2 + $0x4d8] sm:$0xff]  ;;  %v3924_v58 = vld [vmem:[%s4419_s28 + $0x30] sm:$0x3f] }
  0x52   : > { %932 = vmatpush.msrb.mxu1 %v682_v4 }
  0x53   : > { %3989 = vmatpush.msrb.mxu2 %v707_v52  ;;  %999 = vmatpush.msrb.mxu0 %v707_v52 }
  0x54   : > { %933 = vmatpush.msrb.mxu1 %v674_v6 }
  0x55   : > { %3990 = vmatpush.msrb.mxu2 %v699_v53  ;;  %1000 = vmatpush.msrb.mxu0 %v699_v53  ;;  %v3920_v53 = vld [vmem:[%s4419_s28 + $0x20] sm:$0x3f] }
  0x56   : > { %934 = vmatpush.msrb.mxu1 %v666_v10  ;;  %v701_v10 = vld [vmem:[#allocation2 + $0x328] sm:$0xff] }
  0x57   : > { %3991 = vmatpush.msrb.mxu2 %v691_v55  ;;  %1001 = vmatpush.msrb.mxu0 %v691_v55  ;;  %v747_v55 = vld [vmem:[#allocation2 + $0x498] sm:$0xff] }
  0x58   : > { %935 = vmatpush.msrb.mxu1 %v658_v19  ;;  %v685_v19 = vld [vmem:[#allocation2 + $0x2a8] sm:$0xff] }
  0x59   : > { %3992 = vmatpush.msrb.mxu2 %v683_v56  ;;  %1002 = vmatpush.msrb.mxu0 %v683_v56 }
  0x5a   : > { %936 = vmatpush.msrb.mxu1 %v650_v23 }
  0x5b   : > { %3993 = vmatpush.msrb.mxu2 %v675_v59  ;;  %1003 = vmatpush.msrb.mxu0 %v675_v59 }
  0x5c   : > { %937 = vmatpush.msrb.mxu1 %v642_v26 }
  0x5d   : > { %3994 = vmatpush.msrb.mxu2 %v667_v61  ;;  %1004 = vmatpush.msrb.mxu0 %v667_v61  ;;  %v739_v61 = vld [vmem:[#allocation2 + $0x458] sm:$0xff] }
  0x5e   : > { %938 = vmatpush.msrb.mxu1 %v634_v31  ;;  %v684_v31 = vld [vmem:[#allocation2 + $0x2a0] sm:$0xff] }
  0x5f   : > { %3995 = vmatpush.msrb.mxu2 %v659_v3  ;;  %1005 = vmatpush.msrb.mxu0 %v659_v3  ;;  %v764_v3 = vld [vmem:[#allocation2 + $0x520] sm:$0xff] }
  0x60   : > { %939 = vmatpush.msrb.mxu1 %v626_v36  ;;  %v757_v36 = vld [vmem:[#allocation2 + $0x4e8] sm:$0xff] }
  0x61   : > { %3996 = vmatpush.msrb.mxu2 %v651_v5  ;;  %1006 = vmatpush.msrb.mxu0 %v651_v5  ;;  %v709_v5 = vld [vmem:[#allocation2 + $0x368] sm:$0xff] }
  0x62   : > { %940 = vmatpush.msrb.mxu1 %v618_v40  ;;  %v749_v40 = vld [vmem:[#allocation2 + $0x4a8] sm:$0xff] }
  0x63   : > { %3997 = vmatpush.msrb.mxu2 %v643_v8  ;;  %1007 = vmatpush.msrb.mxu0 %v643_v8 }
  0x64   : > { %941 = vmatpush.msrb.mxu1 %v610_v46  ;;  %v741_v46 = vld [vmem:[#allocation2 + $0x468] sm:$0xff] }
  0x65   : > { %3998 = vmatpush.msrb.mxu2 %v635_v22  ;;  %1008 = vmatpush.msrb.mxu0 %v635_v22 }
  0x66   : > { %942 = vmatpush.msrb.mxu1 %v602_v50  ;;  %v740_v50 = vld [vmem:[#allocation2 + $0x460] sm:$0xff] }
  0x67   : > { %3999 = vmatpush.msrb.mxu2 %v627_v24  ;;  %1009 = vmatpush.msrb.mxu0 %v627_v24  ;;  %v677_v24 = vld [vmem:[#allocation2 + $0x268] sm:$0xff] }
  0x69   : > { %4000 = vmatpush.msrb.mxu2 %v619_v34  ;;  %1010 = vmatpush.msrb.mxu0 %v619_v34  ;;  %v653_v34 = vld [vmem:[#allocation2 + $0x1a8] sm:$0xff] }
  0x6b   : > { %4001 = vmatpush.msrb.mxu2 %v611_v38  ;;  %1011 = vmatpush.msrb.mxu0 %v611_v38  ;;  %v748_v38 = vld [vmem:[#allocation2 + $0x4a0] sm:$0xff] }
  0x6d   : > { %4002 = vmatpush.msrb.mxu2 %v603_v41  ;;  %1012 = vmatpush.msrb.mxu0 %v603_v41  ;;  %v637_v41 = vld [vmem:[#allocation2 + $0x128] sm:$0xff] }
  0x8f   : > { %v4466_v33 = vpop.permute.xlu2 %535 }
  0x90   : > { %v538_v49 = vsel %vm497_vm0, %v3922_v44, %v4466_v33  ;;  %v572_v54 = vrot.slane %v4466_v33, 2  ;;  %v765_v33 = vld [vmem:[#allocation2 + $0x528] sm:$0xff]  ;;  %v652_v44 = vld [vmem:[#allocation2 + $0x1a0] sm:$0xff] }
  0x91   : > { %v571_v56 = vrot.slane %v538_v49, 2  ;;  %v644_v49 = vld [vmem:[#allocation2 + $0x160] sm:$0xff] }
  0x97   : > { %v528_v52 = vpop.permute.xlu2 %527 }
  0x98   : > { %v530_v57 = vsel %vm497_vm0, %v3920_v53, %v528_v52  ;;  %v4495_v60 = vsel %vm585_vm1, %v528_v52, %v572_v54  ;;  %v613_v52 = vld [vmem:[#allocation2 + $0x68] sm:$0xff]  ;;  %v636_v53 = vld [vmem:[#allocation2 + $0x120] sm:$0xff] }
  0x99   : > { %v4498_v62 = vsel %vm585_vm1, %v530_v57, %v571_v56  ;;  %v620_v57 = vld [vmem:[#allocation2 + $0xa0] sm:$0xff] }
  0xa6   : > { %v504_v0 = vpop.permute.xlu0 %503  ;;  %v4440_v12 = vpop.permute.xlu1 %511 }
  0xa7   : > { %v506_v7 = vsel %vm497_vm0, %v3914_v1, %v504_v0  ;;  %v557_v11 = vrot.slane %v504_v0, 2  ;;  %v514_v20 = vsel %vm497_vm0, %v3916_v13, %v4440_v12  ;;  %v562_v25 = vrot.slane %v4440_v12, 4  ;;  %v731_v0 = vld [vmem:[#allocation2 + $0x418] sm:$0xff]  ;;  %v725_v1 = vld [vmem:[#allocation2 + $0x3e8] sm:$0xff]  ;;  %v724_v12 = vld [vmem:[#allocation2 + $0x3e0] sm:$0xff] }
  0xa8   : > { %v556_v14 = vrot.slane %v506_v7, 2  ;;  %v561_v27 = vrot.slane %v514_v20, 4  ;;  %v3926_v7 = vld [vmem:[%s4419_s28 + $0x38] sm:$0x3f]  ;;  %v708_v20 = vld [vmem:[#allocation2 + $0x360] sm:$0xff]  ;;  %s3806_s28 = scalar_lea.hbm %s6675_s13, %s4412_s4 }
  0xa9   : > { %v4461_v30 = vsel %vm588_vm3, %v557_v11, %v562_v25  ;;  %s3810_s30 = sshll.u32 %s3806_s28, 4  ;;  %s3811_s30 = int_to_ptr.hbm [resolvable:$true] %s3810_s30 }
  0xaa   : > { %v4464_v32 = vsel %vm588_vm3, %v556_v14, %v561_v27  ;;  %s4187_s21 = sshra.s32 %s3811_s30, 4  ;;  %s4188_s21 = int_to_ptr.hbm [resolvable:$true] %s4187_s21 }
  0xab   : > { %s4189_s22 = scalar_lea.hbm %s4188_s21, 8  ;;  %p4194_p3 = scmp.lt.s32.totalorder %s4188_s21, %s6675_s13 }
  0xac   : > { %p4190_p0 = scmp.ne.s32.totalorder %s4188_s21, %s4189_s22  ;;  %p4195_p4 = scmp.lt.s32.totalorder %s4193_s17, %s4189_s22 }
  0xae   : > { %v495_v15 = vpop.permute.xlu0 %494  ;;  %v520_v29 = vpop.permute.xlu1 %519  ;;  %p4191_p1 = pnand %p4190_p0, %p4363_p5  ;;  %p4196_p7 = por %p4195_p4, %p4194_p3 }
  0xaf   : > { %v498_v16 = vsel %vm497_vm0, %v491_v9, %v495_v15  ;;  %v4445_v17 = vsel %vm585_vm1, %v495_v15, %v557_v11  ;;  %v522_v35 = vsel %vm497_vm0, %v3918_v28, %v520_v29  ;;  %v567_v39 = vrot.slane %v520_v29, 6  ;;  %v716_v15 = vld [vmem:[#allocation2 + $0x3a0] sm:$0xff]  ;;  %v661_v29 = vld [vmem:[#allocation2 + $0x1e8] sm:$0xff] }
  0xb0   : > { %v4448_v18 = vsel %vm585_vm1, %v498_v16, %v556_v14  ;;  %3928 = vmatmul.msk.f32.vlgmr.msra.gmra.mxu1 %vm768_vm2, %v4445_v17  ;;  %3934 = vmatmul.msk.f32.vlgmr.msra.gmra.mxu3 %vm768_vm2, %v4445_v17  ;;  %v566_v43 = vrot.slane %v522_v35, 6  ;;  %v693_v14 = vld [vmem:[#allocation2 + $0x2e8] sm:$0xff]  ;;  %v692_v28 = vld [vmem:[#allocation2 + $0x2e0] sm:$0xff]  ;;  %p4192_p2 = pneg %p4191_p1 }
  0xb1   : > { %803 = vmatmul.f32.vlgmr.msra.gmra.mxu0 %v4448_v18  ;;  %873 = vmatmul.f32.vlgmr.msra.gmra.mxu2 %v4448_v18  ;;  %v4477_v45 = vsel %vm591_vm4, %v562_v25, %v567_v39  ;;  %v700_v25 = vld [vmem:[#allocation2 + $0x320] sm:$0xff] }
  0xb2   : > { %v4480_v48 = vsel %vm591_vm4, %v561_v27, %v566_v43  ;;  %1043 = vmatpush.msra.mxu2 %v763_v47  ;;  %1137 = vmatpush.msra.mxu0 %v725_v1  ;;  %v669_v27 = vld [vmem:[#allocation2 + $0x228] sm:$0xff]  ;;  %v676_v35 = vld [vmem:[#allocation2 + $0x260] sm:$0xff]  ;;  %v766_v1 = vld [vmem:[#allocation2 + $0x530] sm:$0xff]  ;;  %p4197_p8 = pnand %p4196_p7, %p4192_p2 }
  0xb3   : > { %1113 = vmatpush.msra.mxu3 %v764_v3  ;;  %1067 = vmatpush.msra.mxu1 %v724_v12  ;;  %v668_v39 = vld [vmem:[#allocation2 + $0x220] sm:$0xff]  ;;  %v629_v43 = vld [vmem:[#allocation2 + $0xe8] sm:$0xff]  ;;  %v703_v3 = vld [vmem:[#allocation2 + $0x338] sm:$0xff] }
  0xb4   : > { %1044 = vmatpush.msra.mxu2 %v755_v51  ;;  %1138 = vmatpush.msra.mxu0 %v717_v2  ;;  %v621_v47 = vld [vmem:[#allocation2 + $0xa8] sm:$0xff]  ;;  %v732_v51 = vld [vmem:[#allocation2 + $0x420] sm:$0xff]  ;;  %v711_v2 = vld [vmem:[#allocation2 + $0x378] sm:$0xff] }
  0xb5   : > { %1068 = vmatpush.msra.mxu1 %v716_v15  ;;  %1114 = vmatpush.msra.mxu3 %v756_v21  ;;  %v758_v12 = vld [vmem:[#allocation2 + $0x4f0] sm:$0xff]  ;;  %v671_v15 = vld [vmem:[#allocation2 + $0x238] sm:$0xff] }
  0xb6   : > { %v544_v59 = vpop.permute.xlu0 %543  ;;  %1045 = vmatpush.msra.mxu2 %v747_v55  ;;  %v552_v8 = vpop.permute.xlu1 %551  ;;  %1139 = vmatpush.msra.mxu0 %v709_v5  ;;  %v628_v55 = vld [vmem:[#allocation2 + $0xe0] sm:$0xff]  ;;  %v695_v5 = vld [vmem:[#allocation2 + $0x2f8] sm:$0xff] }
  0xb7   : > { %v546_v63 = vsel %vm497_vm0, %v3924_v58, %v544_v59  ;;  %v577_v4 = vrot.slane %v544_v59, 4  ;;  %v554_v13 = vsel %vm497_vm0, %v3926_v7, %v552_v8  ;;  %v582_v16 = vrot.slane %v552_v8, 6  ;;  %1069 = vmatpush.msra.mxu1 %v708_v20  ;;  %1115 = vmatpush.msra.mxu3 %v748_v38  ;;  %v612_v58 = vld [vmem:[#allocation2 + $0x60] sm:$0xff]  ;;  %v759_v7 = vld [vmem:[#allocation2 + $0x4f8] sm:$0xff]  ;;  %v686_v20 = vld [vmem:[#allocation2 + $0x2b0] sm:$0xff] }
  0xb8   : > { %3929 = vmatmul.msk.f32.gmra.mxu1 %vm768_vm2, %v4461_v30  ;;  %3935 = vmatmul.msk.f32.gmra.mxu3 %vm768_vm2, %v4461_v30  ;;  %v576_v6 = vrot.slane %v546_v63, 4  ;;  %v581_v22 = vrot.slane %v554_v13, 6  ;;  %v604_v59 = vld [vmem:[#allocation2 + $0x20] sm:$0xff]  ;;  %v727_v63 = vld [vmem:[#allocation2 + $0x3f8] sm:$0xff]  ;;  %v742_v38 = vld [vmem:[#allocation2 + $0x470] sm:$0xff] }
  0xb9   : > { %806 = vmatmul.f32.gmra.mxu0 %v4464_v32  ;;  %876 = vmatmul.f32.gmra.mxu2 %v4464_v32  ;;  %v4509_v9 = vsel %vm588_vm3, %v572_v54, %v577_v4  ;;  %v4522_v23 = vsel %vm591_vm4, %v577_v4, %v582_v16  ;;  %v605_v54 = vld [vmem:[#allocation2 + $0x28] sm:$0xff]  ;;  %v726_v4 = vld [vmem:[#allocation2 + $0x3f0] sm:$0xff]  ;;  %v687_v8 = vld [vmem:[#allocation2 + $0x2b8] sm:$0xff] }
  0xba   : > { %1046 = vmatpush.msra.mxu2 %v739_v61  ;;  %v4512_v11 = vsel %vm588_vm3, %v571_v56, %v576_v6  ;;  %1140 = vmatpush.msra.mxu0 %v701_v10  ;;  %v4525_v26 = vsel %vm591_vm4, %v576_v6, %v581_v22  ;;  %v733_v56 = vld [vmem:[#allocation2 + $0x428] sm:$0xff]  ;;  %v767_v61 = vld [vmem:[#allocation2 + $0x538] sm:$0xff]  ;;  %v718_v6 = vld [vmem:[#allocation2 + $0x3b0] sm:$0xff] }
  0xbb   : > { %1070 = vmatpush.msra.mxu1 %v700_v25  ;;  %1116 = vmatpush.msra.mxu3 %v740_v50  ;;  %v710_v10 = vld [vmem:[#allocation2 + $0x370] sm:$0xff]  ;;  %v679_v13 = vld [vmem:[#allocation2 + $0x278] sm:$0xff] }
  0xbc   : > { %1047 = vmatpush.msra.mxu2 %v731_v0  ;;  %1141 = vmatpush.msra.mxu0 %v693_v14  ;;  %v719_v0 = vld [vmem:[#allocation2 + $0x3b8] sm:$0xff]  ;;  %v702_v14 = vld [vmem:[#allocation2 + $0x330] sm:$0xff] }
  0xbd   : > { %1071 = vmatpush.msra.mxu1 %v692_v28  ;;  %1117 = vmatpush.msra.mxu3 %v732_v51  ;;  %v694_v16 = vld [vmem:[#allocation2 + $0x2f0] sm:$0xff]  ;;  %v751_v21 = vld [vmem:[#allocation2 + $0x4b8] sm:$0xff] }
  0xbe   : > { %1142 = vmatpush.msra.mxu0 %v685_v19  ;;  %v663_v19 = vld [vmem:[#allocation2 + $0x1f8] sm:$0xff]  ;;  %v750_v28 = vld [vmem:[#allocation2 + $0x4b0] sm:$0xff] }
  0xbf   : > { %1072 = vmatpush.msra.mxu1 %v684_v31  ;;  %v655_v22 = vld [vmem:[#allocation2 + $0x1b8] sm:$0xff]  ;;  %v662_v31 = vld [vmem:[#allocation2 + $0x1f0] sm:$0xff] }
  0xc0   : > { %3930 = vmatmul.msk.f32.gmra.mxu1 %vm768_vm2, %v4477_v45  ;;  %3936 = vmatmul.msk.f32.gmra.mxu3 %vm768_vm2, %v4477_v45  ;;  %v647_v25 = vld [vmem:[#allocation2 + $0x178] sm:$0xff] }
  0xc1   : > { %809 = vmatmul.f32.gmra.mxu0 %v4480_v48  ;;  %879 = vmatmul.f32.gmra.mxu2 %v4480_v48 }
  0xc2   : > { %1143 = vmatpush.msra.mxu0 %v677_v24  ;;  %1073 = vmatpush.msra.mxu1 %v676_v35  ;;  %v678_v24 = vld [vmem:[#allocation2 + $0x270] sm:$0xff]  ;;  %v743_v35 = vld [vmem:[#allocation2 + $0x478] sm:$0xff] }
  0xc4   : > { %1144 = vmatpush.msra.mxu0 %v669_v27  ;;  %1074 = vmatpush.msra.mxu1 %v668_v39  ;;  %v670_v27 = vld [vmem:[#allocation2 + $0x230] sm:$0xff]  ;;  %v615_v39 = vld [vmem:[#allocation2 + $0x78] sm:$0xff] }
  0xc6   : > { %1145 = vmatpush.msra.mxu0 %v661_v29  ;;  %1075 = vmatpush.msra.mxu1 %v660_v42  ;;  %v639_v29 = vld [vmem:[#allocation2 + $0x138] sm:$0xff] }
  0xc7   : > { %v607_v42 = vld [vmem:[#allocation2 + $0x38] sm:$0xff] }
  0xc8   : > { %3931 = vmatmul.msk.f32.gmra.mxu1 %vm768_vm2, %v4495_v60  ;;  %3937 = vmatmul.msk.f32.gmra.mxu3 %vm768_vm2, %v4495_v60 }
  0xc9   : > { %812 = vmatmul.f32.gmra.mxu0 %v4498_v62  ;;  %882 = vmatmul.f32.gmra.mxu2 %v4498_v62 }
  0xca   : > { %1146 = vmatpush.msra.mxu0 %v653_v34  ;;  %1076 = vmatpush.msra.mxu1 %v652_v44  ;;  %v654_v34 = vld [vmem:[#allocation2 + $0x1b0] sm:$0xff]  ;;  %v735_v44 = vld [vmem:[#allocation2 + $0x438] sm:$0xff] }
  0xcc   : > { %1147 = vmatpush.msra.mxu0 %v645_v37  ;;  %1077 = vmatpush.msra.mxu1 %v644_v49  ;;  %v646_v37 = vld [vmem:[#allocation2 + $0x170] sm:$0xff] }
  0xcd   : > { %v606_v49 = vld [vmem:[#allocation2 + $0x30] sm:$0xff] }
  0xce   : > { %1148 = vmatpush.msra.mxu0 %v637_v41  ;;  %1078 = vmatpush.msra.mxu1 %v636_v53  ;;  %v734_v41 = vld [vmem:[#allocation2 + $0x430] sm:$0xff]  ;;  %v1485_v53 = vld [vmem:[%s6665_s3 + $0x1c0] sm:$0xff] }
  0xd0   : > { %3932 = vmatmul.msk.f32.gmra.mxu1 %vm768_vm2, %v4509_v9  ;;  %3938 = vmatmul.msk.f32.gmra.mxu3 %vm768_vm2, %v4509_v9 }
  0xd1   : > { %815 = vmatmul.f32.gmra.mxu0 %v4512_v11  ;;  %885 = vmatmul.f32.gmra.mxu2 %v4512_v11 }
  0xd2   : > { %1149 = vmatpush.msra.mxu0 %v629_v43  ;;  %1079 = vmatpush.msra.mxu1 %v628_v55  ;;  %v630_v43 = vld [vmem:[#allocation2 + $0xf0] sm:$0xff] }
  0xd4   : > { %1150 = vmatpush.msra.mxu0 %v621_v47  ;;  %1080 = vmatpush.msra.mxu1 %v620_v57  ;;  %v614_v47 = vld [vmem:[#allocation2 + $0x70] sm:$0xff] }
  0xd6   : > { %1151 = vmatpush.msra.mxu0 %v613_v52  ;;  %1081 = vmatpush.msra.mxu1 %v612_v58  ;;  %v1489_v52 = vld [vmem:[%s6665_s3 + $0x1e0] sm:$0xff] }
  0xd7   : > { %v1553_v58 = vld [vmem:[%s6665_s3 + $0x3e0] sm:$0xff] }
  0xd8   : > { %3933 = vmatmul.msk.f32.gmra.mxu1 %vm768_vm2, %v4522_v23  ;;  %3939 = vmatmul.msk.f32.gmra.mxu3 %vm768_vm2, %v4522_v23 }
  0xd9   : > { %818 = vmatmul.f32.gmra.mxu0 %v4525_v26  ;;  %888 = vmatmul.f32.gmra.mxu2 %v4525_v26 }
  0xda   : > { %1152 = vmatpush.msra.mxu0 %v605_v54  ;;  %1082 = vmatpush.msra.mxu1 %v604_v59 }
  0xe0   : > { %943 = vmatmul.f32.vlgmr.msrb.gmra.mxu1 %v4448_v18  ;;  %3940 = vmatmul.msk.f32.vlgmr.msrb.gmra.mxu3 %vm768_vm2, %v4445_v17 }
  0xe1   : > { %1013 = vmatmul.f32.vlgmr.msrb.gmra.mxu0 %v4448_v18  ;;  %1028 = vmatmul.f32.vlgmr.msrb.gmra.mxu2 %v4525_v26 }
  0xe2   : > { %1183 = vmatpush.msrb.mxu2 %v765_v33  ;;  %1277 = vmatpush.msrb.mxu0 %v727_v63  ;;  %v631_v33 = vld [vmem:[#allocation2 + $0xf8] sm:$0xff]  ;;  %v1549_v63 = vld [vmem:[%s6665_s3 + $0x3c0] sm:$0xff] }
  0xe3   : > { %1253 = vmatpush.msrb.mxu3 %v766_v1  ;;  %1207 = vmatpush.msrb.mxu1 %v726_v4  ;;  %v1545_v1 = vld [vmem:[%s6665_s3 + $0x3a0] sm:$0xff] }
  0xe4   : > { %1184 = vmatpush.msrb.mxu2 %v757_v36  ;;  %1278 = vmatpush.msrb.mxu0 %v719_v0  ;;  %v623_v36 = vld [vmem:[#allocation2 + $0xb8] sm:$0xff]  ;;  %v1473_v0 = vld [vmem:[%s6665_s3 + $0x160] sm:$0xff] }
  0xe5   : > { %1208 = vmatpush.msrb.mxu1 %v718_v6  ;;  %1254 = vmatpush.msrb.mxu3 %v758_v12  ;;  %v1541_v4 = vld [vmem:[%s6665_s3 + $0x380] sm:$0xff] }
  0xe6   : > { %1185 = vmatpush.msrb.mxu2 %v749_v40  ;;  %1279 = vmatpush.msrb.mxu0 %v711_v2  ;;  %v638_v40 = vld [vmem:[#allocation2 + $0x130] sm:$0xff]  ;;  %v1461_v12 = vld [vmem:[%s6665_s3 + $0x100] sm:$0xff] }
  0xe7   : > { %1209 = vmatpush.msrb.mxu1 %v710_v10  ;;  %1255 = vmatpush.msrb.mxu3 %v750_v28  ;;  %v1537_v10 = vld [vmem:[%s6665_s3 + $0x360] sm:$0xff] }
  0xe8   : > { %946 = vmatmul.f32.gmra.mxu1 %v4464_v32  ;;  %3941 = vmatmul.msk.f32.gmra.mxu3 %vm768_vm2, %v4461_v30 }
  0xe9   : > { %1016 = vmatmul.f32.gmra.mxu0 %v4464_v32  ;;  %3946 = vmatmul.msk.f32.vlgmr.msra.gmra.mxu2 %vm768_vm2, %v4445_v17 }
  0xea   : > { %1186 = vmatpush.msrb.mxu2 %v741_v46  ;;  %1280 = vmatpush.msrb.mxu0 %v703_v3  ;;  %v622_v46 = vld [vmem:[#allocation2 + $0xb0] sm:$0xff]  ;;  %v1469_v3 = vld [vmem:[%s6665_s3 + $0x140] sm:$0xff] }
  0xeb   : > { %1210 = vmatpush.msrb.mxu1 %v702_v14  ;;  %1256 = vmatpush.msrb.mxu3 %v742_v38 }
  0xec   : > { %1187 = vmatpush.msrb.mxu2 %v733_v56  ;;  %1281 = vmatpush.msrb.mxu0 %v695_v5  ;;  %v1481_v56 = vld [vmem:[%s6665_s3 + $0x1a0] sm:$0xff] }
  0xed   : > { %1211 = vmatpush.msrb.mxu1 %v694_v16  ;;  %1257 = vmatpush.msrb.mxu3 %v734_v41  ;;  %v1429_v41 = vld [vmem:[%s6665_s3] sm:$0xff] }
  0xee   : > { %1323 = vmatpush.msra.mxu2 %v767_v61  ;;  %1282 = vmatpush.msrb.mxu0 %v687_v8  ;;  %v1477_v61 = vld [vmem:[%s6665_s3 + $0x180] sm:$0xff] }
  0xef   : > { %1212 = vmatpush.msrb.mxu1 %v686_v20  ;;  %v1465_v8 = vld [vmem:[%s6665_s3 + $0x120] sm:$0xff] }
  0xf0   : > { %949 = vmatmul.f32.gmra.mxu1 %v4480_v48  ;;  %3942 = vmatmul.msk.f32.gmra.mxu3 %vm768_vm2, %v4477_v45 }
  0xf1   : > { %1019 = vmatmul.f32.gmra.mxu0 %v4480_v48  ;;  %3947 = vmatmul.msk.f32.gmra.mxu2 %vm768_vm2, %v4461_v30 }
  0xf2   : > { %1324 = vmatpush.msra.mxu2 %v759_v7  ;;  %1283 = vmatpush.msrb.mxu0 %v679_v13  ;;  %v1533_v13 = vld [vmem:[%s6665_s3 + $0x340] sm:$0xff] }
  0xf3   : > { %1213 = vmatpush.msrb.mxu1 %v678_v24  ;;  %v1449_v24 = vld [vmem:[%s6665_s3 + $0xa0] sm:$0xff] }
  0xf4   : > { %1284 = vmatpush.msrb.mxu0 %v671_v15  ;;  %1325 = vmatpush.msra.mxu2 %v751_v21  ;;  %v1529_v15 = vld [vmem:[%s6665_s3 + $0x320] sm:$0xff] }
  0xf5   : > { %1214 = vmatpush.msrb.mxu1 %v670_v27  ;;  %v1453_v21 = vld [vmem:[%s6665_s3 + $0xc0] sm:$0xff] }
  0xf6   : > { %1285 = vmatpush.msrb.mxu0 %v663_v19  ;;  %1326 = vmatpush.msra.mxu2 %v743_v35  ;;  %v1437_v35 = vld [vmem:[%s6665_s3 + $0x40] sm:$0xff] }
  0xf7   : > { %1215 = vmatpush.msrb.mxu1 %v662_v31 }
  0xf8   : > { %952 = vmatmul.f32.gmra.mxu1 %v4498_v62  ;;  %3943 = vmatmul.msk.f32.gmra.mxu3 %vm768_vm2, %v4495_v60 }
  0xf9   : > { %1022 = vmatmul.f32.gmra.mxu0 %v4498_v62  ;;  %3948 = vmatmul.msk.f32.gmra.mxu2 %vm768_vm2, %v4477_v45 }
  0xfa   : > { %1286 = vmatpush.msrb.mxu0 %v655_v22  ;;  %1216 = vmatpush.msrb.mxu1 %v654_v34  ;;  %v1525_v22 = vld [vmem:[%s6665_s3 + $0x300] sm:$0xff] }
  0xfb   : > { %1327 = vmatpush.msra.mxu2 %v735_v44  ;;  %v1513_v34 = vld [vmem:[%s6665_s3 + $0x2a0] sm:$0xff] }
  0xfc   : > { %1287 = vmatpush.msrb.mxu0 %v647_v25  ;;  %1217 = vmatpush.msrb.mxu1 %v646_v37  ;;  %v1521_v25 = vld [vmem:[%s6665_s3 + $0x2e0] sm:$0xff] }
  0xfe   : > { %1288 = vmatpush.msrb.mxu0 %v639_v29  ;;  %1218 = vmatpush.msrb.mxu1 %v638_v40 }
 0x100   : > { %955 = vmatmul.f32.gmra.mxu1 %v4512_v11  ;;  %3944 = vmatmul.msk.f32.gmra.mxu3 %vm768_vm2, %v4509_v9 }
 0x101   : > { %1025 = vmatmul.f32.gmra.mxu0 %v4512_v11  ;;  %3949 = vmatmul.msk.f32.gmra.mxu2 %vm768_vm2, %v4495_v60 }
 0x102   : > { %1289 = vmatpush.msrb.mxu0 %v631_v33  ;;  %1219 = vmatpush.msrb.mxu1 %v630_v43  ;;  %v1441_v33 = vld [vmem:[%s6665_s3 + $0x60] sm:$0xff] }
 0x103   : > { %v1497_v43 = vld [vmem:[%s6665_s3 + $0x220] sm:$0xff] }
 0x104   : > { %1290 = vmatpush.msrb.mxu0 %v623_v36  ;;  %1220 = vmatpush.msrb.mxu1 %v622_v46  ;;  %v1509_v36 = vld [vmem:[%s6665_s3 + $0x280] sm:$0xff] }
 0x106   : > { %1291 = vmatpush.msrb.mxu0 %v615_v39  ;;  %1221 = vmatpush.msrb.mxu1 %v614_v47 }
 0x108   : > { %958 = vmatmul.f32.gmra.mxu1 %v4525_v26  ;;  %3945 = vmatmul.msk.f32.gmra.mxu3 %vm768_vm2, %v4522_v23 }
 0x109   : > { %3950 = vmatmul.msk.f32.gmra.mxu2 %vm768_vm2, %v4509_v9  ;;  %1153 = vmatmul.f32.vlgmr.msra.gmra.mxu0 %v4448_v18 }
 0x10a   : > { %1292 = vmatpush.msrb.mxu0 %v607_v42  ;;  %1222 = vmatpush.msrb.mxu1 %v606_v49  ;;  %v1501_v42 = vld [vmem:[%s6665_s3 + $0x240] sm:$0xff] }
 0x110   : > { %1083 = vmatmul.f32.vlgmr.msra.gmra.mxu1 %v4448_v18  ;;  %3952 = vmatmul.msk.f32.vlgmr.msra.gmra.mxu3 %vm768_vm2, %v4445_v17 }
 0x111   : > { %3951 = vmatmul.msk.f32.gmra.mxu2 %vm768_vm2, %v4522_v23  ;;  %1156 = vmatmul.f32.gmra.mxu0 %v4464_v32 }
 0x112   : > { %1685 = vmatpush.msra.mxu1 %v1489_v52  ;;  %1720 = vmatpush.msra.mxu3 %v1553_v58  ;;  %v1486_v52 = vld [vmem:[%s6665_s3 + $0x1c8] sm:$0xff] }
 0x114   : > { %1686 = vmatpush.msra.mxu1 %v1485_v53  ;;  %1721 = vmatpush.msra.mxu3 %v1549_v63 }
 0x116   : > { %1687 = vmatpush.msra.mxu1 %v1481_v56  ;;  %1722 = vmatpush.msra.mxu3 %v1545_v1 }
 0x118   : > { %1086 = vmatmul.f32.gmra.mxu1 %v4464_v32  ;;  %3953 = vmatmul.msk.f32.gmra.mxu3 %vm768_vm2, %v4461_v30 }
 0x119   : > { %1159 = vmatmul.f32.gmra.mxu0 %v4480_v48  ;;  %3958 = vmatmul.msk.f32.vlgmr.msrb.gmra.mxu2 %vm768_vm2, %v4445_v17 }
 0x11a   : > { %1688 = vmatpush.msra.mxu1 %v1477_v61  ;;  %1723 = vmatpush.msra.mxu3 %v1541_v4 }
 0x11c   : > { %1689 = vmatpush.msra.mxu1 %v1473_v0  ;;  %1724 = vmatpush.msra.mxu3 %v1537_v10  ;;  %v1554_v0 = vld [vmem:[%s6665_s3 + $0x3e8] sm:$0xff] }
 0x11d   : > { %v1546_v10 = vld [vmem:[%s6665_s3 + $0x3a8] sm:$0xff] }
 0x11e   : > { %1690 = vmatpush.msra.mxu1 %v1469_v3  ;;  %1725 = vmatpush.msra.mxu3 %v1533_v13 }
 0x120   : > { %1089 = vmatmul.f32.gmra.mxu1 %v4480_v48  ;;  %3954 = vmatmul.msk.f32.gmra.mxu3 %vm768_vm2, %v4477_v45 }
 0x121   : > { %1162 = vmatmul.f32.gmra.mxu0 %v4498_v62  ;;  %3959 = vmatmul.msk.f32.gmra.mxu2 %vm768_vm2, %v4461_v30 }
 0x122   : > { %1691 = vmatpush.msra.mxu1 %v1465_v8  ;;  %1726 = vmatpush.msra.mxu3 %v1529_v15  ;;  %v1474_v8 = vld [vmem:[%s6665_s3 + $0x168] sm:$0xff] }
 0x124   : > { %1692 = vmatpush.msra.mxu1 %v1461_v12  ;;  %1727 = vmatpush.msra.mxu3 %v1525_v22  ;;  %v1466_v22 = vld [vmem:[%s6665_s3 + $0x128] sm:$0xff] }
 0x126   : > { %1728 = vmatpush.msra.mxu3 %v1521_v25 }
 0x128   : > { %1092 = vmatmul.f32.gmra.mxu1 %v4498_v62  ;;  %3955 = vmatmul.msk.f32.gmra.mxu3 %vm768_vm2, %v4495_v60 }
 0x129   : > { %1165 = vmatmul.f32.gmra.mxu0 %v4512_v11  ;;  %3960 = vmatmul.msk.f32.gmra.mxu2 %vm768_vm2, %v4477_v45 }
 0x12d   : > { %v4592_v50 = vpop.f32.mrf.mxu1 }
 0x12e   : > { %v4594_v51 = vpop.f32.mrf.mxu0 }
 0x12f   : > { %v840_v56 = vadd.f32 %v4592_v50, %v4594_v51  ;;  %v1478_v50 = vld [vmem:[%s6665_s3 + $0x188] sm:$0xff] }
 0x130   : > { %1095 = vmatmul.f32.gmra.mxu1 %v4512_v11  ;;  %3956 = vmatmul.msk.f32.gmra.mxu3 %vm768_vm2, %v4509_v9  ;;  %v1550_v51 = vld [vmem:[%s6665_s3 + $0x3c8] sm:$0xff] }
 0x131   : > { %1168 = vmatmul.f32.gmra.mxu0 %v4525_v26  ;;  %3961 = vmatmul.msk.f32.gmra.mxu2 %vm768_vm2, %v4495_v60 }
 0x133   : > { %v4608_v54 = vpop.f32.mrf.mxu3 }
 0x134   : > { %v4610_v55 = vpop.f32.mrf.mxu2 }
 0x135   : > { %v4615_v57 = vpop.f32.mrf.mxu1 }
 0x136   : > { %v4620_v59 = vpop.f32.mrf.mxu0 }
 0x138   : > { %1098 = vmatmul.f32.gmra.mxu1 %v4525_v26  ;;  %3957 = vmatmul.msk.f32.gmra.mxu3 %vm768_vm2, %v4522_v23 }
 0x139   : > { %3962 = vmatmul.msk.f32.gmra.mxu2 %vm768_vm2, %v4509_v9  ;;  %1293 = vmatmul.f32.vlgmr.msrb.gmra.mxu0 %v4448_v18 }
 0x13b   : > { %v4640_v2 = vpop.f32.mrf.mxu3 }
 0x13c   : > { %v4648_v5 = vpop.f32.mrf.mxu2 }
 0x13d   : > { %v4650_v6 = vpop.f32.mrf.mxu1 }
 0x13e   : > { %v4652_v7 = vpop.f32.mrf.mxu0 }
 0x140   : > { %1223 = vmatmul.f32.vlgmr.msrb.gmra.mxu1 %v4448_v18  ;;  %3964 = vmatmul.msk.f32.vlgmr.msrb.gmra.mxu3 %vm768_vm2, %v4445_v17  ;;  %v1457_v18 = vld [vmem:[%s6665_s3 + $0xe0] sm:$0xff] }
 0x141   : > { %3963 = vmatmul.msk.f32.gmra.mxu2 %vm768_vm2, %v4522_v23  ;;  %1296 = vmatmul.f32.gmra.mxu0 %v4464_v32 }
 0x142   : > { %1693 = vmatpush.msra.mxu1 %v1457_v18  ;;  %v1542_v18 = vld [vmem:[%s6665_s3 + $0x388] sm:$0xff] }
 0x143   : > { %v4672_v14 = vpop.f32.mrf.mxu3 }
 0x144   : > { %v4680_v16 = vpop.f32.mrf.mxu2  ;;  %1694 = vmatpush.msra.mxu1 %v1453_v21 }
 0x145   : > { %v4682_v19 = vpop.f32.mrf.mxu1 }
 0x146   : > { %v4684_v20 = vpop.f32.mrf.mxu0  ;;  %1695 = vmatpush.msra.mxu1 %v1449_v24  ;;  %v910_v24 = vadd.f32 %v4608_v54, %v4610_v55  ;;  %v1534_v55 = vld [vmem:[%s6665_s3 + $0x348] sm:$0xff] }
 0x148   : > { %1226 = vmatmul.f32.gmra.mxu1 %v4464_v32  ;;  %3965 = vmatmul.msk.f32.gmra.mxu3 %vm768_vm2, %v4461_v30  ;;  %v1445_v32 = vld [vmem:[%s6665_s3 + $0x80] sm:$0xff] }
 0x149   : > { %1299 = vmatmul.f32.gmra.mxu0 %v4480_v48  ;;  %3970 = vmatmul.msk.f32.vlgmr.msra.gmra.mxu2 %vm768_vm2, %v4445_v17  ;;  %v1517_v17 = vld [vmem:[%s6665_s3 + $0x2c0] sm:$0xff] }
 0x14a   : > { %1696 = vmatpush.msra.mxu1 %v1445_v32  ;;  %1729 = vmatpush.msra.mxu3 %v1517_v17 }
 0x14b   : > { %v4704_v27 = vpop.f32.mrf.mxu3 }
 0x14c   : > { %v4712_v28 = vpop.f32.mrf.mxu2  ;;  %1697 = vmatpush.msra.mxu1 %v1441_v33  ;;  %1730 = vmatpush.msra.mxu3 %v1513_v34 }
 0x14d   : > { %v4714_v29 = vpop.f32.mrf.mxu1 }
 0x14e   : > { %v4716_v31 = vpop.f32.mrf.mxu0  ;;  %1698 = vmatpush.msra.mxu1 %v1437_v35  ;;  %1731 = vmatpush.msra.mxu3 %v1509_v36  ;;  %v1462_v35 = vld [vmem:[%s6665_s3 + $0x108] sm:$0xff] }
 0x14f   : > { %v1458_v36 = vld [vmem:[%s6665_s3 + $0xe8] sm:$0xff] }
 0x150   : > { %1229 = vmatmul.f32.gmra.mxu1 %v4480_v48  ;;  %3966 = vmatmul.msk.f32.gmra.mxu3 %vm768_vm2, %v4477_v45  ;;  %v1433_v48 = vld [vmem:[%s6665_s3 + $0x20] sm:$0xff] }
 0x151   : > { %1302 = vmatmul.f32.gmra.mxu0 %v4498_v62  ;;  %3971 = vmatmul.msk.f32.gmra.mxu2 %vm768_vm2, %v4461_v30  ;;  %v1505_v30 = vld [vmem:[%s6665_s3 + $0x260] sm:$0xff] }
 0x152   : > { %1699 = vmatpush.msra.mxu1 %v1433_v48  ;;  %1732 = vmatpush.msra.mxu3 %v1505_v30  ;;  %v1530_v30 = vld [vmem:[%s6665_s3 + $0x328] sm:$0xff] }
 0x153   : > { %v4736_v37 = vpop.f32.mrf.mxu3 }
 0x154   : > { %v4744_v38 = vpop.f32.mrf.mxu2  ;;  %1700 = vmatpush.msra.mxu1 %v1429_v41  ;;  %1733 = vmatpush.msra.mxu3 %v1501_v42  ;;  %v1454_v42 = vld [vmem:[%s6665_s3 + $0xc8] sm:$0xff] }
 0x155   : > { %v4746_v39 = vpop.f32.mrf.mxu1 }
 0x156   : > { %v4748_v40 = vpop.f32.mrf.mxu0  ;;  %1734 = vmatpush.msra.mxu3 %v1497_v43 }
 0x158   : > { %1232 = vmatmul.f32.gmra.mxu1 %v4498_v62  ;;  %3967 = vmatmul.msk.f32.gmra.mxu3 %vm768_vm2, %v4495_v60  ;;  %v1493_v62 = vld [vmem:[%s6665_s3 + $0x200] sm:$0xff] }
 0x159   : > { %1305 = vmatmul.f32.gmra.mxu0 %v4512_v11  ;;  %3972 = vmatmul.msk.f32.gmra.mxu2 %vm768_vm2, %v4477_v45  ;;  %v1490_v45 = vld [vmem:[%s6665_s3 + $0x1e8] sm:$0xff] }
 0x15a   : > { %1735 = vmatpush.msra.mxu3 %v1493_v62  ;;  %1825 = vmatpush.msrb.mxu1 %v1490_v45 }
 0x15b   : > { %v4765_v44 = vpop.f32.mrf.mxu3 }
 0x15c   : > { %v4770_v46 = vpop.f32.mrf.mxu2  ;;  %1826 = vmatpush.msrb.mxu1 %v1486_v52  ;;  %1860 = vmatpush.msrb.mxu3 %v1554_v0  ;;  %v1450_v52 = vld [vmem:[%s6665_s3 + $0xa8] sm:$0xff] }
 0x15d   : > { %v944_v47 = vpop.f32.mrf.mxu1  ;;  %v1446_v0 = vld [vmem:[%s6665_s3 + $0x88] sm:$0xff] }
 0x15e   : > { %v1014_v49 = vpop.f32.mrf.mxu0  ;;  %1861 = vmatpush.msrb.mxu3 %v1550_v51 }
 0x160   : > { %1235 = vmatmul.f32.gmra.mxu1 %v4512_v11  ;;  %3968 = vmatmul.msk.f32.gmra.mxu3 %vm768_vm2, %v4509_v9  ;;  %v4787_v11 = vld [vmem:[%s6664_s2] sm:$0xf] }
 0x161   : > { %1308 = vmatmul.f32.gmra.mxu0 %v4525_v26  ;;  %3973 = vmatmul.msk.f32.gmra.mxu2 %vm768_vm2, %v4495_v60  ;;  %v1482_v60 = vld [vmem:[%s6665_s3 + $0x1a8] sm:$0xff]  ;;  %v4800_v3 = vperm.slane %v4787_v11, 0  ;;  %v4834_v32 = vperm.slane %v4787_v11, 1 }
 0x162   : > { %1827 = vmatpush.msrb.mxu1 %v1482_v60  ;;  %1862 = vmatpush.msrb.mxu3 %v1546_v10  ;;  %v1522_v60 = vld [vmem:[%s6665_s3 + $0x2e8] sm:$0xff] }
 0x163   : > { %v979_v53 = vpop.f32.mrf.mxu3 }
 0x164   : > { %v980_v58 = vadd.f32 %v979_v53, %v944_v47  ;;  %v4791_v61 = vpop.f32.mrf.mxu2  ;;  %1828 = vmatpush.msrb.mxu1 %v1478_v50  ;;  %1863 = vmatpush.msrb.mxu3 %v1542_v18  ;;  %v846_v47 = vadd.f32 %v4650_v6, %v4652_v7  ;;  %v913_v53 = vadd.f32 %v4640_v2, %v4648_v5  ;;  %v1518_v2 = vld [vmem:[%s6665_s3 + $0x2c8] sm:$0xff] }
 0x165   : > { %v947_v63 = vpop.f32.mrf.mxu1  ;;  %v1442_v5 = vld [vmem:[%s6665_s3 + $0x68] sm:$0xff] }
 0x166   : > { %v1347_v1 = vmax.f32 %v840_v56, %v980_v58  ;;  %v1017_v4 = vpop.f32.mrf.mxu0  ;;  %1829 = vmatpush.msrb.mxu1 %v1474_v8  ;;  %v1514_v50 = vld [vmem:[%s6665_s3 + $0x2a8] sm:$0xff] }
 0x167   : > { %v1438_v8 = vld [vmem:[%s6665_s3 + $0x48] sm:$0xff] }
 0x168   : > { %1238 = vmatmul.f32.gmra.mxu1 %v4525_v26  ;;  %3969 = vmatmul.msk.f32.gmra.mxu3 %vm768_vm2, %v4522_v23  ;;  %v1381_v12 = vadd.f32 %v4800_v3, %v1347_v1  ;;  %v1470_v26 = vld [vmem:[%s6665_s3 + $0x148] sm:$0xff] }
 0x169   : > { %3974 = vmatmul.msk.f32.gmra.mxu2 %vm768_vm2, %v4509_v9  ;;  %v843_v9 = vadd.f32 %v4615_v57, %v4620_v59  ;;  %1830 = vmatpush.msrb.mxu1 %v1470_v26  ;;  %v1538_v57 = vld [vmem:[%s6665_s3 + $0x368] sm:$0xff] }
 0x16a   : > { %v4839_v59 = vmax.f32 %v1381_v12, 0.0  ;;  %1864 = vmatpush.msrb.mxu3 %v1538_v57  ;;  %v1510_v26 = vld [vmem:[%s6665_s3 + $0x288] sm:$0xff] }
 0x16b   : > { %v982_v13 = vpop.f32.mrf.mxu3  ;;  %1831 = vmatpush.msrb.mxu1 %v1466_v22  ;;  %v1430_v57 = vld [vmem:[%s6665_s3 + $0x8] sm:$0xff] }
 0x16c   : > { %v983_v15 = vadd.f32 %v982_v13, %v947_v63  ;;  %v1049_v21 = vpop.f32.mrf.mxu2  ;;  %1865 = vmatpush.msrb.mxu3 %v1534_v55  ;;  %v849_v13 = vadd.f32 %v4682_v19, %v4684_v20 }
 0x16d   : > { %v1050_v25 = vadd.f32 %v1049_v21, %v1014_v49  ;;  %v950_v17 = vpop.f32.mrf.mxu1  ;;  %1832 = vmatpush.msrb.mxu1 %v1462_v35  ;;  %v916_v21 = vadd.f32 %v4672_v14, %v4680_v16  ;;  %v1502_v14 = vld [vmem:[%s6665_s3 + $0x248] sm:$0xff] }
 0x16e   : > { %v1349_v33 = vmax.f32 %v843_v9, %v983_v15  ;;  %v1020_v34 = vpop.f32.mrf.mxu0  ;;  %1866 = vmatpush.msrb.mxu3 %v1530_v30  ;;  %v1434_v15 = vld [vmem:[%s6665_s3 + $0x28] sm:$0xff] }
 0x16f   : > { %v1348_v54 = vmax.f32 %v910_v24, %v1050_v25  ;;  %1833 = vmatpush.msrb.mxu1 %v1458_v36  ;;  %v1506_v25 = vld [vmem:[%s6665_s3 + $0x268] sm:$0xff] }
 0x170   : > { %1701 = vmatmul.f32.vlgmr.msra.gmra.mxu1 %v4839_v59  ;;  %v1385_v41 = vadd.f32 %v4800_v3, %v1349_v33  ;;  %v1494_v36 = vld [vmem:[%s6665_s3 + $0x208] sm:$0xff] }
 0x171   : > { %v1382_v48 = vadd.f32 %v4834_v32, %v1348_v54  ;;  %3975 = vmatmul.msk.f32.gmra.mxu2 %vm768_vm2, %v4522_v23  ;;  %v1526_v23 = vld [vmem:[%s6665_s3 + $0x308] sm:$0xff]  ;;  %1834 = vmatpush.msrb.mxu1 %v1454_v42  ;;  %v919_v42 = vadd.f32 %v4704_v27, %v4712_v28  ;;  %v1617_v28 = vld [vmem:[%s6665_s3 + $0x5e0] sm:$0xff] }
 0x172   : > { %v4877_v6 = vmax.f32 %v1385_v41, 0.0  ;;  %1867 = vmatpush.msrb.mxu3 %v1526_v23  ;;  %1755 = vmatpush.msra.mxu0 %v1617_v28 }
 0x173   : > { %v4861_v43 = vmax.f32 %v1382_v48, 0.0  ;;  %v985_v62 = vpop.f32.mrf.mxu3  ;;  %1835 = vmatpush.msrb.mxu1 %v1450_v52  ;;  %v852_v48 = vadd.f32 %v4714_v29, %v4716_v31  ;;  %v1677_v29 = vld [vmem:[%s6665_s3 + $0x7c0] sm:$0xff] }
 0x174   : > { %v986_v49 = vadd.f32 %v985_v62, %v950_v17  ;;  %v1052_v45 = vpop.f32.mrf.mxu2  ;;  %1868 = vmatpush.msrb.mxu3 %v1522_v60  ;;  %v855_v60 = vadd.f32 %v4746_v39, %v4748_v40 }
 0x175   : > { %v1053_v56 = vadd.f32 %v1052_v45, %v1017_v4  ;;  %v953_v58 = vpop.f32.mrf.mxu1  ;;  %1736 = vmatmul.f32.vlgmr.msra.gmra.mxu3 %v4861_v43  ;;  %1836 = vmatpush.msrb.mxu1 %v1446_v0  ;;  %v1673_v0 = vld [vmem:[%s6665_s3 + $0x7a0] sm:$0xff] }
 0x176   : > { %v1351_v7 = vmax.f32 %v846_v47, %v986_v49  ;;  %v1023_v63 = vpop.f32.mrf.mxu0  ;;  %1869 = vmatpush.msrb.mxu3 %v1518_v2  ;;  %v1681_v47 = vld [vmem:[%s6665_s3 + $0x7e0] sm:$0xff] }
 0x177   : > { %v1350_v1 = vmax.f32 %v913_v53, %v1053_v56  ;;  %1837 = vmatpush.msrb.mxu1 %v1442_v5  ;;  %1790 = vmatpush.msrb.mxu2 %v1681_v47  ;;  %v1543_v47 = vld [vmem:[%s6665_s3 + $0x390] sm:$0xff] }
 0x178   : > { %1704 = vmatmul.f32.gmra.mxu1 %v4877_v6  ;;  %v1389_v51 = vadd.f32 %v4800_v3, %v1351_v7  ;;  %1870 = vmatpush.msrb.mxu3 %v1514_v50  ;;  %v1669_v50 = vld [vmem:[%s6665_s3 + $0x780] sm:$0xff] }
 0x179   : > { %v1386_v4 = vadd.f32 %v4834_v32, %v1350_v1  ;;  %1838 = vmatpush.msrb.mxu1 %v1438_v8  ;;  %1791 = vmatpush.msrb.mxu2 %v1677_v29  ;;  %v922_v1 = vadd.f32 %v4736_v37, %v4744_v38  ;;  %v1609_v37 = vld [vmem:[%s6665_s3 + $0x5a0] sm:$0xff] }
 0x17a   : > { %v4913_v19 = vmax.f32 %v1389_v51, 0.0  ;;  %1871 = vmatpush.msrb.mxu3 %v1510_v26  ;;  %v1665_v8 = vld [vmem:[%s6665_s3 + $0x760] sm:$0xff] }
 0x17b   : > { %v4897_v10 = vmax.f32 %v1386_v4, 0.0  ;;  %v988_v12 = vpop.f32.mrf.mxu3  ;;  %1839 = vmatpush.msrb.mxu1 %v1434_v15  ;;  %1792 = vmatpush.msrb.mxu2 %v1673_v0  ;;  %v1613_v4 = vld [vmem:[%s6665_s3 + $0x5c0] sm:$0xff] }
 0x17c   : > { %v989_v18 = vadd.f32 %v988_v12, %v953_v58  ;;  %v1055_v9 = vpop.f32.mrf.mxu2  ;;  %1872 = vmatpush.msrb.mxu3 %v1506_v25  ;;  %1756 = vmatpush.msra.mxu0 %v1613_v4  ;;  %v1491_v12 = vld [vmem:[%s6665_s3 + $0x1f0] sm:$0xff]  ;;  %v1605_v26 = vld [vmem:[%s6665_s3 + $0x580] sm:$0xff] }
 0x17d   : > { %v1056_v22 = vadd.f32 %v1055_v9, %v1020_v34  ;;  %v956_v24 = vpop.f32.mrf.mxu1  ;;  %1739 = vmatmul.f32.gmra.mxu3 %v4897_v10  ;;  %1840 = vmatpush.msrb.mxu1 %v1430_v57  ;;  %v1498_v34 = vld [vmem:[%s6665_s3 + $0x228] sm:$0xff]  ;;  %v1487_v9 = vld [vmem:[%s6665_s3 + $0x1d0] sm:$0xff]  ;;  %v1661_v57 = vld [vmem:[%s6665_s3 + $0x740] sm:$0xff] }
 0x17e   : > { %v1353_v20 = vmax.f32 %v849_v13, %v989_v18  ;;  %v1026_v17 = vpop.f32.mrf.mxu0  ;;  %1873 = vmatpush.msrb.mxu3 %v1502_v14  ;;  %1793 = vmatpush.msrb.mxu2 %v1669_v50  ;;  %v1483_v25 = vld [vmem:[%s6665_s3 + $0x1b0] sm:$0xff]  ;;  %v1585_v29 = vld [vmem:[%s6665_s3 + $0x4e0] sm:$0xff] }
 0x17f   : > { %v1352_v33 = vmax.f32 %v916_v21, %v1056_v22  ;;  %1757 = vmatpush.msra.mxu0 %v1609_v37  ;;  %1965 = vmatpush.msra.mxu1 %v1491_v12  ;;  %v1577_v0 = vld [vmem:[%s6665_s3 + $0x4a0] sm:$0xff]  ;;  %v1455_v50 = vld [vmem:[%s6665_s3 + $0xd0] sm:$0xff] }
 0x180   : > { %1707 = vmatmul.f32.gmra.mxu1 %v4913_v19  ;;  %v1393_v35 = vadd.f32 %v4800_v3, %v1353_v20  ;;  %1874 = vmatpush.msrb.mxu3 %v1498_v34  ;;  %v1551_v34 = vld [vmem:[%s6665_s3 + $0x3d0] sm:$0xff]  ;;  %v1573_v4 = vld [vmem:[%s6665_s3 + $0x480] sm:$0xff] }
 0x181   : > { %v1390_v16 = vadd.f32 %v4834_v32, %v1352_v33  ;;  %1794 = vmatpush.msrb.mxu2 %v1665_v8  ;;  %1758 = vmatpush.msra.mxu0 %v1605_v26  ;;  %v1555_v33 = vld [vmem:[%s6665_s3 + $0x3f0] sm:$0xff]  ;;  %v1569_v12 = vld [vmem:[%s6665_s3 + $0x460] sm:$0xff] }
 0x182   : > { %v4940_v49 = vmax.f32 %v1393_v35, 0.0  ;;  %1875 = vmatpush.msrb.mxu3 %v1494_v36  ;;  %1966 = vmatpush.msra.mxu1 %v1487_v9  ;;  %v1593_v35 = vld [vmem:[%s6665_s3 + $0x520] sm:$0xff]  ;;  %v1527_v37 = vld [vmem:[%s6665_s3 + $0x310] sm:$0xff] }
 0x183   : > { %v4927_v54 = vmax.f32 %v1390_v16, 0.0  ;;  %v991_v55 = vpop.f32.mrf.mxu3  ;;  %1795 = vmatpush.msrb.mxu2 %v1661_v57  ;;  %v1653_v36 = vld [vmem:[%s6665_s3 + $0x700] sm:$0xff] }
 0x184   : > { %v992_v30 = vadd.f32 %v991_v55, %v956_v24  ;;  %v1058_v41 = vpop.f32.mrf.mxu2  ;;  %v1601_v24 = vld [vmem:[%s6665_s3 + $0x560] sm:$0xff]  ;;  %1967 = vmatpush.msra.mxu1 %v1483_v25  ;;  %2000 = vmatpush.msra.mxu3 %v1555_v33  ;;  %v1475_v55 = vld [vmem:[%s6665_s3 + $0x170] sm:$0xff] }
 0x185   : > { %v1059_v62 = vadd.f32 %v1058_v41, %v1023_v63  ;;  %v959_v23 = vpop.f32.mrf.mxu1  ;;  %1742 = vmatmul.f32.gmra.mxu3 %v4927_v54  ;;  %1759 = vmatpush.msra.mxu0 %v1601_v24  ;;  %v1565_v9 = vld [vmem:[%s6665_s3 + $0x440] sm:$0xff]  ;;  %v1447_v24 = vld [vmem:[%s6665_s3 + $0x90] sm:$0xff] }
 0x186   : > { %v1355_v45 = vmax.f32 %v852_v48, %v992_v30  ;;  %v4942_v52 = vpop.f32.mrf.mxu0  ;;  %2001 = vmatpush.msra.mxu3 %v1551_v34  ;;  %v1547_v30 = vld [vmem:[%s6665_s3 + $0x3b0] sm:$0xff]  ;;  %v1561_v25 = vld [vmem:[%s6665_s3 + $0x420] sm:$0xff] }
 0x187   : > { %v1354_v27 = vmax.f32 %v919_v42, %v1059_v62  ;;  %v1589_v42 = vld [vmem:[%s6665_s3 + $0x500] sm:$0xff]  ;;  %v1471_v62 = vld [vmem:[%s6665_s3 + $0x150] sm:$0xff] }
 0x188   : > { %1710 = vmatmul.f32.gmra.mxu1 %v4940_v49  ;;  %v1397_v53 = vadd.f32 %v4800_v3, %v1355_v45  ;;  %2002 = vmatpush.msra.mxu3 %v1547_v30  ;;  %v1637_v57 = vld [vmem:[%s6665_s3 + $0x680] sm:$0xff]  ;;  %v1443_v33 = vld [vmem:[%s6665_s3 + $0x70] sm:$0xff] }
 0x189   : > { %v1394_v31 = vadd.f32 %v4834_v32, %v1354_v27  ;;  %v1467_v27 = vld [vmem:[%s6665_s3 + $0x130] sm:$0xff] }
 0x18a   : > { %v4968_v39 = vmax.f32 %v1397_v53, 0.0  ;;  %v1539_v53 = vld [vmem:[%s6665_s3 + $0x370] sm:$0xff]  ;;  %2003 = vmatpush.msra.mxu3 %v1543_v47 }
 0x18b   : > { %v4953_v56 = vmax.f32 %v1394_v31, 0.0  ;;  %v994_v58 = vpop.f32.mrf.mxu3  ;;  %v1649_v31 = vld [vmem:[%s6665_s3 + $0x6e0] sm:$0xff]  ;;  %v1439_v34 = vld [vmem:[%s6665_s3 + $0x50] sm:$0xff] }
 0x18c   : > { %v995_v7 = vadd.f32 %v994_v58, %v959_v23  ;;  %v1061_v63 = vpop.f32.mrf.mxu2  ;;  %v1581_v58 = vld [vmem:[%s6665_s3 + $0x4c0] sm:$0xff]  ;;  %2004 = vmatpush.msra.mxu3 %v1539_v53  ;;  %v1507_v30 = vld [vmem:[%s6665_s3 + $0x270] sm:$0xff] }
 0x18d   : > { %v1062_v2 = vadd.f32 %v1061_v63, %v1026_v17  ;;  %v4962_v5 = vpop.f32.mrf.mxu1  ;;  %1745 = vmatmul.f32.gmra.mxu3 %v4953_v56  ;;  %v1535_v63 = vld [vmem:[%s6665_s3 + $0x350] sm:$0xff] }
 0x18e   : > { %v1357_v40 = vmax.f32 %v855_v60, %v995_v7  ;;  %v4976_v51 = vpop.f32.mrf.mxu0  ;;  %v1463_v60 = vld [vmem:[%s6665_s3 + $0x110] sm:$0xff]  ;;  %v1645_v7 = vld [vmem:[%s6665_s3 + $0x6c0] sm:$0xff]  ;;  %2005 = vmatpush.msra.mxu3 %v1535_v63 }
 0x18f   : > { %v1356_v38 = vmax.f32 %v922_v1, %v1062_v2  ;;  %v1459_v1 = vld [vmem:[%s6665_s3 + $0xf0] sm:$0xff] }
 0x190   : > { %1713 = vmatmul.f32.gmra.mxu1 %v4968_v39  ;;  %v1401_v18 = vadd.f32 %v4800_v3, %v1357_v40  ;;  %v925_v3 = vadd.f32 %v4765_v44, %v4770_v46  ;;  %v1597_v44 = vld [vmem:[%s6665_s3 + $0x540] sm:$0xff]  ;;  %v1531_v2 = vld [vmem:[%s6665_s3 + $0x330] sm:$0xff] }
 0x191   : > { %v1398_v13 = vadd.f32 %v4834_v32, %v1356_v38  ;;  %v1657_v46 = vld [vmem:[%s6665_s3 + $0x720] sm:$0xff]  ;;  %1760 = vmatpush.msra.mxu0 %v1597_v44  ;;  %2006 = vmatpush.msra.mxu3 %v1531_v2  ;;  %v1503_v47 = vld [vmem:[%s6665_s3 + $0x250] sm:$0xff]  ;;  %v1678_v2 = vld [vmem:[%s6665_s3 + $0x7c8] sm:$0xff] }
 0x192   : > { %v5015_v14 = vmax.f32 %v1401_v18, 0.0  ;;  %1796 = vmatpush.msrb.mxu2 %v1657_v46  ;;  %v1451_v18 = vld [vmem:[%s6665_s3 + $0xb0] sm:$0xff]  ;;  %v1633_v46 = vld [vmem:[%s6665_s3 + $0x660] sm:$0xff] }
 0x193   : > { %v4993_v15 = vmax.f32 %v1398_v13, 0.0  ;;  %v4995_v21 = vpop.f32.mrf.mxu3  ;;  %1761 = vmatpush.msra.mxu0 %v1593_v35  ;;  %v1523_v13 = vld [vmem:[%s6665_s3 + $0x2f0] sm:$0xff]  ;;  %2007 = vmatpush.msra.mxu3 %v1527_v37 }
 0x194   : > { %v1064_v22 = vpop.f32.mrf.mxu2  ;;  %1797 = vmatpush.msrb.mxu2 %v1653_v36  ;;  %v1511_v35 = vld [vmem:[%s6665_s3 + $0x290] sm:$0xff] }
 0x195   : > { %v1065_v20 = vadd.f32 %v1064_v22, %v4791_v61  ;;  %v5006_v17 = vpop.f32.mrf.mxu1  ;;  %1748 = vmatmul.f32.gmra.mxu3 %v4993_v15  ;;  %v1479_v61 = vld [vmem:[%s6665_s3 + $0x190] sm:$0xff]  ;;  %1762 = vmatpush.msra.mxu0 %v1589_v42  ;;  %v1629_v42 = vld [vmem:[%s6665_s3 + $0x640] sm:$0xff] }
 0x196   : > { %1968 = vmatpush.msra.mxu1 %v1479_v61  ;;  %v5043_v41 = vpop.f32.mrf.mxu0  ;;  %1798 = vmatpush.msrb.mxu2 %v1649_v31  ;;  %v1519_v22 = vld [vmem:[%s6665_s3 + $0x2d0] sm:$0xff]  ;;  %v1557_v61 = vld [vmem:[%s6665_s3 + $0x400] sm:$0xff] }
 0x197   : > { %v1358_v16 = vmax.f32 %v925_v3, %v1065_v20  ;;  %1763 = vmatpush.msra.mxu0 %v1585_v29  ;;  %2008 = vmatpush.msra.mxu3 %v1523_v13  ;;  %v1641_v3 = vld [vmem:[%s6665_s3 + $0x6a0] sm:$0xff]  ;;  %v1515_v20 = vld [vmem:[%s6665_s3 + $0x2b0] sm:$0xff]  ;;  %v1610_v13 = vld [vmem:[%s6665_s3 + $0x5a8] sm:$0xff] }
 0x198   : > { %1716 = vmatmul.f32.gmra.mxu1 %v5015_v14  ;;  %1799 = vmatpush.msrb.mxu2 %v1645_v7  ;;  %v1625_v29 = vld [vmem:[%s6665_s3 + $0x620] sm:$0xff]  ;;  %v1499_v53 = vld [vmem:[%s6665_s3 + $0x230] sm:$0xff] }
 0x199   : > { %v1402_v48 = vadd.f32 %v4834_v32, %v1358_v16  ;;  %1969 = vmatpush.msra.mxu1 %v1475_v55  ;;  %1764 = vmatpush.msra.mxu0 %v1581_v58  ;;  %v1621_v31 = vld [vmem:[%s6665_s3 + $0x600] sm:$0xff]  ;;  %v1495_v7 = vld [vmem:[%s6665_s3 + $0x210] sm:$0xff] }
 0x19a   : > { %1800 = vmatpush.msrb.mxu2 %v1641_v3  ;;  %2009 = vmatpush.msra.mxu3 %v1519_v22  ;;  %v1674_v22 = vld [vmem:[%s6665_s3 + $0x7a8] sm:$0xff] }
 0x19b   : > { %v5051_v23 = vmax.f32 %v1402_v48, 0.0  ;;  %v5053_v32 = vpop.f32.mrf.mxu3  ;;  %1970 = vmatpush.msra.mxu1 %v1471_v62  ;;  %1765 = vmatpush.msra.mxu0 %v1577_v0  ;;  %v1435_v48 = vld [vmem:[%s6665_s3 + $0x30] sm:$0xff] }
 0x19c   : > { %v5058_v45 = vpop.f32.mrf.mxu2  ;;  %1801 = vmatpush.msrb.mxu2 %v1637_v57  ;;  %2010 = vmatpush.msra.mxu3 %v1515_v20  ;;  %v1431_v62 = vld [vmem:[%s6665_s3 + $0x10] sm:$0xff]  ;;  %v1670_v20 = vld [vmem:[%s6665_s3 + $0x788] sm:$0xff]  ;;  %v1120_v57 = vadd.f32 %v4995_v21, %v4962_v5  ;;  %v1556_v21 = vld [vmem:[%s6665_s3 + $0x3f8] sm:$0xff] }
 0x19d   : > { %v5066_v28 = vpop.f32.mrf.mxu1  ;;  %1751 = vmatmul.f32.gmra.mxu3 %v5051_v23  ;;  %1971 = vmatpush.msra.mxu1 %v1467_v27 }
 0x19e   : > { %v5108_v38 = vpop.f32.mrf.mxu0  ;;  %1766 = vmatpush.msra.mxu0 %v1573_v4  ;;  %1802 = vmatpush.msrb.mxu2 %v1633_v46  ;;  %v1618_v4 = vld [vmem:[%s6665_s3 + $0x5e8] sm:$0xff]  ;;  %v5247_v46 = vperm.slane %v4787_v11, 2 }
 0x19f   : > { %1972 = vmatpush.msra.mxu1 %v1463_v60  ;;  %2011 = vmatpush.msra.mxu3 %v1511_v35  ;;  %v1602_v35 = vld [vmem:[%s6665_s3 + $0x568] sm:$0xff] }
 0x1a0   : > { %1841 = vmatmul.f32.vlgmr.msrb.gmra.mxu1 %v4839_v59  ;;  %1767 = vmatpush.msra.mxu0 %v1569_v12  ;;  %v1614_v12 = vld [vmem:[%s6665_s3 + $0x5c8] sm:$0xff] }
 0x1a1   : > { %1973 = vmatpush.msra.mxu1 %v1459_v1  ;;  %1803 = vmatpush.msrb.mxu2 %v1629_v42  ;;  %v1682_v1 = vld [vmem:[%s6665_s3 + $0x7e8] sm:$0xff] }
 0x1a2   : > { %1768 = vmatpush.msra.mxu0 %v1565_v9  ;;  %2012 = vmatpush.msra.mxu3 %v1507_v30  ;;  %v1598_v42 = vld [vmem:[%s6665_s3 + $0x548] sm:$0xff] }
 0x1a3   : > { %v5100_v40 = vpop.f32.mrf.mxu3  ;;  %1974 = vmatpush.msra.mxu1 %v1455_v50  ;;  %1804 = vmatpush.msrb.mxu2 %v1625_v29 }
 0x1a4   : > { %v5110_v8 = vpop.f32.mrf.mxu2  ;;  %1769 = vmatpush.msra.mxu0 %v1561_v25  ;;  %2013 = vmatpush.msra.mxu3 %v1503_v47  ;;  %v1488_v25 = vld [vmem:[%s6665_s3 + $0x1d8] sm:$0xff] }
 0x1a5   : > { %v5115_v26 = vpop.f32.mrf.mxu1  ;;  %1876 = vmatmul.f32.vlgmr.msrb.gmra.mxu3 %v4861_v43  ;;  %1975 = vmatpush.msra.mxu1 %v1451_v18  ;;  %v1492_v18 = vld [vmem:[%s6665_s3 + $0x1f8] sm:$0xff] }
 0x1a6   : > { %v5168_v36 = vpop.f32.mrf.mxu0  ;;  %1770 = vmatpush.msra.mxu0 %v1557_v61  ;;  %1805 = vmatpush.msrb.mxu2 %v1621_v31  ;;  %v1552_v47 = vld [vmem:[%s6665_s3 + $0x3d8] sm:$0xff]  ;;  %v1594_v31 = vld [vmem:[%s6665_s3 + $0x528] sm:$0xff] }
 0x1a7   : > { %1976 = vmatpush.msra.mxu1 %v1447_v24  ;;  %2014 = vmatpush.msra.mxu3 %v1499_v53  ;;  %v1606_v24 = vld [vmem:[%s6665_s3 + $0x588] sm:$0xff]  ;;  %v1476_v53 = vld [vmem:[%s6665_s3 + $0x178] sm:$0xff] }
 0x1a8   : > { %1844 = vmatmul.f32.gmra.mxu1 %v4877_v6  ;;  %1930 = vmatpush.msra.mxu2 %v1682_v1 }
 0x1a9   : > { %1977 = vmatpush.msra.mxu1 %v1443_v33  ;;  %2015 = vmatpush.msra.mxu3 %v1495_v7  ;;  %v1548_v7 = vld [vmem:[%s6665_s3 + $0x3b8] sm:$0xff] }
 0x1aa   : > { %1895 = vmatpush.msrb.mxu0 %v1618_v4  ;;  %1931 = vmatpush.msra.mxu2 %v1678_v2  ;;  %v1590_v2 = vld [vmem:[%s6665_s3 + $0x508] sm:$0xff] }
 0x1ab   : > { %v5149_v44 = vpop.f32.mrf.mxu3  ;;  %1978 = vmatpush.msra.mxu1 %v1439_v34  ;;  %v1666_v34 = vld [vmem:[%s6665_s3 + $0x768] sm:$0xff]  ;;  %2140 = vmatpush.msrb.mxu3 %v1556_v21  ;;  %v1536_v21 = vld [vmem:[%s6665_s3 + $0x358] sm:$0xff] }
 0x1ac   : > { %v5157_v16 = vpop.f32.mrf.mxu2  ;;  %1896 = vmatpush.msrb.mxu0 %v1614_v12  ;;  %1932 = vmatpush.msra.mxu2 %v1674_v22  ;;  %v1658_v12 = vld [vmem:[%s6665_s3 + $0x728] sm:$0xff] }
 0x1ad   : > { %v5165_v55 = vpop.f32.mrf.mxu1  ;;  %1879 = vmatmul.f32.gmra.mxu3 %v4897_v10  ;;  %1979 = vmatpush.msra.mxu1 %v1435_v48  ;;  %v1484_v48 = vld [vmem:[%s6665_s3 + $0x1b8] sm:$0xff] }
 0x1ae   : > { %v5205_v63 = vpop.f32.mrf.mxu0  ;;  %1897 = vmatpush.msrb.mxu0 %v1610_v13  ;;  %1933 = vmatpush.msra.mxu2 %v1670_v20  ;;  %v1472_v13 = vld [vmem:[%s6665_s3 + $0x158] sm:$0xff]  ;;  %v1586_v20 = vld [vmem:[%s6665_s3 + $0x4e8] sm:$0xff] }
 0x1af   : > { %1980 = vmatpush.msra.mxu1 %v1431_v62  ;;  %v1480_v62 = vld [vmem:[%s6665_s3 + $0x198] sm:$0xff]  ;;  %2141 = vmatpush.msrb.mxu3 %v1552_v47 }
 0x1b0   : > { %1847 = vmatmul.f32.gmra.mxu1 %v4913_v19  ;;  %1898 = vmatpush.msrb.mxu0 %v1606_v24 }
 0x1b1   : > { %2105 = vmatpush.msrb.mxu1 %v1492_v18  ;;  %1934 = vmatpush.msra.mxu2 %v1666_v34  ;;  %v1123_v18 = vadd.f32 %v5053_v32, %v5006_v17  ;;  %v5310_v17 = vperm.slane %v4787_v11, 3  ;;  %v1654_v34 = vld [vmem:[%s6665_s3 + $0x708] sm:$0xff]  ;;  %v1540_v11 = vld [vmem:[%s6665_s3 + $0x378] sm:$0xff] }
 0x1b2   : > { %1899 = vmatpush.msrb.mxu0 %v1602_v35  ;;  %2142 = vmatpush.msrb.mxu3 %v1548_v7  ;;  %v1126_v7 = vadd.f32 %v5100_v40, %v5066_v28  ;;  %v1574_v28 = vld [vmem:[%s6665_s3 + $0x488] sm:$0xff] }
 0x1b3   : > { %v5189_v27 = vpop.f32.mrf.mxu3  ;;  %2106 = vmatpush.msrb.mxu1 %v1488_v25 }
 0x1b4   : > { %v5197_v58 = vpop.f32.mrf.mxu2  ;;  %1900 = vmatpush.msrb.mxu0 %v1598_v42 }
 0x1b5   : > { %v5199_v60 = vpop.f32.mrf.mxu1  ;;  %1882 = vmatmul.f32.gmra.mxu3 %v4927_v54  ;;  %2107 = vmatpush.msrb.mxu1 %v1484_v48  ;;  %v1468_v48 = vld [vmem:[%s6665_s3 + $0x138] sm:$0xff] }
 0x1b6   : > { %v1294_v9 = vpop.f32.mrf.mxu0  ;;  %1901 = vmatpush.msrb.mxu0 %v1594_v31  ;;  %v1646_v31 = vld [vmem:[%s6665_s3 + $0x6c8] sm:$0xff] }
 0x1b7   : > { %2108 = vmatpush.msrb.mxu1 %v1480_v62 }
 0x1b8   : > { %1850 = vmatmul.f32.gmra.mxu1 %v4940_v49  ;;  %1902 = vmatpush.msrb.mxu0 %v1590_v2 }
 0x1b9   : > { %2109 = vmatpush.msrb.mxu1 %v1476_v53  ;;  %v1578_v53 = vld [vmem:[%s6665_s3 + $0x4a8] sm:$0xff] }
 0x1ba   : > { %1903 = vmatpush.msrb.mxu0 %v1586_v20  ;;  %v1570_v20 = vld [vmem:[%s6665_s3 + $0x468] sm:$0xff] }
 0x1bb   : > { %v5208_v0 = vpop.f32.mrf.mxu3  ;;  %2110 = vmatpush.msrb.mxu1 %v1472_v13  ;;  %v1193_v13 = vadd.f32 %v5110_v8, %v4976_v51  ;;  %v1456_v51 = vld [vmem:[%s6665_s3 + $0xd8] sm:$0xff] }
 0x1bc   : > { %v5219_v50 = vpop.f32.mrf.mxu2 }
 0x1bd   : > { %v1224_v37 = vpop.f32.mrf.mxu1  ;;  %1885 = vmatmul.f32.gmra.mxu3 %v4953_v56  ;;  %2111 = vmatpush.msrb.mxu1 %v1468_v48 }
 0x1be   : > { %v1297_v22 = vpop.f32.mrf.mxu0 }
 0x1c0   : > { %1853 = vmatmul.f32.gmra.mxu1 %v4968_v39 }
 0x1c3   : > { %v1259_v3 = vpop.f32.mrf.mxu3 }
 0x1c4   : > { %v1260_v33 = vadd.f32 %v1259_v3, %v1224_v37  ;;  %v5249_v61 = vpop.f32.mrf.mxu2  ;;  %v1662_v37 = vld [vmem:[%s6665_s3 + $0x748] sm:$0xff]  ;;  %v1544_v3 = vld [vmem:[%s6665_s3 + $0x398] sm:$0xff] }
 0x1c5   : > { %v1227_v5 = vpop.f32.mrf.mxu1  ;;  %1888 = vmatmul.f32.gmra.mxu3 %v4993_v15  ;;  %1935 = vmatpush.msra.mxu2 %v1662_v37  ;;  %v1460_v37 = vld [vmem:[%s6665_s3 + $0xf8] sm:$0xff] }
 0x1c6   : > { %v1359_v30 = vmax.f32 %v1120_v57, %v1260_v33  ;;  %v1190_v57 = vadd.f32 %v5058_v45, %v4942_v52  ;;  %2143 = vmatpush.msrb.mxu3 %v1544_v3  ;;  %v1582_v45 = vld [vmem:[%s6665_s3 + $0x4c8] sm:$0xff]  ;;  %v1300_v40 = vpop.f32.mrf.mxu0  ;;  %v1528_v3 = vld [vmem:[%s6665_s3 + $0x318] sm:$0xff] }
 0x1c7   : > { %1936 = vmatpush.msra.mxu2 %v1658_v12  ;;  %1904 = vmatpush.msrb.mxu0 %v1582_v45  ;;  %v1532_v12 = vld [vmem:[%s6665_s3 + $0x338] sm:$0xff]  ;;  %v1566_v45 = vld [vmem:[%s6665_s3 + $0x448] sm:$0xff] }
 0x1c8   : > { %v1383_v29 = vadd.f32 %v5247_v46, %v1359_v30  ;;  %1856 = vmatmul.f32.gmra.mxu1 %v5015_v14  ;;  %2144 = vmatpush.msrb.mxu3 %v1540_v11  ;;  %v1638_v11 = vld [vmem:[%s6665_s3 + $0x688] sm:$0xff] }
 0x1c9   : > { %1937 = vmatpush.msra.mxu2 %v1654_v34  ;;  %1905 = vmatpush.msrb.mxu0 %v1578_v53  ;;  %v1562_v53 = vld [vmem:[%s6665_s3 + $0x428] sm:$0xff] }
 0x1ca   : > { %v5284_v1 = vmax.f32 %v1383_v29, 0.0  ;;  %v1650_v29 = vld [vmem:[%s6665_s3 + $0x6e8] sm:$0xff]  ;;  %2145 = vmatpush.msrb.mxu3 %v1536_v21 }
 0x1cb   : > { %v1262_v4 = vpop.f32.mrf.mxu3  ;;  %1938 = vmatpush.msra.mxu2 %v1650_v29  ;;  %1906 = vmatpush.msrb.mxu0 %v1574_v28  ;;  %v1196_v29 = vadd.f32 %v5157_v16, %v5043_v41  ;;  %v1444_v41 = vld [vmem:[%s6665_s3 + $0x78] sm:$0xff] }
 0x1cc   : > { %v1263_v24 = vadd.f32 %v1262_v4, %v1227_v5  ;;  %v1329_v25 = vpop.f32.mrf.mxu2  ;;  %1771 = vmatmul.f32.vlgmr.msra.gmra.mxu0 %v5284_v1  ;;  %v1464_v5 = vld [vmem:[%s6665_s3 + $0x118] sm:$0xff]  ;;  %2146 = vmatpush.msrb.mxu3 %v1532_v12  ;;  %v1558_v12 = vld [vmem:[%s6665_s3 + $0x408] sm:$0xff] }
 0x1cd   : > { %v1330_v33 = vadd.f32 %v1329_v25, %v1294_v9  ;;  %v1230_v32 = vpop.f32.mrf.mxu1  ;;  %1891 = vmatmul.f32.gmra.mxu3 %v5051_v23  ;;  %2112 = vmatpush.msrb.mxu1 %v1464_v5  ;;  %v1642_v25 = vld [vmem:[%s6665_s3 + $0x6a8] sm:$0xff] }
 0x1ce   : > { %v1361_v35 = vmax.f32 %v1123_v18, %v1263_v24  ;;  %1939 = vmatpush.msra.mxu2 %v1646_v31  ;;  %2147 = vmatpush.msrb.mxu3 %v1528_v3  ;;  %v1132_v3 = vadd.f32 %v5189_v27, %v5165_v55  ;;  %v1504_v55 = vld [vmem:[%s6665_s3 + $0x258] sm:$0xff] }
 0x1cf   : > { %v1360_v52 = vmax.f32 %v1190_v57, %v1330_v33  ;;  %2113 = vmatpush.msrb.mxu1 %v1460_v37  ;;  %v1452_v33 = vld [vmem:[%s6665_s3 + $0xb8] sm:$0xff]  ;;  %1907 = vmatpush.msrb.mxu0 %v1570_v20 }
 0x1d0   : > { %v1387_v9 = vadd.f32 %v5247_v46, %v1361_v35  ;;  %1981 = vmatmul.f32.vlgmr.msra.gmra.mxu1 %v4839_v59  ;;  %1940 = vmatpush.msra.mxu2 %v1642_v25 }
 0x1d1   : > { %v1384_v30 = vadd.f32 %v5310_v17, %v1360_v52  ;;  %2114 = vmatpush.msrb.mxu1 %v1456_v51  ;;  %v1524_v52 = vld [vmem:[%s6665_s3 + $0x2f8] sm:$0xff]  ;;  %1908 = vmatpush.msrb.mxu0 %v1566_v45  ;;  %v1683_v45 = vld [vmem:[%s6665_s3 + $0x7f0] sm:$0xff] }
 0x1d2   : > { %v5334_v42 = vmax.f32 %v1387_v9, 0.0  ;;  %v1129_v9 = vadd.f32 %v5149_v44, %v5115_v26  ;;  %1941 = vmatpush.msra.mxu2 %v1638_v11  ;;  %v1520_v26 = vld [vmem:[%s6665_s3 + $0x2d8] sm:$0xff]  ;;  %2148 = vmatpush.msrb.mxu3 %v1524_v52 }
 0x1d3   : > { %v5336_v62 = vmax.f32 %v1384_v30, 0.0  ;;  %v1265_v47 = vpop.f32.mrf.mxu3  ;;  %2115 = vmatpush.msrb.mxu1 %v1452_v33  ;;  %v1448_v30 = vld [vmem:[%s6665_s3 + $0x98] sm:$0xff]  ;;  %1909 = vmatpush.msrb.mxu0 %v1562_v53  ;;  %v1626_v33 = vld [vmem:[%s6665_s3 + $0x628] sm:$0xff]  ;;  %v1679_v53 = vld [vmem:[%s6665_s3 + $0x7d0] sm:$0xff] }
 0x1d4   : > { %v1266_v2 = vadd.f32 %v1265_v47, %v1230_v32  ;;  %v1332_v4 = vpop.f32.mrf.mxu2  ;;  %1774 = vmatmul.f32.gmra.mxu0 %v5334_v42  ;;  %v1634_v47 = vld [vmem:[%s6665_s3 + $0x668] sm:$0xff]  ;;  %2149 = vmatpush.msrb.mxu3 %v1520_v26  ;;  %v1432_v11 = vld [vmem:[%s6665_s3 + $0x18] sm:$0xff] }
 0x1d5   : > { %v1333_v18 = vadd.f32 %v1332_v4, %v1297_v22  ;;  %1806 = vmatmul.f32.vlgmr.msrb.gmra.mxu2 %v5336_v62  ;;  %2016 = vmatmul.f32.vlgmr.msra.gmra.mxu3 %v4861_v43  ;;  %v1233_v22 = vpop.f32.mrf.mxu1  ;;  %v1303_v4 = vpop.f32.mrf.mxu0  ;;  %v1500_v52 = vld [vmem:[%s6665_s3 + $0x238] sm:$0xff] }
 0x1d6   : > { %v1363_v24 = vmax.f32 %v1126_v7, %v1266_v2  ;;  %2116 = vmatpush.msrb.mxu1 %v1448_v30  ;;  %1942 = vmatpush.msra.mxu2 %v1634_v47  ;;  %v1516_v7 = vld [vmem:[%s6665_s3 + $0x2b8] sm:$0xff]  ;;  %v1630_v2 = vld [vmem:[%s6665_s3 + $0x648] sm:$0xff]  ;;  %v1619_v30 = vld [vmem:[%s6665_s3 + $0x5f0] sm:$0xff] }
 0x1d7   : > { %v1362_v8 = vmax.f32 %v1193_v13, %v1333_v18  ;;  %v1440_v13 = vld [vmem:[%s6665_s3 + $0x58] sm:$0xff]  ;;  %2150 = vmatpush.msrb.mxu3 %v1516_v7  ;;  %1910 = vmatpush.msrb.mxu0 %v1558_v12  ;;  %v1611_v12 = vld [vmem:[%s6665_s3 + $0x5b0] sm:$0xff] }
 0x1d8   : > { %v1391_v57 = vadd.f32 %v5247_v46, %v1363_v24  ;;  %1984 = vmatmul.f32.gmra.mxu1 %v4877_v6  ;;  %1943 = vmatpush.msra.mxu2 %v1630_v2  ;;  %v1615_v2 = vld [vmem:[%s6665_s3 + $0x5d0] sm:$0xff] }
 0x1d9   : > { %v1388_v32 = vadd.f32 %v5310_v17, %v1362_v8  ;;  %2117 = vmatpush.msrb.mxu1 %v1444_v41  ;;  %v1436_v8 = vld [vmem:[%s6665_s3 + $0x38] sm:$0xff]  ;;  %2035 = vmatpush.msra.mxu0 %v1619_v30  ;;  %v1135_v41 = vadd.f32 %v5208_v0, %v5199_v60  ;;  %v1675_v60 = vld [vmem:[%s6665_s3 + $0x7b0] sm:$0xff] }
 0x1da   : > { %v5381_v34 = vmax.f32 %v1391_v57, 0.0  ;;  %1944 = vmatpush.msra.mxu2 %v1626_v33  ;;  %v1571_v30 = vld [vmem:[%s6665_s3 + $0x470] sm:$0xff] }
 0x1db   : > { %v5383_v35 = vmax.f32 %v1388_v32, 0.0  ;;  %v1268_v48 = vpop.f32.mrf.mxu3  ;;  %2118 = vmatpush.msrb.mxu1 %v1440_v13  ;;  %v1199_v32 = vadd.f32 %v5197_v58, %v5108_v38  ;;  %v1622_v38 = vld [vmem:[%s6665_s3 + $0x608] sm:$0xff]  ;;  %2036 = vmatpush.msra.mxu0 %v1615_v2  ;;  %v1612_v2 = vld [vmem:[%s6665_s3 + $0x5b8] sm:$0xff] }
 0x1dc   : > { %v1269_v5 = vadd.f32 %v1268_v48, %v1233_v22  ;;  %v1335_v21 = vpop.f32.mrf.mxu2  ;;  %1777 = vmatmul.f32.gmra.mxu0 %v5381_v34  ;;  %v1508_v22 = vld [vmem:[%s6665_s3 + $0x278] sm:$0xff]  ;;  %1945 = vmatpush.msra.mxu2 %v1622_v38  ;;  %v1591_v38 = vld [vmem:[%s6665_s3 + $0x510] sm:$0xff] }
 0x1dd   : > { %v1336_v31 = vadd.f32 %v1335_v21, %v1300_v40  ;;  %1809 = vmatmul.f32.gmra.mxu2 %v5383_v35  ;;  %2019 = vmatmul.f32.gmra.mxu3 %v4897_v10  ;;  %v1236_v28 = vpop.f32.mrf.mxu1  ;;  %v1512_v40 = vld [vmem:[%s6665_s3 + $0x298] sm:$0xff]  ;;  %v1306_v47 = vpop.f32.mrf.mxu0 }
 0x1de   : > { %v1365_v44 = vmax.f32 %v1129_v9, %v1269_v5  ;;  %2151 = vmatpush.msrb.mxu3 %v1512_v40  ;;  %2119 = vmatpush.msrb.mxu1 %v1436_v8  ;;  %v1496_v21 = vld [vmem:[%s6665_s3 + $0x218] sm:$0xff]  ;;  %v1607_v40 = vld [vmem:[%s6665_s3 + $0x590] sm:$0xff] }
 0x1df   : > { %v1364_v16 = vmax.f32 %v1196_v29, %v1336_v31  ;;  %2070 = vmatpush.msrb.mxu2 %v1683_v45  ;;  %2037 = vmatpush.msra.mxu0 %v1611_v12  ;;  %v1647_v45 = vld [vmem:[%s6665_s3 + $0x6d0] sm:$0xff]  ;;  %v1600_v12 = vld [vmem:[%s6665_s3 + $0x558] sm:$0xff] }
 0x1e0   : > { %v1395_v37 = vadd.f32 %v5247_v46, %v1365_v44  ;;  %1987 = vmatmul.f32.gmra.mxu1 %v4913_v19  ;;  %2152 = vmatpush.msrb.mxu3 %v1508_v22 }
 0x1e1   : > { %v1392_v18 = vadd.f32 %v5310_v17, %v1364_v16  ;;  %2120 = vmatpush.msrb.mxu1 %v1432_v11  ;;  %2071 = vmatpush.msrb.mxu2 %v1679_v53  ;;  %v1559_v53 = vld [vmem:[%s6665_s3 + $0x410] sm:$0xff] }
 0x1e2   : > { %v5434_v24 = vmax.f32 %v1395_v37, 0.0  ;;  %2153 = vmatpush.msrb.mxu3 %v1504_v55  ;;  %2038 = vmatpush.msra.mxu0 %v1607_v40 }
 0x1e3   : > { %v5436_v25 = vmax.f32 %v1392_v18, 0.0  ;;  %v1271_v51 = vpop.f32.mrf.mxu3  ;;  %2072 = vmatpush.msrb.mxu2 %v1675_v60  ;;  %v1664_v60 = vld [vmem:[%s6665_s3 + $0x758] sm:$0xff] }
 0x1e4   : > { %v1272_v20 = vadd.f32 %v1271_v51, %v1236_v28  ;;  %v1338_v57 = vpop.f32.mrf.mxu2  ;;  %1780 = vmatmul.f32.gmra.mxu0 %v5434_v24  ;;  %2154 = vmatpush.msrb.mxu3 %v1500_v52  ;;  %v1667_v28 = vld [vmem:[%s6665_s3 + $0x770] sm:$0xff] }
 0x1e5   : > { %v1339_v48 = vadd.f32 %v1338_v57, %v1303_v4  ;;  %1812 = vmatmul.f32.gmra.mxu2 %v5436_v25  ;;  %2022 = vmatmul.f32.gmra.mxu3 %v4927_v54  ;;  %v1239_v26 = vpop.f32.mrf.mxu1  ;;  %v1202_v4 = vadd.f32 %v5219_v50, %v5168_v36  ;;  %v1671_v36 = vld [vmem:[%s6665_s3 + $0x790] sm:$0xff]  ;;  %v1205_v57 = vadd.f32 %v5249_v61, %v5205_v63 }
 0x1e6   : > { %v1367_v27 = vmax.f32 %v1132_v3, %v1272_v20  ;;  %2155 = vmatpush.msrb.mxu3 %v1496_v21  ;;  %2073 = vmatpush.msrb.mxu2 %v1671_v36  ;;  %v1663_v3 = vld [vmem:[%s6665_s3 + $0x750] sm:$0xff]  ;;  %v1596_v36 = vld [vmem:[%s6665_s3 + $0x538] sm:$0xff] }
 0x1e7   : > { %v1366_v58 = vmax.f32 %v1199_v32, %v1339_v48  ;;  %v1603_v20 = vld [vmem:[%s6665_s3 + $0x570] sm:$0xff] }
 0x1e8   : > { %v1399_v9 = vadd.f32 %v5247_v46, %v1367_v27  ;;  %1990 = vmatmul.f32.gmra.mxu1 %v4940_v49  ;;  %2074 = vmatpush.msrb.mxu2 %v1667_v28  ;;  %v1599_v32 = vld [vmem:[%s6665_s3 + $0x550] sm:$0xff] }
 0x1e9   : > { %v1396_v5 = vadd.f32 %v5310_v17, %v1366_v58  ;;  %2039 = vmatpush.msra.mxu0 %v1603_v20  ;;  %v1659_v48 = vld [vmem:[%s6665_s3 + $0x730] sm:$0xff]  ;;  %v1576_v20 = vld [vmem:[%s6665_s3 + $0x498] sm:$0xff] }
 0x1ea   : > { %v5478_v29 = vmax.f32 %v1399_v9, 0.0  ;;  %2075 = vmatpush.msrb.mxu2 %v1663_v3  ;;  %v1595_v63 = vld [vmem:[%s6665_s3 + $0x530] sm:$0xff]  ;;  %v1644_v3 = vld [vmem:[%s6665_s3 + $0x6b8] sm:$0xff] }
 0x1eb   : > { %v5480_v31 = vmax.f32 %v1396_v5, 0.0  ;;  %v1274_v44 = vpop.f32.mrf.mxu3  ;;  %2040 = vmatpush.msra.mxu0 %v1599_v32  ;;  %v1655_v27 = vld [vmem:[%s6665_s3 + $0x710] sm:$0xff] }
 0x1ec   : > { %v1275_v16 = vadd.f32 %v1274_v44, %v1239_v26  ;;  %v1341_v7 = vpop.f32.mrf.mxu2  ;;  %1783 = vmatmul.f32.gmra.mxu0 %v5478_v29  ;;  %2076 = vmatpush.msrb.mxu2 %v1659_v48  ;;  %v1651_v58 = vld [vmem:[%s6665_s3 + $0x6f0] sm:$0xff]  ;;  %v1568_v48 = vld [vmem:[%s6665_s3 + $0x458] sm:$0xff] }
 0x1ed   : > { %v1342_v37 = vadd.f32 %v1341_v7, %v1306_v47  ;;  %1815 = vmatmul.f32.gmra.mxu2 %v5480_v31  ;;  %2025 = vmatmul.f32.gmra.mxu3 %v4953_v56  ;;  %v1583_v52 = vld [vmem:[%s6665_s3 + $0x4d0] sm:$0xff]  ;;  %v1676_v7 = vld [vmem:[%s6665_s3 + $0x7b8] sm:$0xff] }
 0x1ee   : > { %v1369_v0 = vmax.f32 %v1135_v41, %v1275_v16  ;;  %2041 = vmatpush.msra.mxu0 %v1595_v63  ;;  %2077 = vmatpush.msrb.mxu2 %v1655_v27  ;;  %v1643_v9 = vld [vmem:[%s6665_s3 + $0x6b0] sm:$0xff]  ;;  %v1684_v41 = vld [vmem:[%s6665_s3 + $0x7f8] sm:$0xff] }
 0x1ef   : > { %v1368_v13 = vmax.f32 %v1202_v4, %v1342_v37  ;;  %v1579_v5 = vld [vmem:[%s6665_s3 + $0x4b0] sm:$0xff]  ;;  %v1620_v16 = vld [vmem:[%s6665_s3 + $0x5f8] sm:$0xff] }
 0x1f0   : > { %v1403_v50 = vadd.f32 %v5247_v46, %v1369_v0  ;;  %1993 = vmatmul.f32.gmra.mxu1 %v4968_v39  ;;  %v1309_v46 = vpop.f32.mrf.mxu0  ;;  %2042 = vmatpush.msra.mxu0 %v1591_v38  ;;  %v1639_v21 = vld [vmem:[%s6665_s3 + $0x690] sm:$0xff]  ;;  %v1668_v4 = vld [vmem:[%s6665_s3 + $0x778] sm:$0xff]  ;;  %v5651_v0 = vpop.f32.mrf.mxu1 }
 0x1f1   : > { %v1400_v18 = vadd.f32 %v5310_v17, %v1368_v13  ;;  %2078 = vmatpush.msrb.mxu2 %v1651_v58  ;;  %v1567_v47 = vld [vmem:[%s6665_s3 + $0x450] sm:$0xff]  ;;  %v1660_v13 = vld [vmem:[%s6665_s3 + $0x738] sm:$0xff] }
 0x1f2   : > { %v5513_v51 = vmax.f32 %v1403_v50, 0.0  ;;  %v1631_v26 = vld [vmem:[%s6665_s3 + $0x650] sm:$0xff]  ;;  %v1592_v50 = vld [vmem:[%s6665_s3 + $0x518] sm:$0xff] }
 0x1f3   : > { %v5515_v8 = vmax.f32 %v1400_v18, 0.0  ;;  %2079 = vmatpush.msrb.mxu2 %v1647_v45  ;;  %v1627_v44 = vld [vmem:[%s6665_s3 + $0x630] sm:$0xff]  ;;  %v1652_v18 = vld [vmem:[%s6665_s3 + $0x6f8] sm:$0xff] }
 0x1f4   : > { %v1344_v22 = vpop.f32.mrf.mxu2  ;;  %1786 = vmatmul.f32.gmra.mxu0 %v5513_v51  ;;  %v1564_v63 = vld [vmem:[%s6665_s3 + $0x438] sm:$0xff] }
 0x1f5   : > { %v1345_v33 = vadd.f32 %v1344_v22, %v1309_v46  ;;  %1818 = vmatmul.f32.gmra.mxu2 %v5515_v8  ;;  %2028 = vmatmul.f32.gmra.mxu3 %v4993_v15  ;;  %v1584_v46 = vld [vmem:[%s6665_s3 + $0x4d8] sm:$0xff] }
 0x1f6   : > { %2080 = vmatpush.msrb.mxu2 %v1643_v9  ;;  %v1580_v22 = vld [vmem:[%s6665_s3 + $0x4b8] sm:$0xff] }
 0x1f7   : > { %v1370_v55 = vmax.f32 %v1205_v57, %v1345_v33  ;;  %v1640_v57 = vld [vmem:[%s6665_s3 + $0x698] sm:$0xff] }
 0x1f8   : > { %1996 = vmatmul.f32.gmra.mxu1 %v5015_v14  ;;  %2081 = vmatpush.msrb.mxu2 %v1639_v21  ;;  %v5642_v37 = vpop.f32.mrf.mxu3  ;;  %v5682_v40 = vpop.f32.mrf.mxu1  ;;  %v1572_v33 = vld [vmem:[%s6665_s3 + $0x478] sm:$0xff] }
 0x1f9   : > { %v1404_v61 = vadd.f32 %v5310_v17, %v1370_v55  ;;  %v1587_v17 = vld [vmem:[%s6665_s3 + $0x4f0] sm:$0xff]  ;;  %v1560_v27 = vld [vmem:[%s6665_s3 + $0x418] sm:$0xff] }
 0x1fa   : > { %2043 = vmatpush.msra.mxu0 %v1587_v17  ;;  %v1632_v38 = vld [vmem:[%s6665_s3 + $0x658] sm:$0xff] }
 0x1fb   : > { %v5542_v11 = vmax.f32 %v1404_v61, 0.0  ;;  %v1636_v61 = vld [vmem:[%s6665_s3 + $0x678] sm:$0xff] }
 0x1fc   : > { %1911 = vmatmul.f32.vlgmr.msrb.gmra.mxu0 %v5284_v1  ;;  %v1628_v17 = vld [vmem:[%s6665_s3 + $0x638] sm:$0xff] }
 0x1fd   : > { %1821 = vmatmul.f32.gmra.mxu2 %v5542_v11  ;;  %2031 = vmatmul.f32.gmra.mxu3 %v5051_v23 }
 0x1fe   : > { %2044 = vmatpush.msra.mxu0 %v1583_v52  ;;  %v1624_v52 = vld [vmem:[%s6665_s3 + $0x618] sm:$0xff] }
 0x200   : > { %2121 = vmatmul.f32.vlgmr.msrb.gmra.mxu1 %v4839_v59  ;;  %v1575_v59 = vld [vmem:[%s6665_s3 + $0x490] sm:$0xff]  ;;  %2045 = vmatpush.msra.mxu0 %v1579_v5  ;;  %v5680_v28 = vpop.f32.mrf.mxu3  ;;  %v5712_v55 = vpop.f32.mrf.mxu1 }
 0x202   : > { %2046 = vmatpush.msra.mxu0 %v1575_v59 }
 0x204   : > { %1914 = vmatmul.f32.gmra.mxu0 %v5334_v42 }
 0x205   : > { %1946 = vmatmul.f32.vlgmr.msra.gmra.mxu2 %v5336_v62  ;;  %2156 = vmatmul.f32.vlgmr.msrb.gmra.mxu3 %v4861_v43  ;;  %v1635_v43 = vld [vmem:[%s6665_s3 + $0x670] sm:$0xff] }
 0x206   : > { %2047 = vmatpush.msra.mxu0 %v1571_v30  ;;  %2082 = vmatpush.msrb.mxu2 %v1635_v43 }
 0x208   : > { %2124 = vmatmul.f32.gmra.mxu1 %v4877_v6  ;;  %v1563_v6 = vld [vmem:[%s6665_s3 + $0x430] sm:$0xff]  ;;  %2048 = vmatpush.msra.mxu0 %v1567_v47  ;;  %v5707_v32 = vpop.f32.mrf.mxu3  ;;  %v5736_v45 = vpop.f32.mrf.mxu1 }
 0x209   : > { %2083 = vmatpush.msrb.mxu2 %v1631_v26 }
 0x20a   : > { %2049 = vmatpush.msra.mxu0 %v1563_v6 }
 0x20b   : > { %2084 = vmatpush.msrb.mxu2 %v1627_v44 }
 0x20c   : > { %1917 = vmatmul.f32.gmra.mxu0 %v5381_v34 }
 0x20d   : > { %1949 = vmatmul.f32.gmra.mxu2 %v5383_v35  ;;  %2159 = vmatmul.f32.gmra.mxu3 %v4897_v10  ;;  %v1623_v10 = vld [vmem:[%s6665_s3 + $0x610] sm:$0xff] }
 0x20e   : > { %2050 = vmatpush.msra.mxu0 %v1559_v53  ;;  %2085 = vmatpush.msrb.mxu2 %v1623_v10 }
 0x210   : > { %2127 = vmatmul.f32.gmra.mxu1 %v4913_v19  ;;  %2210 = vmatpush.msra.mxu2 %v1684_v41  ;;  %v1680_v19 = vld [vmem:[%s6665_s3 + $0x7d8] sm:$0xff]  ;;  %v5731_v58 = vpop.f32.mrf.mxu3  ;;  %v5745_v59 = vpop.f32.mrf.mxu1 }
 0x211   : > { %2175 = vmatpush.msrb.mxu0 %v1620_v16 }
 0x212   : > { %2211 = vmatpush.msra.mxu2 %v1680_v19 }
 0x214   : > { %1920 = vmatmul.f32.gmra.mxu0 %v5434_v24  ;;  %2212 = vmatpush.msra.mxu2 %v1676_v7 }
 0x215   : > { %1952 = vmatmul.f32.gmra.mxu2 %v5436_v25  ;;  %2162 = vmatmul.f32.gmra.mxu3 %v4927_v54  ;;  %v1616_v54 = vld [vmem:[%s6665_s3 + $0x5d8] sm:$0xff] }
 0x216   : > { %2176 = vmatpush.msrb.mxu0 %v1616_v54 }
 0x218   : > { %2130 = vmatmul.f32.gmra.mxu1 %v4940_v49  ;;  %v1672_v49 = vld [vmem:[%s6665_s3 + $0x798] sm:$0xff]  ;;  %2177 = vmatpush.msrb.mxu0 %v1612_v2  ;;  %v5742_v5 = vpop.f32.mrf.mxu3  ;;  %v5754_v43 = vpop.f32.mrf.mxu1 }
 0x219   : > { %2213 = vmatpush.msra.mxu2 %v1672_v49 }
 0x21b   : > { %2214 = vmatpush.msra.mxu2 %v1668_v4 }
 0x21c   : > { %1923 = vmatmul.f32.gmra.mxu0 %v5478_v29 }
 0x21d   : > { %1955 = vmatmul.f32.gmra.mxu2 %v5480_v31  ;;  %2165 = vmatmul.f32.gmra.mxu3 %v4953_v56  ;;  %v1608_v56 = vld [vmem:[%s6665_s3 + $0x598] sm:$0xff] }
 0x21e   : > { %2178 = vmatpush.msrb.mxu0 %v1608_v56  ;;  %2215 = vmatpush.msra.mxu2 %v1664_v60 }
 0x220   : > { %2133 = vmatmul.f32.gmra.mxu1 %v4968_v39  ;;  %v1604_v39 = vld [vmem:[%s6665_s3 + $0x578] sm:$0xff]  ;;  %2216 = vmatpush.msra.mxu2 %v1660_v13  ;;  %v5752_v30 = vpop.f32.mrf.mxu3  ;;  %v5766_v53 = vpop.f32.mrf.mxu1  ;;  %v2465_v13 = vld [vmem:[#allocation5 + $0x1a0] sm:$0xff] }
 0x221   : > { %2179 = vmatpush.msrb.mxu0 %v1604_v39  ;;  %v2469_v39 = vld [vmem:[#allocation5 + $0x1c0] sm:$0xff] }
 0x223   : > { %2180 = vmatpush.msrb.mxu0 %v1600_v12  ;;  %v2601_v12 = vld [vmem:[#allocation5 + $0x5e0] sm:$0xff] }
 0x224   : > { %1926 = vmatmul.f32.gmra.mxu0 %v5513_v51 }
 0x225   : > { %1958 = vmatmul.f32.gmra.mxu2 %v5515_v8  ;;  %2168 = vmatmul.f32.gmra.mxu3 %v4993_v15  ;;  %v1656_v15 = vld [vmem:[%s6665_s3 + $0x718] sm:$0xff] }
 0x226   : > { %2181 = vmatpush.msrb.mxu0 %v1596_v36  ;;  %2217 = vmatpush.msra.mxu2 %v1656_v15  ;;  %v2597_v36 = vld [vmem:[#allocation5 + $0x5c0] sm:$0xff] }
 0x227   : > { %v2593_v15 = vld [vmem:[#allocation5 + $0x5a0] sm:$0xff] }
 0x228   : > { %2136 = vmatmul.f32.gmra.mxu1 %v5015_v14  ;;  %v1588_v14 = vld [vmem:[%s6665_s3 + $0x4f8] sm:$0xff]  ;;  %2182 = vmatpush.msrb.mxu0 %v1592_v50  ;;  %v5762_v6 = vpop.f32.mrf.mxu3 }
 0x229   : > { %2218 = vmatpush.msra.mxu2 %v1652_v18 }
 0x22a   : > { %2183 = vmatpush.msrb.mxu0 %v1588_v14  ;;  %v2457_v14 = vld [vmem:[#allocation5 + $0x160] sm:$0xff] }
 0x22c   : > { %2051 = vmatmul.f32.vlgmr.msra.gmra.mxu0 %v5284_v1 }
 0x22d   : > { %1961 = vmatmul.f32.gmra.mxu2 %v5542_v11  ;;  %2171 = vmatmul.f32.gmra.mxu3 %v5051_v23  ;;  %v1648_v23 = vld [vmem:[%s6665_s3 + $0x6d8] sm:$0xff] }
 0x22e   : > { %2184 = vmatpush.msrb.mxu0 %v1584_v46  ;;  %2219 = vmatpush.msra.mxu2 %v1648_v23  ;;  %v2589_v46 = vld [vmem:[#allocation5 + $0x580] sm:$0xff] }
 0x22f   : > { %v2453_v23 = vld [vmem:[#allocation5 + $0x140] sm:$0xff] }
 0x230   : > { %2220 = vmatpush.msra.mxu2 %v1644_v3  ;;  %2185 = vmatpush.msrb.mxu0 %v1580_v22  ;;  %v5776_v16 = vpop.f32.mrf.mxu3  ;;  %v2585_v22 = vld [vmem:[#allocation5 + $0x560] sm:$0xff] }
 0x232   : > { %2221 = vmatpush.msra.mxu2 %v1640_v57  ;;  %2186 = vmatpush.msrb.mxu0 %v1576_v20  ;;  %v2581_v20 = vld [vmem:[#allocation5 + $0x540] sm:$0xff] }
 0x233   : > { %v2445_v57 = vld [vmem:[#allocation5 + $0x100] sm:$0xff] }
 0x234   : > { %2054 = vmatmul.f32.gmra.mxu0 %v5334_v42  ;;  %2222 = vmatpush.msra.mxu2 %v1636_v61  ;;  %v2441_v61 = vld [vmem:[#allocation5 + $0xe0] sm:$0xff] }
 0x235   : > { %2086 = vmatmul.f32.vlgmr.msrb.gmra.mxu2 %v5336_v62  ;;  %2187 = vmatpush.msrb.mxu0 %v1572_v33 }
 0x236   : > { %2223 = vmatpush.msra.mxu2 %v1632_v38  ;;  %v2437_v38 = vld [vmem:[#allocation5 + $0xc0] sm:$0xff] }
 0x237   : > { %2188 = vmatpush.msrb.mxu0 %v1568_v48  ;;  %v2577_v48 = vld [vmem:[#allocation5 + $0x520] sm:$0xff] }
 0x238   : > { %2224 = vmatpush.msra.mxu2 %v1628_v17  ;;  %v5786_v49 = vpop.f32.mrf.mxu3 }
 0x239   : > { %2189 = vmatpush.msrb.mxu0 %v1564_v63 }
 0x23a   : > { %2225 = vmatpush.msra.mxu2 %v1624_v52  ;;  %v2569_v52 = vld [vmem:[#allocation5 + $0x4e0] sm:$0xff] }
 0x23b   : > { %2190 = vmatpush.msrb.mxu0 %v1560_v27  ;;  %v2573_v27 = vld [vmem:[#allocation5 + $0x500] sm:$0xff] }
 0x23c   : > { %2057 = vmatmul.f32.gmra.mxu0 %v5381_v34 }
 0x23d   : > { %2089 = vmatmul.f32.gmra.mxu2 %v5383_v35  ;;  %2733 = vmatpush.msra.mxu0 %v2601_v12  ;;  %v2565_v12 = vld [vmem:[#allocation5 + $0x4c0] sm:$0xff] }
 0x23f   : > { %2734 = vmatpush.msra.mxu0 %v2597_v36 }
 0x241   : > { %2735 = vmatpush.msra.mxu0 %v2593_v15 }
 0x243   : > { %2736 = vmatpush.msra.mxu0 %v2589_v46  ;;  %v2557_v46 = vld [vmem:[#allocation5 + $0x480] sm:$0xff] }
 0x244   : > { %2060 = vmatmul.f32.gmra.mxu0 %v5434_v24 }
 0x245   : > { %2092 = vmatmul.f32.gmra.mxu2 %v5436_v25  ;;  %2737 = vmatpush.msra.mxu0 %v2585_v22  ;;  %v2553_v22 = vld [vmem:[#allocation5 + $0x460] sm:$0xff] }
 0x247   : > { %2738 = vmatpush.msra.mxu0 %v2581_v20  ;;  %v2549_v20 = vld [vmem:[#allocation5 + $0x440] sm:$0xff] }
 0x249   : > { %v5740_v9 = vpop.f32.mrf.mxu0  ;;  %2739 = vmatpush.msra.mxu0 %v2577_v48 }
 0x24b   : > { %2740 = vmatpush.msra.mxu0 %v2573_v27 }
 0x24c   : > { %2063 = vmatmul.f32.gmra.mxu0 %v5478_v29 }
 0x24d   : > { %2095 = vmatmul.f32.gmra.mxu2 %v5480_v31  ;;  %2741 = vmatpush.msra.mxu0 %v2569_v52 }
 0x24f   : > { %2742 = vmatpush.msra.mxu0 %v2565_v12  ;;  %v2537_v12 = vld [vmem:[#allocation5 + $0x3e0] sm:$0xff] }
 0x250   : > { %2701 = vmatpush.msra.mxu3 %v2537_v12 }
 0x251   : > { %v5748_v21 = vpop.f32.mrf.mxu0 }
 0x254   : > { %2066 = vmatmul.f32.gmra.mxu0 %v5513_v51 }
 0x255   : > { %2098 = vmatmul.f32.gmra.mxu2 %v5515_v8 }
 0x258   : > { %v5756_v47 = vpop.f32.mrf.mxu2 }
 0x259   : > { %v5758_v26 = vpop.f32.mrf.mxu0 }
 0x25c   : > { %2191 = vmatmul.f32.vlgmr.msrb.gmra.mxu0 %v5284_v1  ;;  %v5778_v1 = vpop.f32.mrf.mxu1 }
 0x25d   : > { %2101 = vmatmul.f32.gmra.mxu2 %v5542_v11 }
 0x260   : > { %v5764_v44 = vpop.f32.mrf.mxu2 }
 0x261   : > { %v5768_v10 = vpop.f32.mrf.mxu0 }
 0x264   : > { %2194 = vmatmul.f32.gmra.mxu0 %v5334_v42  ;;  %v5789_v42 = vpop.f32.mrf.mxu1 }
 0x265   : > { %2226 = vmatmul.f32.vlgmr.msra.gmra.mxu2 %v5336_v62 }
 0x268   : > { %v5772_v41 = vpop.f32.mrf.mxu2 }
 0x269   : > { %v5774_v19 = vpop.f32.mrf.mxu0 }
 0x26c   : > { %2197 = vmatmul.f32.gmra.mxu0 %v5381_v34  ;;  %v5798_v34 = vpop.f32.mrf.mxu3 }
 0x26d   : > { %2229 = vmatmul.f32.gmra.mxu2 %v5383_v35  ;;  %v5800_v35 = vpop.f32.mrf.mxu1 }
 0x270   : > { %v5782_v7 = vpop.f32.mrf.mxu2 }
 0x271   : > { %v5784_v54 = vpop.f32.mrf.mxu0 }
 0x274   : > { %2200 = vmatmul.f32.gmra.mxu0 %v5434_v24  ;;  %v5808_v24 = vpop.f32.mrf.mxu3 }
 0x275   : > { %2232 = vmatmul.f32.gmra.mxu2 %v5436_v25  ;;  %6700 = vst [vmem:[#allocation19_spill] sm:$0xff] %v5808_v24  ;;  %v5812_v60 = vpop.f32.mrf.mxu1  ;;  %v2521_v24 = vld [vmem:[#allocation5 + $0x360] sm:$0xff] }
 0x278   : > { %v5792_v62 = vpop.f32.mrf.mxu2 }
 0x279   : > { %v5794_v2 = vpop.f32.mrf.mxu0 }
 0x27c   : > { %2203 = vmatmul.f32.gmra.mxu0 %v5478_v29  ;;  %v5821_v18 = vpop.f32.mrf.mxu3 }
 0x27d   : > { %2235 = vmatmul.f32.gmra.mxu2 %v5480_v31  ;;  %v2473_v31 = vld [vmem:[#allocation5 + $0x1e0] sm:$0xff]  ;;  %6701 = vst [vmem:[#allocation20_spill] sm:$0xff] %v5821_v18  ;;  %v5823_v3 = vpop.f32.mrf.mxu1 }
 0x27e   : > { %2669 = vmatpush.msra.mxu1 %v2473_v31  ;;  %6702 = vst [vmem:[#allocation21_spill] sm:$0xff] %v5823_v3 }
 0x280   : > { %v5802_v4 = vpop.f32.mrf.mxu2  ;;  %2670 = vmatpush.msra.mxu1 %v2469_v39  ;;  %v2433_v39 = vld [vmem:[#allocation5 + $0xa0] sm:$0xff] }
 0x281   : > { %v5804_v56 = vpop.f32.mrf.mxu0 }
 0x282   : > { %2671 = vmatpush.msra.mxu1 %v2465_v13  ;;  %v2429_v13 = vld [vmem:[#allocation5 + $0x80] sm:$0xff] }
 0x284   : > { %2206 = vmatmul.f32.gmra.mxu0 %v5513_v51  ;;  %v2461_v51 = vld [vmem:[#allocation5 + $0x180] sm:$0xff]  ;;  %v2017_v17 = vpop.f32.mrf.mxu3 }
 0x285   : > { %2238 = vmatmul.f32.gmra.mxu2 %v5515_v8  ;;  %2672 = vmatpush.msra.mxu1 %v2461_v51  ;;  %v1982_v31 = vpop.f32.mrf.mxu1  ;;  %v2561_v51 = vld [vmem:[#allocation5 + $0x4a0] sm:$0xff] }
 0x286   : > { %2743 = vmatpush.msra.mxu0 %v2561_v51 }
 0x287   : > { %2673 = vmatpush.msra.mxu1 %v2457_v14  ;;  %v2425_v14 = vld [vmem:[#allocation5 + $0x60] sm:$0xff] }
 0x288   : > { %v5810_v25 = vpop.f32.mrf.mxu2  ;;  %2744 = vmatpush.msra.mxu0 %v2557_v46 }
 0x289   : > { %v5814_v29 = vpop.f32.mrf.mxu0  ;;  %2674 = vmatpush.msra.mxu1 %v2453_v23  ;;  %v2421_v23 = vld [vmem:[#allocation5 + $0x40] sm:$0xff] }
 0x28a   : > { %2745 = vmatpush.msra.mxu0 %v2553_v22  ;;  %v2470_v22 = vld [vmem:[#allocation5 + $0x1c8] sm:$0xff] }
 0x28c   : > { %2746 = vmatpush.msra.mxu0 %v2549_v20  ;;  %v2665_v20 = vld [vmem:[#allocation5 + $0x7e0] sm:$0xff] }
 0x28d   : > { %2241 = vmatmul.f32.gmra.mxu2 %v5542_v11  ;;  %v2449_v11 = vld [vmem:[#allocation5 + $0x120] sm:$0xff]  ;;  %v1985_v48 = vpop.f32.mrf.mxu1 }
 0x28e   : > { %2675 = vmatpush.msra.mxu1 %v2449_v11  ;;  %v2417_v11 = vld [vmem:[#allocation5 + $0x20] sm:$0xff]  ;;  %2765 = vmatpush.msrb.mxu2 %v2665_v20  ;;  %v2602_v20 = vld [vmem:[#allocation5 + $0x5e8] sm:$0xff] }
 0x290   : > { %v5817_v8 = vpop.f32.mrf.mxu2  ;;  %2676 = vmatpush.msra.mxu1 %v2445_v57  ;;  %v2020_v57 = vpop.f32.mrf.mxu3 }
 0x291   : > { %v5819_v50 = vpop.f32.mrf.mxu0 }
 0x292   : > { %2677 = vmatpush.msra.mxu1 %v2441_v61  ;;  %v2413_v61 = vld [vmem:[#allocation5] sm:$0xff] }
 0x294   : > { %2678 = vmatpush.msra.mxu1 %v2437_v38  ;;  %v2545_v38 = vld [vmem:[#allocation5 + $0x420] sm:$0xff] }
 0x295   : > { %2747 = vmatpush.msra.mxu0 %v2545_v38  ;;  %v2661_v38 = vld [vmem:[#allocation5 + $0x7c0] sm:$0xff] }
 0x296   : > { %2679 = vmatpush.msra.mxu1 %v2433_v39  ;;  %v2541_v39 = vld [vmem:[#allocation5 + $0x400] sm:$0xff]  ;;  %2766 = vmatpush.msrb.mxu2 %v2661_v38 }
 0x297   : > { %2748 = vmatpush.msra.mxu0 %v2541_v39  ;;  %v2466_v39 = vld [vmem:[#allocation5 + $0x1a8] sm:$0xff]  ;;  %v2525_v38 = vld [vmem:[#allocation5 + $0x380] sm:$0xff] }
 0x298   : > { %v5825_v33 = vpop.f32.mrf.mxu2  ;;  %2680 = vmatpush.msra.mxu1 %v2429_v13  ;;  %v5835_v13 = vpop.f32.mrf.mxu3 }
 0x299   : > { %v5827_v63 = vpop.f32.mrf.mxu0  ;;  %2861 = vmatpush.msrb.mxu0 %v2602_v20 }
 0x29a   : > { %6703 = vst [vmem:[#allocation22_spill] sm:$0xff] %v5827_v63  ;;  %2681 = vmatpush.msra.mxu1 %v2425_v14  ;;  %v5839_v14 = vpop.f32.mrf.mxu1  ;;  %v2657_v63 = vld [vmem:[#allocation5 + $0x7a0] sm:$0xff] }
 0x29b   : > { %2767 = vmatpush.msrb.mxu2 %v2657_v63 }
 0x29c   : > { %2682 = vmatpush.msra.mxu1 %v2421_v23  ;;  %v2474_v23 = vld [vmem:[#allocation5 + $0x1e8] sm:$0xff] }
 0x29e   : > { %2683 = vmatpush.msra.mxu1 %v2417_v11  ;;  %v2533_v11 = vld [vmem:[#allocation5 + $0x3c0] sm:$0xff] }
 0x29f   : > { %2702 = vmatpush.msra.mxu3 %v2533_v11 }
 0x2a0   : > { %v5829_v36 = vpop.f32.mrf.mxu2  ;;  %2684 = vmatpush.msra.mxu1 %v2413_v61  ;;  %v2529_v61 = vld [vmem:[#allocation5 + $0x3a0] sm:$0xff]  ;;  %v5843_v3 = vpop.f32.mrf.mxu3 }
 0x2a1   : > { %v5831_v15 = vpop.f32.mrf.mxu0  ;;  %2703 = vmatpush.msra.mxu3 %v2529_v61  ;;  %v1741_v61 = vadd.f32 %v5680_v28, %v5682_v40  ;;  %v2649_v28 = vld [vmem:[#allocation5 + $0x760] sm:$0xff]  ;;  %v2450_v40 = vld [vmem:[#allocation5 + $0x128] sm:$0xff] }
 0x2a2   : > { %6704 = vst [vmem:[#allocation23_spill] sm:$0xff] %v5831_v15  ;;  %2797 = vmatpush.msrb.mxu1 %v2474_v23  ;;  %v2462_v15 = vld [vmem:[#allocation5 + $0x188] sm:$0xff] }
 0x2a3   : > { %v2458_v23 = vld [vmem:[#allocation5 + $0x168] sm:$0xff]  ;;  %2704 = vmatpush.msra.mxu3 %v2525_v38 }
 0x2a4   : > { %2798 = vmatpush.msrb.mxu1 %v2470_v22  ;;  %v5847_v22 = vpop.f32.mrf.mxu1 }
 0x2a5   : > { %2705 = vmatpush.msra.mxu3 %v2521_v24  ;;  %v1744_v24 = vadd.f32 %v5707_v32, %v5712_v55  ;;  %v2641_v32 = vld [vmem:[#allocation5 + $0x720] sm:$0xff]  ;;  %v2582_v55 = vld [vmem:[#allocation5 + $0x548] sm:$0xff] }
 0x2a6   : > { %2799 = vmatpush.msrb.mxu1 %v2466_v39  ;;  %v2454_v39 = vld [vmem:[#allocation5 + $0x148] sm:$0xff] }
 0x2a8   : > { %v5833_v27 = vpop.f32.mrf.mxu2  ;;  %2800 = vmatpush.msrb.mxu1 %v2462_v15 }
 0x2a9   : > { %6705 = vst [vmem:[#allocation24_spill] sm:$0xff] %v5833_v27  ;;  %v2052_v52 = vpop.f32.mrf.mxu0  ;;  %v1738_v27 = vadd.f32 %v5642_v37, %v5651_v0  ;;  %v2653_v37 = vld [vmem:[#allocation5 + $0x780] sm:$0xff] }
 0x2aa   : > { %2801 = vmatpush.msrb.mxu1 %v2458_v23  ;;  %v2517_v0 = vld [vmem:[#allocation5 + $0x340] sm:$0xff]  ;;  %2768 = vmatpush.msrb.mxu2 %v2653_v37 }
 0x2ab   : > { %2706 = vmatpush.msra.mxu3 %v2517_v0  ;;  %v2513_v37 = vld [vmem:[#allocation5 + $0x320] sm:$0xff] }
 0x2ac   : > { %2802 = vmatpush.msrb.mxu1 %v2454_v39  ;;  %2769 = vmatpush.msrb.mxu2 %v2649_v28  ;;  %v2586_v39 = vld [vmem:[#allocation5 + $0x568] sm:$0xff]  ;;  %v2645_v0 = vld [vmem:[#allocation5 + $0x740] sm:$0xff] }
 0x2ad   : > { %2707 = vmatpush.msra.mxu3 %v2513_v37  ;;  %v2434_v28 = vld [vmem:[#allocation5 + $0xa8] sm:$0xff]  ;;  %v1747_v37 = vadd.f32 %v5731_v58, %v5736_v45 }
 0x2ae   : > { %2803 = vmatpush.msrb.mxu1 %v2450_v40  ;;  %2770 = vmatpush.msrb.mxu2 %v2645_v0  ;;  %v2578_v40 = vld [vmem:[#allocation5 + $0x528] sm:$0xff]  ;;  %v2027_v0 = vadd.f32 %v5843_v3, %v5847_v22 }
 0x2af   : > { %v2566_v58 = vld [vmem:[#allocation5 + $0x4c8] sm:$0xff]  ;;  %v1782_v45 = vadd.f32 %v5768_v10, %v1747_v37  ;;  %v2493_v10 = vld [vmem:[#allocation5 + $0x280] sm:$0xff] }
 0x2b0   : > { %v5837_v51 = vpop.f32.mrf.mxu2  ;;  %2771 = vmatpush.msrb.mxu2 %v2641_v32  ;;  %v2422_v32 = vld [vmem:[#allocation5 + $0x48] sm:$0xff] }
 0x2b1   : > { %6706 = vst [vmem:[#allocation25_spill] sm:$0xff] %v5837_v51  ;;  %v2055_v46 = vpop.f32.mrf.mxu0  ;;  %v2018_v51 = vadd.f32 %v2017_v17, %v1982_v31  ;;  %v1773_v17 = vadd.f32 %v5740_v9, %v1738_v27  ;;  %v2021_v31 = vadd.f32 %v2020_v57, %v1985_v48  ;;  %v2594_v9 = vld [vmem:[#allocation5 + $0x5a8] sm:$0xff] }
 0x2b2   : > { %v2446_v48 = vld [vmem:[#allocation5 + $0x108] sm:$0xff] }
 0x2b3   : > { %v2053_v11 = vadd.f32 %v2052_v52, %v2018_v51  ;;  %v2598_v52 = vld [vmem:[#allocation5 + $0x5c8] sm:$0xff]  ;;  %v1776_v51 = vadd.f32 %v5748_v21, %v1741_v61  ;;  %v1808_v23 = vadd.f32 %v5756_v47, %v1773_v17  ;;  %v2056_v20 = vadd.f32 %v2055_v46, %v2021_v31  ;;  %2804 = vmatpush.msrb.mxu1 %v2446_v48  ;;  %v5861_v61 = vpop.f32.mrf.mxu3  ;;  %v5865_v31 = vpop.f32.mrf.mxu1 }
 0x2b4   : > { %2862 = vmatpush.msrb.mxu0 %v2598_v52  ;;  %v2590_v21 = vld [vmem:[#allocation5 + $0x588] sm:$0xff]  ;;  %v2024_v17 = vadd.f32 %v5835_v13, %v5839_v14  ;;  %v2509_v52 = vld [vmem:[#allocation5 + $0x300] sm:$0xff] }
 0x2b5   : > { %v1811_v27 = vadd.f32 %v5764_v44, %v1776_v51  ;;  %v2442_v47 = vld [vmem:[#allocation5 + $0xe8] sm:$0xff]  ;;  %v1779_v51 = vadd.f32 %v5758_v26, %v1744_v24  ;;  %2708 = vmatpush.msra.mxu3 %v2509_v52  ;;  %v2633_v52 = vld [vmem:[#allocation5 + $0x6e0] sm:$0xff] }
 0x2b6   : > { %2863 = vmatpush.msrb.mxu0 %v2594_v9  ;;  %v2438_v44 = vld [vmem:[#allocation5 + $0xc8] sm:$0xff]  ;;  %2805 = vmatpush.msrb.mxu1 %v2442_v47 }
 0x2b7   : > { %v1814_v26 = vadd.f32 %v5772_v41, %v1779_v51  ;;  %v2501_v41 = vld [vmem:[#allocation5 + $0x2c0] sm:$0xff]  ;;  %v2558_v37 = vld [vmem:[#allocation5 + $0x488] sm:$0xff] }
 0x2b8   : > { %v2087_v12 = vpop.f32.mrf.mxu2  ;;  %2864 = vmatpush.msrb.mxu0 %v2590_v21  ;;  %2806 = vmatpush.msrb.mxu1 %v2438_v44  ;;  %v2574_v21 = vld [vmem:[#allocation5 + $0x508] sm:$0xff] }
 0x2b9   : > { %v5841_v18 = vpop.f32.mrf.mxu0  ;;  %v2088_v15 = vadd.f32 %v2087_v12, %v2053_v11  ;;  %v2426_v44 = vld [vmem:[#allocation5 + $0x68] sm:$0xff] }
 0x2ba   : > { %2865 = vmatpush.msrb.mxu0 %v2586_v39  ;;  %v2059_v13 = vadd.f32 %v5841_v18, %v2024_v17  ;;  %2807 = vmatpush.msrb.mxu1 %v2434_v28  ;;  %v2570_v17 = vld [vmem:[#allocation5 + $0x4e8] sm:$0xff] }
 0x2bb   : > { %v2245_v12 = vmax.f32 %v1808_v23, %v2088_v15  ;;  %v5901_v3 = vpop.f32.mrf.mxu3 }
 0x2bc   : > { %2866 = vmatpush.msrb.mxu0 %v2582_v55 }
 0x2bd   : > { %v2259_v15 = vrot.slane %v2245_v12, 1 }
 0x2be   : > { %2867 = vmatpush.msrb.mxu0 %v2578_v40 }
 0x2c0   : > { %v2090_v57 = vpop.f32.mrf.mxu2  ;;  %2868 = vmatpush.msrb.mxu0 %v2574_v21  ;;  %v2625_v21 = vld [vmem:[#allocation5 + $0x6a0] sm:$0xff] }
 0x2c1   : > { %v2091_v63 = vadd.f32 %v2090_v57, %v2056_v20  ;;  %v5855_v11 = vpop.f32.mrf.mxu0  ;;  %v2505_v20 = vld [vmem:[#allocation5 + $0x2e0] sm:$0xff] }
 0x2c2   : > { %2709 = vmatpush.msra.mxu3 %v2505_v20  ;;  %v2062_v22 = vadd.f32 %v5855_v11, %v2027_v0  ;;  %2869 = vmatpush.msrb.mxu0 %v2570_v17  ;;  %v5904_v20 = vpop.f32.mrf.mxu1  ;;  %v2489_v17 = vld [vmem:[#allocation5 + $0x260] sm:$0xff] }
 0x2c3   : > { %v5857_v46 = vmax.f32 %v1811_v27, %v2091_v63  ;;  %v2430_v63 = vld [vmem:[#allocation5 + $0x88] sm:$0xff] }
 0x2c4   : > { %2808 = vmatpush.msrb.mxu1 %v2430_v63  ;;  %2710 = vmatpush.msra.mxu3 %v2501_v41  ;;  %v2418_v63 = vld [vmem:[#allocation5 + $0x28] sm:$0xff] }
 0x2c5   : > { %v5868_v38 = vrot.slane %v5857_v46, 1  ;;  %v2306_v55 = vrot.slane %v5857_v46, 2  ;;  %2870 = vmatpush.msrb.mxu0 %v2566_v58 }
 0x2c6   : > { %2809 = vmatpush.msrb.mxu1 %v2426_v44 }
 0x2c7   : > { %v2267_v14 = vsel %vm2265_vm5, %v2259_v15, %v5868_v38  ;;  %v2293_v23 = vrot.slane %v5868_v38, 1 }
 0x2c8   : > { %v2093_v9 = vpop.f32.mrf.mxu2  ;;  %v2292_v57 = vrot.slane %v2267_v14, 1  ;;  %v5876_v48 = vsel %vm2383_vm6, %v2245_v12, %v2267_v14  ;;  %v2637_v12 = vld [vmem:[#allocation5 + $0x700] sm:$0xff]  ;;  %2810 = vmatpush.msrb.mxu1 %v2422_v32 }
 0x2c9   : > { %v2094_v18 = vadd.f32 %v2093_v9, %v2059_v13  ;;  %v5879_v27 = vpop.f32.mrf.mxu0  ;;  %2685 = vmatmul.f32.vlgmr.msra.gmra.mxu1 %v5876_v48  ;;  %2772 = vmatpush.msrb.mxu2 %v2637_v12  ;;  %v2497_v13 = vld [vmem:[#allocation5 + $0x2a0] sm:$0xff] }
 0x2ca   : > { %v2294_v47 = vsel %vm2265_vm5, %v2292_v57, %v2293_v23  ;;  %v2629_v14 = vld [vmem:[#allocation5 + $0x6c0] sm:$0xff]  ;;  %2711 = vmatpush.msra.mxu3 %v2497_v13  ;;  %v2562_v57 = vld [vmem:[#allocation5 + $0x4a8] sm:$0xff]  ;;  %2811 = vmatpush.msrb.mxu1 %v2418_v63  ;;  %v5947_v63 = vpop.f32.mrf.mxu1 }
 0x2cb   : > { %v5885_v39 = vmax.f32 %v1814_v26, %v2094_v18  ;;  %v5888_v24 = vsel %vm2383_vm6, %v2259_v15, %v2294_v47  ;;  %2773 = vmatpush.msrb.mxu2 %v2633_v52  ;;  %v1817_v47 = vadd.f32 %v5782_v7, %v1782_v45  ;;  %2871 = vmatpush.msrb.mxu0 %v2562_v57  ;;  %v2414_v7 = vld [vmem:[#allocation5 + $0x8] sm:$0xff]  ;;  %v2621_v32 = vld [vmem:[#allocation5 + $0x680] sm:$0xff] }
 0x2cc   : > { %2749 = vmatmul.f32.vlgmr.msra.gmra.mxu0 %v5888_v24  ;;  %2712 = vmatpush.msra.mxu3 %v2493_v10  ;;  %v2485_v13 = vld [vmem:[#allocation5 + $0x240] sm:$0xff] }
 0x2cd   : > { %v5897_v15 = vrot.slane %v5885_v39, 1  ;;  %v2307_v51 = vrot.slane %v5885_v39, 2  ;;  %v2322_v28 = vrot.slane %v5885_v39, 3  ;;  %2774 = vmatpush.msrb.mxu2 %v2629_v14  ;;  %v2554_v14 = vld [vmem:[#allocation5 + $0x468] sm:$0xff]  ;;  %2872 = vmatpush.msrb.mxu0 %v2558_v37  ;;  %v2617_v45 = vld [vmem:[#allocation5 + $0x660] sm:$0xff]  ;;  %v1753_v37 = vadd.f32 %v5752_v30, %v5754_v43  ;;  %v2467_v30 = vld [vmem:[#allocation5 + $0x1b0] sm:$0xff] }
 0x2ce   : > { %2713 = vmatpush.msra.mxu3 %v2489_v17  ;;  %2812 = vmatpush.msrb.mxu1 %v2414_v7  ;;  %v2033_v39 = vadd.f32 %v5901_v3, %v5904_v20 }
 0x2cf   : > { %v2308_v46 = vsel %vm585_vm1, %v2306_v55, %v2307_v51  ;;  %v2273_v40 = vsel %vm2265_vm5, %v5868_v38, %v5897_v15  ;;  %v2313_v9 = vrot.slane %v5897_v15, 2  ;;  %2775 = vmatpush.msrb.mxu2 %v2625_v21  ;;  %v2324_v52 = vrot.slane %v5897_v15, 3  ;;  %2873 = vmatpush.msrb.mxu0 %v2554_v14 }
 0x2d0   : > { %v2096_v26 = vpop.f32.mrf.mxu2  ;;  %v2388_v11 = vsel %vm591_vm4, %v5868_v38, %v2308_v46  ;;  %v2312_v18 = vrot.slane %v2273_v40, 2  ;;  %v1750_v15 = vadd.f32 %v5742_v5, %v5745_v59  ;;  %v2481_v46 = vld [vmem:[#allocation5 + $0x220] sm:$0xff]  ;;  %v2550_v40 = vld [vmem:[#allocation5 + $0x448] sm:$0xff]  ;;  %2714 = vmatpush.msra.mxu3 %v2485_v13  ;;  %v5942_v59 = vpop.f32.mrf.mxu3  ;;  %v1788_v43 = vadd.f32 %v5784_v54, %v1753_v37 }
 0x2d1   : > { %v2097_v12 = vadd.f32 %v2096_v26, %v2062_v22  ;;  %v5915_v41 = vpop.f32.mrf.mxu0  ;;  %v5920_v44 = vsel %vm2265_vm5, %v2388_v11, %v2322_v28  ;;  %2776 = vmatpush.msrb.mxu2 %v2621_v32  ;;  %v2030_v22 = vadd.f32 %v5861_v61, %v5865_v31  ;;  %v2477_v5 = vld [vmem:[#allocation5 + $0x200] sm:$0xff]  ;;  %2874 = vmatpush.msrb.mxu0 %v2550_v40  ;;  %v2546_v26 = vld [vmem:[#allocation5 + $0x428] sm:$0xff] }
 0x2d2   : > { %2688 = vmatmul.f32.gmra.mxu1 %v5920_v44  ;;  %v2314_v0 = vsel %vm585_vm1, %v2312_v18, %v2313_v9  ;;  %v2613_v9 = vld [vmem:[#allocation5 + $0x640] sm:$0xff]  ;;  %v1785_v10 = vadd.f32 %v5774_v19, %v1750_v15  ;;  %2715 = vmatpush.msra.mxu3 %v2481_v46  ;;  %v2538_v13 = vld [vmem:[#allocation5 + $0x3e8] sm:$0xff]  ;;  %v2068_v3 = vadd.f32 %v5915_v41, %v2033_v39  ;;  %v2463_v15 = vld [vmem:[#allocation5 + $0x190] sm:$0xff] }
 0x2d3   : > { %v5925_v55 = vmax.f32 %v1817_v47, %v2097_v12  ;;  %v2390_v51 = vsel %vm591_vm4, %v2293_v23, %v2314_v0  ;;  %v2065_v57 = vadd.f32 %v5879_v27, %v2030_v22  ;;  %2777 = vmatpush.msrb.mxu2 %v2617_v45  ;;  %v2609_v11 = vld [vmem:[#allocation5 + $0x620] sm:$0xff]  ;;  %v2475_v12 = vld [vmem:[#allocation5 + $0x1f0] sm:$0xff]  ;;  %2875 = vmatpush.msrb.mxu0 %v2546_v26  ;;  %v2526_v37 = vld [vmem:[#allocation5 + $0x388] sm:$0xff] }
 0x2d4   : > { %v5931_v58 = vsel %vm2265_vm5, %v2390_v51, %v2324_v52  ;;  %v1820_v18 = vadd.f32 %v5792_v62, %v1785_v10  ;;  %2716 = vmatpush.msra.mxu3 %v2477_v5  ;;  %v2605_v47 = vld [vmem:[#allocation5 + $0x600] sm:$0xff]  ;;  %v2542_v62 = vld [vmem:[#allocation5 + $0x408] sm:$0xff]  ;;  %2925 = vmatpush.msra.mxu1 %v2475_v12  ;;  %v2471_v0 = vld [vmem:[#allocation5 + $0x1d0] sm:$0xff]  ;;  %v1823_v22 = vadd.f32 %v5802_v4, %v1788_v43 }
 0x2d5   : > { %v2278_v38 = vrot.slane %v5925_v55, 1  ;;  %2752 = vmatmul.f32.gmra.mxu0 %v5931_v58  ;;  %v2330_v23 = vrot.slane %v5925_v55, 4  ;;  %2778 = vmatpush.msrb.mxu2 %v2613_v9  ;;  %v2339_v7 = vrot.slane %v5925_v55, 5  ;;  %v2459_v10 = vld [vmem:[#allocation5 + $0x170] sm:$0xff]  ;;  %v2662_v12 = vld [vmem:[#allocation5 + $0x7c8] sm:$0xff] }
 0x2d6   : > { %2876 = vmatpush.msrb.mxu0 %v2542_v62  ;;  %2926 = vmatpush.msra.mxu1 %v2471_v0  ;;  %v2603_v5 = vld [vmem:[#allocation5 + $0x5f0] sm:$0xff] }
 0x2d7   : > { %v5944_v31 = vrot.slane %v2278_v38, 4  ;;  %v5952_v19 = vsel %vm588_vm3, %v2322_v28, %v2330_v23  ;;  %2779 = vmatpush.msrb.mxu2 %v2609_v11  ;;  %2829 = vmatpush.msrb.mxu3 %v2538_v13  ;;  %v2455_v26 = vld [vmem:[#allocation5 + $0x150] sm:$0xff] }
 0x2d8   : > { %v2099_v61 = vpop.f32.mrf.mxu2  ;;  %2927 = vmatpush.msra.mxu1 %v2467_v30  ;;  %v2160_v40 = vpop.f32.mrf.mxu3  ;;  %2989 = vmatpush.msra.mxu0 %v2603_v5  ;;  %v2599_v62 = vld [vmem:[#allocation5 + $0x5d0] sm:$0xff] }
 0x2d9   : > { %v2100_v21 = vadd.f32 %v2099_v61, %v2065_v57  ;;  %v5954_v27 = vpop.f32.mrf.mxu0  ;;  %v5963_v28 = vsel %vm588_vm3, %v2324_v52, %v5944_v31  ;;  %2780 = vmatpush.msrb.mxu2 %v2605_v47  ;;  %v2125_v57 = vpop.f32.mrf.mxu1  ;;  %v2530_v47 = vld [vmem:[#allocation5 + $0x3a8] sm:$0xff]  ;;  %v2451_v39 = vld [vmem:[#allocation5 + $0x130] sm:$0xff] }
 0x2da   : > { %2691 = vmatmul.f32.gmra.mxu1 %v5952_v19  ;;  %2990 = vmatpush.msra.mxu0 %v2599_v62  ;;  %v2439_v5 = vld [vmem:[#allocation5 + $0xd0] sm:$0xff] }
 0x2db   : > { %v2253_v17 = vmax.f32 %v1820_v18, %v2100_v21  ;;  %2928 = vmatpush.msra.mxu1 %v2463_v15  ;;  %v2666_v21 = vld [vmem:[#allocation5 + $0x7e8] sm:$0xff] }
 0x2dc   : > { %2893 = vmatpush.msra.mxu2 %v2666_v21 }
 0x2dd   : > { %v2282_v32 = vrot.slane %v2253_v17, 1  ;;  %v2340_v51 = vrot.slane %v2253_v17, 5  ;;  %2755 = vmatmul.f32.gmra.mxu0 %v5963_v28  ;;  %v2355_v52 = vrot.slane %v2253_v17, 6  ;;  %2929 = vmatpush.msra.mxu1 %v2459_v10 }
 0x2de   : > { %2894 = vmatpush.msra.mxu2 %v2662_v12 }
 0x2df   : > { %v2341_v20 = vsel %vm2338_vm7, %v2339_v7, %v2340_v51  ;;  %v2283_v14 = vsel %vm2265_vm5, %v2278_v38, %v2282_v32  ;;  %v2346_v9 = vrot.slane %v2282_v32, 5  ;;  %2930 = vmatpush.msra.mxu1 %v2455_v26  ;;  %v2595_v51 = vld [vmem:[#allocation5 + $0x5b0] sm:$0xff] }
 0x2e0   : > { %v2102_v55 = vpop.f32.mrf.mxu2  ;;  %v2401_v45 = vsel %vm2400_vm8, %v2330_v23, %v2341_v20  ;;  %v2345_v41 = vrot.slane %v2283_v14, 5  ;;  %v2534_v23 = vld [vmem:[#allocation5 + $0x3c8] sm:$0xff]  ;;  %2991 = vmatpush.msra.mxu0 %v2595_v51  ;;  %v1884_v51 = vadd.f32 %v5786_v49, %v5789_v42 }
 0x2e1   : > { %v2103_v46 = vadd.f32 %v2102_v55, %v2068_v3  ;;  %v5974_v54 = vsel %vm585_vm1, %v2401_v45, %v2355_v52  ;;  %v5977_v61 = vpop.f32.mrf.mxu0  ;;  %2830 = vmatpush.msrb.mxu3 %v2534_v23  ;;  %v2158_v3 = vadd.f32 %v5942_v59, %v5947_v63  ;;  %2931 = vmatpush.msra.mxu1 %v2451_v39  ;;  %v2522_v55 = vld [vmem:[#allocation5 + $0x368] sm:$0xff]  ;;  %v2128_v10 = vpop.f32.mrf.mxu1 }
 0x2e2   : > { %2694 = vmatmul.f32.gmra.mxu1 %v5974_v54  ;;  %v2347_v17 = vsel %vm2338_vm7, %v2345_v41, %v2346_v9  ;;  %v1878_v45 = vadd.f32 %v5762_v6, %v5766_v53  ;;  %v1881_v63 = vadd.f32 %v5776_v16, %v5778_v1  ;;  %v2587_v41 = vld [vmem:[#allocation5 + $0x570] sm:$0xff]  ;;  %v2161_v6 = vadd.f32 %v2160_v40, %v2125_v57  ;;  %v2514_v16 = vld [vmem:[#allocation5 + $0x328] sm:$0xff] }
 0x2e3   : > { %v2255_v38 = vmax.f32 %v1823_v22, %v2103_v46  ;;  %2831 = vmatpush.msrb.mxu3 %v2530_v47  ;;  %v2403_v20 = vsel %vm2400_vm8, %v5944_v31, %v2347_v17  ;;  %v2193_v15 = vadd.f32 %v5954_v27, %v2158_v3  ;;  %v2443_v31 = vld [vmem:[#allocation5 + $0xf0] sm:$0xff]  ;;  %v2163_v22 = vpop.f32.mrf.mxu3  ;;  %v2518_v46 = vld [vmem:[#allocation5 + $0x348] sm:$0xff] }
 0x2e4   : > { %v1913_v9 = vadd.f32 %v5794_v2, %v1878_v45  ;;  %v2658_v27 = vld [vmem:[#allocation5 + $0x7a8] sm:$0xff]  ;;  %v1916_v23 = vadd.f32 %v5804_v56, %v1881_v63  ;;  %v2583_v1 = vld [vmem:[#allocation5 + $0x550] sm:$0xff] }
 0x2e5   : > { %v5979_v4 = vrot.slane %v2255_v38, 1  ;;  %v2359_v11 = vrot.slane %v2255_v38, 6  ;;  %v2375_v18 = vrot.slane %v2255_v38, 7  ;;  %2832 = vmatpush.msrb.mxu3 %v2526_v37  ;;  %v2654_v38 = vld [vmem:[#allocation5 + $0x788] sm:$0xff]  ;;  %2895 = vmatpush.msra.mxu2 %v2658_v27  ;;  %v2435_v56 = vld [vmem:[#allocation5 + $0xb0] sm:$0xff] }
 0x2e6   : > { %v2650_v40 = vld [vmem:[#allocation5 + $0x768] sm:$0xff]  ;;  %v1951_v12 = vadd.f32 %v5817_v8, %v1916_v23  ;;  %v2431_v37 = vld [vmem:[#allocation5 + $0x90] sm:$0xff] }
 0x2e7   : > { %v2360_v0 = vsel %vm591_vm4, %v2355_v52, %v2359_v11  ;;  %v2289_v7 = vsel %vm2265_vm5, %v2282_v32, %v5979_v4  ;;  %v2447_v52 = vld [vmem:[#allocation5 + $0x110] sm:$0xff]  ;;  %v2363_v59 = vrot.slane %v5979_v4, 6  ;;  %2833 = vmatpush.msrb.mxu3 %v2522_v55  ;;  %v1948_v11 = vadd.f32 %v5810_v25, %v1913_v9  ;;  %2896 = vmatpush.msra.mxu2 %v2654_v38  ;;  %v2510_v47 = vld [vmem:[#allocation5 + $0x308] sm:$0xff] }
 0x2e8   : > { %v2227_v13 = vpop.f32.mrf.mxu2  ;;  %v5986_v30 = vsel %vm2338_vm7, %v2360_v0, %v2375_v18  ;;  %v2357_v43 = vrot.slane %v2289_v7, 6  ;;  %v2591_v32 = vld [vmem:[#allocation5 + $0x590] sm:$0xff]  ;;  %2932 = vmatpush.msra.mxu1 %v2447_v52  ;;  %v2196_v18 = vadd.f32 %v5977_v61, %v2161_v6  ;;  %v2377_v21 = vrot.slane %v5979_v4, 7  ;;  %v2506_v39 = vld [vmem:[#allocation5 + $0x2e8] sm:$0xff] }
 0x2e9   : > { %2992 = vmatpush.msra.mxu0 %v2591_v32  ;;  %v2228_v53 = vadd.f32 %v2227_v13, %v2193_v15  ;;  %2834 = vmatpush.msrb.mxu3 %v2518_v46  ;;  %v2198_v26 = vpop.f32.mrf.mxu0  ;;  %v2579_v25 = vld [vmem:[#allocation5 + $0x530] sm:$0xff]  ;;  %v2502_v7 = vld [vmem:[#allocation5 + $0x2c8] sm:$0xff]  ;;  %v2164_v13 = vadd.f32 %v2163_v22, %v2128_v10  ;;  %v1919_v15 = vadd.f32 %v5814_v29, %v1884_v51 }
 0x2ea   : > { %2697 = vmatmul.f32.gmra.mxu1 %v5986_v30  ;;  %v5994_v14 = vsel %vm585_vm1, %v2403_v20, %v2357_v43  ;;  %v2364_v2 = vsel %vm591_vm4, %v2357_v43, %v2363_v59  ;;  %2897 = vmatpush.msra.mxu2 %v2650_v40  ;;  %v2575_v0 = vld [vmem:[#allocation5 + $0x510] sm:$0xff]  ;;  %v2646_v20 = vld [vmem:[#allocation5 + $0x748] sm:$0xff]  ;;  %v2131_v59 = vpop.f32.mrf.mxu1 }
 0x2eb   : > { %2758 = vmatmul.f32.gmra.mxu0 %v5994_v14  ;;  %2933 = vmatpush.msra.mxu1 %v2443_v31  ;;  %v2246_v17 = vmax.f32 %v1948_v11, %v2228_v53  ;;  %v6012_v61 = vsel %vm2338_vm7, %v2364_v2, %v2377_v21  ;;  %v2427_v8 = vld [vmem:[#allocation5 + $0x70] sm:$0xff]  ;;  %v2642_v52 = vld [vmem:[#allocation5 + $0x728] sm:$0xff]  ;;  %v2166_v55 = vpop.f32.mrf.mxu3  ;;  %v2199_v31 = vadd.f32 %v2198_v26, %v2164_v13 }
 0x2ec   : > { %2993 = vmatpush.msra.mxu0 %v2587_v41  ;;  %2835 = vmatpush.msrb.mxu3 %v2514_v16  ;;  %v2571_v32 = vld [vmem:[#allocation5 + $0x4f0] sm:$0xff]  ;;  %v2638_v63 = vld [vmem:[#allocation5 + $0x708] sm:$0xff]  ;;  %v1954_v29 = vadd.f32 %v5825_v33, %v1919_v15  ;;  %v2167_v11 = vadd.f32 %v2166_v55, %v2131_v59 }
 0x2ed   : > { %2934 = vmatpush.msra.mxu1 %v2439_v5  ;;  %v2260_v43 = vrot.slane %v2246_v17, 1  ;;  %2898 = vmatpush.msra.mxu2 %v2646_v20  ;;  %v2423_v45 = vld [vmem:[#allocation5 + $0x50] sm:$0xff]  ;;  %v2498_v10 = vld [vmem:[#allocation5 + $0x2a8] sm:$0xff] }
 0x2ee   : > { %2994 = vmatpush.msra.mxu0 %v2583_v1  ;;  %2836 = vmatpush.msrb.mxu3 %v2510_v47  ;;  %v2567_v53 = vld [vmem:[#allocation5 + $0x4d0] sm:$0xff]  ;;  %v2634_v38 = vld [vmem:[#allocation5 + $0x6e8] sm:$0xff]  ;;  %v1887_v1 = vadd.f32 %v5798_v34, %v5800_v35 }
 0x2ef   : > { %2935 = vmatpush.msra.mxu1 %v2435_v56  ;;  %2899 = vmatpush.msra.mxu2 %v2642_v52  ;;  %v2419_v5 = vld [vmem:[#allocation5 + $0x30] sm:$0xff]  ;;  %v2494_v16 = vld [vmem:[#allocation5 + $0x288] sm:$0xff] }
 0x2f0   : > { %v2230_v57 = vpop.f32.mrf.mxu2  ;;  %2995 = vmatpush.msra.mxu0 %v2579_v25  ;;  %2837 = vmatpush.msrb.mxu3 %v2506_v39  ;;  %v2563_v26 = vld [vmem:[#allocation5 + $0x4b0] sm:$0xff]  ;;  %v2630_v2 = vld [vmem:[#allocation5 + $0x6c8] sm:$0xff] }
 0x2f1   : > { %v2231_v62 = vadd.f32 %v2230_v57, %v2196_v18  ;;  %2936 = vmatpush.msra.mxu1 %v2431_v37  ;;  %v2201_v22 = vpop.f32.mrf.mxu0  ;;  %2900 = vmatpush.msra.mxu2 %v2638_v63  ;;  %v2415_v18 = vld [vmem:[#allocation5 + $0x10] sm:$0xff]  ;;  %v2490_v47 = vld [vmem:[#allocation5 + $0x268] sm:$0xff] }
 0x2f2   : > { %2813 = vmatmul.f32.vlgmr.msrb.gmra.mxu1 %v5876_v48  ;;  %2996 = vmatpush.msra.mxu0 %v2575_v0  ;;  %v2559_v56 = vld [vmem:[#allocation5 + $0x490] sm:$0xff]  ;;  %v2202_v34 = vadd.f32 %v2201_v22, %v2167_v11  ;;  %v2626_v35 = vld [vmem:[#allocation5 + $0x6a8] sm:$0xff]  ;;  %v2134_v52 = vpop.f32.mrf.mxu1  ;;  %v6709_v11 = vld [vmem:[#allocation24_spill] sm:$0xff] }
 0x2f3   : > { %v6014_v4 = vmax.f32 %v1951_v12, %v2231_v62  ;;  %2761 = vmatmul.f32.gmra.mxu0 %v6012_v61  ;;  %2937 = vmatpush.msra.mxu1 %v2427_v8  ;;  %v1922_v12 = vadd.f32 %v5819_v50, %v1887_v1  ;;  %v2169_v39 = vpop.f32.mrf.mxu3  ;;  %v2486_v8 = vld [vmem:[#allocation5 + $0x248] sm:$0xff] }
 0x2f4   : > { %2838 = vmatpush.msrb.mxu3 %v2502_v7  ;;  %2997 = vmatpush.msra.mxu0 %v2571_v32  ;;  %v2622_v20 = vld [vmem:[#allocation5 + $0x688] sm:$0xff] }
 0x2f5   : > { %v6020_v3 = vrot.slane %v6014_v4, 1  ;;  %2938 = vmatpush.msra.mxu1 %v2423_v45  ;;  %v2309_v40 = vrot.slane %v6014_v4, 2  ;;  %2901 = vmatpush.msra.mxu2 %v2634_v38  ;;  %v1957_v7 = vadd.f32 %v5829_v36, %v1922_v12  ;;  %v2482_v15 = vld [vmem:[#allocation5 + $0x228] sm:$0xff]  ;;  %v2539_v38 = vld [vmem:[#allocation5 + $0x3f0] sm:$0xff] }
 0x2f6   : > { %2839 = vmatpush.msrb.mxu3 %v2498_v10  ;;  %2998 = vmatpush.msra.mxu0 %v2567_v53  ;;  %v2478_v22 = vld [vmem:[#allocation5 + $0x208] sm:$0xff] }
 0x2f7   : > { %v2269_v49 = vsel %vm2265_vm5, %v2260_v43, %v6020_v3  ;;  %v2296_v42 = vrot.slane %v6020_v3, 1  ;;  %2939 = vmatpush.msra.mxu1 %v2419_v5  ;;  %2902 = vmatpush.msra.mxu2 %v2630_v2  ;;  %v2614_v53 = vld [vmem:[#allocation5 + $0x648] sm:$0xff] }
 0x2f8   : > { %v2233_v46 = vpop.f32.mrf.mxu2  ;;  %v2295_v41 = vrot.slane %v2269_v49, 1  ;;  %v6027_v9 = vsel %vm2383_vm6, %v2246_v17, %v2269_v49  ;;  %2999 = vmatpush.msra.mxu0 %v2563_v26  ;;  %2840 = vmatpush.msrb.mxu3 %v2494_v16  ;;  %v2618_v49 = vld [vmem:[#allocation5 + $0x668] sm:$0xff] }
 0x2f9   : > { %v2234_v6 = vadd.f32 %v2233_v46, %v2199_v31  ;;  %2717 = vmatmul.f32.vlgmr.msra.gmra.mxu3 %v6027_v9  ;;  %2940 = vmatpush.msra.mxu1 %v2415_v18  ;;  %v2204_v32 = vpop.f32.mrf.mxu0  ;;  %v2551_v31 = vld [vmem:[#allocation5 + $0x450] sm:$0xff]  ;;  %v2476_v46 = vld [vmem:[#allocation5 + $0x1f8] sm:$0xff]  ;;  %v6708_v5 = vld [vmem:[#allocation22_spill] sm:$0xff] }
 0x2fa   : > { %2816 = vmatmul.f32.gmra.mxu1 %v5920_v44  ;;  %v2297_v27 = vsel %vm2265_vm5, %v2295_v41, %v2296_v42  ;;  %3000 = vmatpush.msra.mxu0 %v2559_v56  ;;  %v6707_v41 = vld [vmem:[#allocation19_spill] sm:$0xff]  ;;  %v2610_v1 = vld [vmem:[#allocation5 + $0x628] sm:$0xff] }
 0x2fb   : > { %v6035_v23 = vmax.f32 %v1954_v29, %v2234_v6  ;;  %2877 = vmatmul.f32.vlgmr.msrb.gmra.mxu0 %v5888_v24  ;;  %v6039_v33 = vsel %vm2383_vm6, %v2260_v43, %v2297_v27  ;;  %2841 = vmatpush.msrb.mxu3 %v2490_v47  ;;  %v2555_v43 = vld [vmem:[#allocation5 + $0x470] sm:$0xff]  ;;  %v1890_v10 = vadd.f32 %v6707_v41, %v5812_v60  ;;  %v2472_v27 = vld [vmem:[#allocation5 + $0x1d8] sm:$0xff]  ;;  %v2172_v56 = vpop.f32.mrf.mxu3 }
 0x2fc   : > { %2781 = vmatmul.f32.vlgmr.msrb.gmra.mxu2 %v6039_v33  ;;  %3001 = vmatpush.msra.mxu0 %v2555_v43  ;;  %v2170_v29 = vadd.f32 %v2169_v39, %v2134_v52  ;;  %v2535_v47 = vld [vmem:[#allocation5 + $0x3d0] sm:$0xff]  ;;  %v2604_v52 = vld [vmem:[#allocation5 + $0x5f8] sm:$0xff] }
 0x2fd   : > { %v6046_v57 = vrot.slane %v6035_v23, 1  ;;  %v2310_v21 = vrot.slane %v6035_v23, 2  ;;  %v2323_v62 = vrot.slane %v6035_v23, 3  ;;  %2903 = vmatpush.msra.mxu2 %v2626_v35  ;;  %2842 = vmatpush.msrb.mxu3 %v2486_v8  ;;  %v1925_v23 = vadd.f32 %v6708_v5, %v1890_v10  ;;  %v2464_v35 = vld [vmem:[#allocation5 + $0x198] sm:$0xff]  ;;  %v6713_v10 = vld [vmem:[#allocation25_spill] sm:$0xff] }
 0x2fe   : > { %3002 = vmatpush.msra.mxu0 %v2551_v31  ;;  %v2205_v26 = vadd.f32 %v2204_v32, %v2170_v29  ;;  %3053 = vmatpush.msrb.mxu1 %v2476_v46  ;;  %v6712_v32 = vld [vmem:[#allocation23_spill] sm:$0xff]  ;;  %v2456_v41 = vld [vmem:[#allocation5 + $0x158] sm:$0xff] }
 0x2ff   : > { %v2311_v17 = vsel %vm585_vm1, %v2309_v40, %v2310_v21  ;;  %v2275_v25 = vsel %vm2265_vm5, %v6020_v3, %v6046_v57  ;;  %v2316_v37 = vrot.slane %v6046_v57, 2  ;;  %v2325_v45 = vrot.slane %v6046_v57, 3  ;;  %2904 = vmatpush.msra.mxu2 %v2622_v20  ;;  %2843 = vmatpush.msrb.mxu3 %v2482_v15  ;;  %v2543_v57 = vld [vmem:[#allocation5 + $0x410] sm:$0xff]  ;;  %v2468_v21 = vld [vmem:[#allocation5 + $0x1b8] sm:$0xff] }
 0x300   : > { %v2236_v4 = vpop.f32.mrf.mxu2  ;;  %v2389_v50 = vsel %vm591_vm4, %v6020_v3, %v2311_v17  ;;  %v2315_v0 = vrot.slane %v2275_v25, 2  ;;  %v1960_v18 = vadd.f32 %v6709_v11, %v1925_v23  ;;  %3054 = vmatpush.msrb.mxu1 %v2472_v27  ;;  %v6710_v17 = vld [vmem:[#allocation21_spill] sm:$0xff]  ;;  %v2460_v20 = vld [vmem:[#allocation5 + $0x178] sm:$0xff]  ;;  %v2527_v15 = vld [vmem:[#allocation5 + $0x390] sm:$0xff] }
 0x301   : > { %v2237_v51 = vadd.f32 %v2236_v4, %v2202_v34  ;;  %v6060_v13 = vsel %vm2265_vm5, %v2389_v50, %v2323_v62  ;;  %2905 = vmatpush.msra.mxu2 %v2618_v49  ;;  %2844 = vmatpush.msrb.mxu3 %v2478_v22  ;;  %v2606_v34 = vld [vmem:[#allocation5 + $0x608] sm:$0xff]  ;;  %v2207_v39 = vpop.f32.mrf.mxu0  ;;  %v2667_v50 = vld [vmem:[#allocation5 + $0x7f0] sm:$0xff]  ;;  %v2600_v27 = vld [vmem:[#allocation5 + $0x5d8] sm:$0xff] }
 0x302   : > { %2720 = vmatmul.f32.gmra.mxu3 %v6060_v13  ;;  %2819 = vmatmul.f32.gmra.mxu1 %v5952_v19  ;;  %v2317_v55 = vsel %vm585_vm1, %v2315_v0, %v2316_v37  ;;  %v2137_v37 = vpop.f32.mrf.mxu1  ;;  %v2531_v0 = vld [vmem:[#allocation5 + $0x3b0] sm:$0xff]  ;;  %v2448_v11 = vld [vmem:[#allocation5 + $0x118] sm:$0xff] }
 0x303   : > { %v6066_v59 = vmax.f32 %v1957_v7, %v2237_v51  ;;  %2880 = vmatmul.f32.gmra.mxu0 %v5931_v58  ;;  %v2391_v36 = vsel %vm591_vm4, %v2296_v42, %v2317_v55  ;;  %v2547_v42 = vld [vmem:[#allocation5 + $0x430] sm:$0xff]  ;;  %2906 = vmatpush.msra.mxu2 %v2614_v53  ;;  %v2173_v8 = vadd.f32 %v2172_v56, %v2137_v37  ;;  %v2592_v56 = vld [vmem:[#allocation5 + $0x598] sm:$0xff] }
 0x304   : > { %v6073_v63 = vsel %vm2265_vm5, %v2391_v36, %v2325_v45  ;;  %3003 = vmatpush.msra.mxu0 %v2547_v42  ;;  %2957 = vmatpush.msra.mxu3 %v2539_v38  ;;  %v2659_v38 = vld [vmem:[#allocation5 + $0x7b0] sm:$0xff] }
 0x305   : > { %v2279_v6 = vrot.slane %v6066_v59, 1  ;;  %2784 = vmatmul.f32.gmra.mxu2 %v6073_v63  ;;  %v2331_v3 = vrot.slane %v6066_v59, 4  ;;  %3055 = vmatpush.msrb.mxu1 %v2468_v21  ;;  %v2342_v7 = vrot.slane %v6066_v59, 5  ;;  %v2208_v36 = vadd.f32 %v2207_v39, %v2173_v8  ;;  %v2523_v23 = vld [vmem:[#allocation5 + $0x370] sm:$0xff] }
 0x306   : > { %2907 = vmatpush.msra.mxu2 %v2610_v1  ;;  %3004 = vmatpush.msra.mxu0 %v2543_v57  ;;  %v2655_v1 = vld [vmem:[#allocation5 + $0x790] sm:$0xff] }
 0x307   : > { %v6081_v16 = vrot.slane %v2279_v6, 4  ;;  %v6085_v40 = vsel %vm588_vm3, %v2323_v62, %v2331_v3  ;;  %v6711_v62 = vld [vmem:[#allocation20_spill] sm:$0xff]  ;;  %2958 = vmatpush.msra.mxu3 %v2535_v47  ;;  %3056 = vmatpush.msrb.mxu1 %v2464_v35  ;;  %v2651_v47 = vld [vmem:[#allocation5 + $0x770] sm:$0xff] }
 0x308   : > { %v2239_v60 = vpop.f32.mrf.mxu2  ;;  %v1893_v25 = vadd.f32 %v6711_v62, %v6710_v17  ;;  %2908 = vmatpush.msra.mxu2 %v2606_v34  ;;  %3117 = vmatpush.msrb.mxu0 %v2604_v52  ;;  %v2444_v34 = vld [vmem:[#allocation5 + $0xf8] sm:$0xff]  ;;  %v2515_v35 = vld [vmem:[#allocation5 + $0x330] sm:$0xff] }
 0x309   : > { %v2240_v2 = vadd.f32 %v2239_v60, %v2205_v26  ;;  %v6096_v4 = vsel %vm588_vm3, %v2325_v45, %v6081_v16  ;;  %v2663_v45 = vld [vmem:[#allocation5 + $0x7d0] sm:$0xff]  ;;  %2959 = vmatpush.msra.mxu3 %v2531_v0  ;;  %3057 = vmatpush.msrb.mxu1 %v2460_v20  ;;  %v2596_v60 = vld [vmem:[#allocation5 + $0x5b8] sm:$0xff] }
 0x30a   : > { %2723 = vmatmul.f32.gmra.mxu3 %v6085_v40  ;;  %2822 = vmatmul.f32.gmra.mxu1 %v5974_v54  ;;  %v1928_v55 = vadd.f32 %v6712_v32, %v1893_v25  ;;  %v2440_v0 = vld [vmem:[#allocation5 + $0xd8] sm:$0xff]  ;;  %v2643_v52 = vld [vmem:[#allocation5 + $0x730] sm:$0xff] }
 0x30b   : > { %v6089_v12 = vmax.f32 %v1960_v18, %v2240_v2  ;;  %2883 = vmatmul.f32.gmra.mxu0 %v5963_v28  ;;  %3021 = vmatpush.msrb.mxu2 %v2667_v50  ;;  %v2519_v18 = vld [vmem:[#allocation5 + $0x350] sm:$0xff]  ;;  %v2588_v50 = vld [vmem:[#allocation5 + $0x578] sm:$0xff] }
 0x30c   : > { %v1963_v29 = vadd.f32 %v6713_v10, %v1928_v55  ;;  %2960 = vmatpush.msra.mxu3 %v2527_v15  ;;  %3058 = vmatpush.msrb.mxu1 %v2456_v41  ;;  %v2584_v20 = vld [vmem:[#allocation5 + $0x558] sm:$0xff]  ;;  %v2507_v32 = vld [vmem:[#allocation5 + $0x2f0] sm:$0xff] }
 0x30d   : > { %v2284_v51 = vrot.slane %v6089_v12, 1  ;;  %v2343_v43 = vrot.slane %v6089_v12, 5  ;;  %2787 = vmatmul.f32.gmra.mxu2 %v6096_v4  ;;  %v2356_v59 = vrot.slane %v6089_v12, 6  ;;  %3118 = vmatpush.msrb.mxu0 %v2600_v27  ;;  %v2580_v55 = vld [vmem:[#allocation5 + $0x538] sm:$0xff]  ;;  %v2503_v15 = vld [vmem:[#allocation5 + $0x2d0] sm:$0xff] }
 0x30e   : > { %3022 = vmatpush.msrb.mxu2 %v2663_v45  ;;  %2961 = vmatpush.msra.mxu3 %v2523_v23  ;;  %v2432_v45 = vld [vmem:[#allocation5 + $0x98] sm:$0xff]  ;;  %v2499_v41 = vld [vmem:[#allocation5 + $0x2b0] sm:$0xff] }
 0x30f   : > { %v2344_v31 = vsel %vm2338_vm7, %v2342_v7, %v2343_v43  ;;  %v2285_v49 = vsel %vm2265_vm5, %v2279_v6, %v2284_v51  ;;  %v2349_v5 = vrot.slane %v2284_v51, 5  ;;  %3119 = vmatpush.msrb.mxu0 %v2596_v60  ;;  %v2647_v7 = vld [vmem:[#allocation5 + $0x750] sm:$0xff]  ;;  %v2416_v60 = vld [vmem:[#allocation5 + $0x18] sm:$0xff] }
 0x310   : > { %v2242_v22 = vpop.f32.mrf.mxu2  ;;  %v2402_v46 = vsel %vm2400_vm8, %v2331_v3, %v2344_v31  ;;  %v2348_v6 = vrot.slane %v2285_v49, 5  ;;  %v2452_v3 = vld [vmem:[#allocation5 + $0x138] sm:$0xff]  ;;  %3023 = vmatpush.msrb.mxu2 %v2659_v38  ;;  %2962 = vmatpush.msra.mxu3 %v2519_v18  ;;  %v2635_v10 = vld [vmem:[#allocation5 + $0x6f0] sm:$0xff] }
 0x311   : > { %v2243_v42 = vadd.f32 %v2242_v22, %v2208_v36  ;;  %v6109_v53 = vsel %vm585_vm1, %v2402_v46, %v2356_v59  ;;  %3059 = vmatpush.msrb.mxu1 %v2452_v3  ;;  %3120 = vmatpush.msrb.mxu0 %v2592_v56  ;;  %v2639_v36 = vld [vmem:[#allocation5 + $0x710] sm:$0xff]  ;;  %v2576_v49 = vld [vmem:[#allocation5 + $0x518] sm:$0xff] }
 0x312   : > { %2726 = vmatmul.f32.gmra.mxu3 %v6109_v53  ;;  %2825 = vmatmul.f32.gmra.mxu1 %v5986_v30  ;;  %v2350_v12 = vsel %vm2338_vm7, %v2348_v6, %v2349_v5  ;;  %v2428_v22 = vld [vmem:[#allocation5 + $0x78] sm:$0xff]  ;;  %v2495_v27 = vld [vmem:[#allocation5 + $0x290] sm:$0xff] }
 0x313   : > { %v2256_v26 = vmax.f32 %v1963_v29, %v2243_v42  ;;  %2886 = vmatmul.f32.gmra.mxu0 %v5994_v14  ;;  %3024 = vmatpush.msrb.mxu2 %v2655_v1  ;;  %v2404_v39 = vsel %vm2400_vm8, %v6081_v16, %v2350_v12  ;;  %v2436_v16 = vld [vmem:[#allocation5 + $0xb8] sm:$0xff]  ;;  %v2631_v38 = vld [vmem:[#allocation5 + $0x6d0] sm:$0xff] }
 0x314   : > { %3060 = vmatpush.msrb.mxu1 %v2448_v11  ;;  %2963 = vmatpush.msra.mxu3 %v2515_v35  ;;  %v2572_v29 = vld [vmem:[#allocation5 + $0x4f8] sm:$0xff]  ;;  %v2491_v3 = vld [vmem:[#allocation5 + $0x270] sm:$0xff] }
 0x315   : > { %v2290_v2 = vrot.slane %v2256_v26, 1  ;;  %v2361_v57 = vrot.slane %v2256_v26, 6  ;;  %v2376_v21 = vrot.slane %v2256_v26, 7  ;;  %3025 = vmatpush.msrb.mxu2 %v2651_v47  ;;  %3121 = vmatpush.msrb.mxu0 %v2588_v50  ;;  %v2424_v42 = vld [vmem:[#allocation5 + $0x58] sm:$0xff]  ;;  %v2627_v23 = vld [vmem:[#allocation5 + $0x6b0] sm:$0xff] }
 0x316   : > { %3061 = vmatpush.msrb.mxu1 %v2444_v34  ;;  %v2568_v6 = vld [vmem:[#allocation5 + $0x4d8] sm:$0xff]  ;;  %v2487_v1 = vld [vmem:[#allocation5 + $0x250] sm:$0xff] }
 0x317   : > { %v2362_v17 = vsel %vm591_vm4, %v2356_v59, %v2361_v57  ;;  %v2291_v62 = vsel %vm2265_vm5, %v2284_v51, %v2290_v2  ;;  %v2511_v51 = vld [vmem:[#allocation5 + $0x310] sm:$0xff]  ;;  %v2365_v43 = vrot.slane %v2290_v2, 6  ;;  %3026 = vmatpush.msrb.mxu2 %v2647_v7  ;;  %3122 = vmatpush.msrb.mxu0 %v2584_v20  ;;  %v2378_v59 = vrot.slane %v2290_v2, 7  ;;  %v2420_v5 = vld [vmem:[#allocation5 + $0x38] sm:$0xff] }
 0x318   : > { %v6118_v25 = vsel %vm2338_vm7, %v2362_v17, %v2376_v21  ;;  %v2358_v37 = vrot.slane %v2291_v62, 6  ;;  %3062 = vmatpush.msrb.mxu1 %v2440_v0  ;;  %2964 = vmatpush.msra.mxu3 %v2511_v51  ;;  %v2564_v26 = vld [vmem:[#allocation5 + $0x4b8] sm:$0xff]  ;;  %v2623_v11 = vld [vmem:[#allocation5 + $0x690] sm:$0xff] }
 0x319   : > { %3027 = vmatpush.msrb.mxu2 %v2643_v52  ;;  %3123 = vmatpush.msrb.mxu0 %v2580_v55  ;;  %v2560_v18 = vld [vmem:[#allocation5 + $0x498] sm:$0xff]  ;;  %v2483_v2 = vld [vmem:[#allocation5 + $0x230] sm:$0xff] }
 0x31a   : > { %2729 = vmatmul.f32.gmra.mxu3 %v6118_v25  ;;  %2941 = vmatmul.f32.vlgmr.msra.gmra.mxu1 %v5876_v48  ;;  %v6125_v8 = vsel %vm585_vm1, %v2404_v39, %v2358_v37  ;;  %v2366_v31 = vsel %vm591_vm4, %v2358_v37, %v2365_v43  ;;  %v2619_v57 = vld [vmem:[#allocation5 + $0x670] sm:$0xff]  ;;  %v2556_v21 = vld [vmem:[#allocation5 + $0x478] sm:$0xff] }
 0x31b   : > { %2790 = vmatmul.f32.gmra.mxu2 %v6125_v8  ;;  %2889 = vmatmul.f32.gmra.mxu0 %v6012_v61  ;;  %v6133_v46 = vsel %vm2338_vm7, %v2366_v31, %v2378_v59  ;;  %v2479_v56 = vld [vmem:[#allocation5 + $0x210] sm:$0xff]  ;;  %v2552_v12 = vld [vmem:[#allocation5 + $0x458] sm:$0xff] }
 0x31c   : > { %3063 = vmatpush.msrb.mxu1 %v2436_v16  ;;  %2965 = vmatpush.msra.mxu3 %v2507_v32  ;;  %v2615_v47 = vld [vmem:[#allocation5 + $0x650] sm:$0xff]  ;;  %v2540_v35 = vld [vmem:[#allocation5 + $0x3f8] sm:$0xff] }
 0x31d   : > { %3028 = vmatpush.msrb.mxu2 %v2639_v36  ;;  %3124 = vmatpush.msrb.mxu0 %v2576_v49  ;;  %v2611_v34 = vld [vmem:[#allocation5 + $0x630] sm:$0xff]  ;;  %v2548_v17 = vld [vmem:[#allocation5 + $0x438] sm:$0xff] }
 0x31e   : > { %3064 = vmatpush.msrb.mxu1 %v2432_v45  ;;  %2966 = vmatpush.msra.mxu3 %v2503_v15  ;;  %v2607_v62 = vld [vmem:[#allocation5 + $0x610] sm:$0xff]  ;;  %v2536_v37 = vld [vmem:[#allocation5 + $0x3d8] sm:$0xff] }
 0x31f   : > { %3029 = vmatpush.msrb.mxu2 %v2635_v10  ;;  %3125 = vmatpush.msrb.mxu0 %v2572_v29  ;;  %v2668_v39 = vld [vmem:[#allocation5 + $0x7f8] sm:$0xff] }
 0x320   : > { %3065 = vmatpush.msrb.mxu1 %v2428_v22  ;;  %2967 = vmatpush.msra.mxu3 %v2499_v41  ;;  %v2544_v50 = vld [vmem:[#allocation5 + $0x418] sm:$0xff] }
 0x321   : > { %3030 = vmatpush.msrb.mxu2 %v2631_v38  ;;  %3126 = vmatpush.msrb.mxu0 %v2568_v6  ;;  %v2532_v0 = vld [vmem:[#allocation5 + $0x3b8] sm:$0xff] }
 0x322   : > { %2845 = vmatmul.f32.vlgmr.msrb.gmra.mxu3 %v6027_v9  ;;  %2944 = vmatmul.f32.gmra.mxu1 %v5920_v44  ;;  %v2664_v7 = vld [vmem:[#allocation5 + $0x7d8] sm:$0xff] }
 0x323   : > { %2793 = vmatmul.f32.gmra.mxu2 %v6133_v46  ;;  %3005 = vmatmul.f32.vlgmr.msra.gmra.mxu0 %v5888_v24  ;;  %v2528_v51 = vld [vmem:[#allocation5 + $0x398] sm:$0xff] }
 0x324   : > { %3066 = vmatpush.msrb.mxu1 %v2424_v42  ;;  %2968 = vmatpush.msra.mxu3 %v2495_v27  ;;  %v2660_v43 = vld [vmem:[#allocation5 + $0x7b8] sm:$0xff] }
 0x325   : > { %3031 = vmatpush.msrb.mxu2 %v2627_v23  ;;  %3127 = vmatpush.msrb.mxu0 %v2564_v26  ;;  %v2524_v20 = vld [vmem:[#allocation5 + $0x378] sm:$0xff] }
 0x326   : > { %3067 = vmatpush.msrb.mxu1 %v2420_v5  ;;  %2969 = vmatpush.msra.mxu3 %v2491_v3  ;;  %v2656_v16 = vld [vmem:[#allocation5 + $0x798] sm:$0xff] }
 0x327   : > { %3032 = vmatpush.msrb.mxu2 %v2623_v11  ;;  %3128 = vmatpush.msrb.mxu0 %v2560_v18  ;;  %v2520_v52 = vld [vmem:[#allocation5 + $0x358] sm:$0xff] }
 0x328   : > { %3068 = vmatpush.msrb.mxu1 %v2416_v60  ;;  %2970 = vmatpush.msra.mxu3 %v2487_v1  ;;  %v2652_v32 = vld [vmem:[#allocation5 + $0x778] sm:$0xff] }
 0x329   : > { %3033 = vmatpush.msrb.mxu2 %v2619_v57  ;;  %3129 = vmatpush.msrb.mxu0 %v2556_v21  ;;  %v2516_v55 = vld [vmem:[#allocation5 + $0x338] sm:$0xff] }
 0x32a   : > { %2848 = vmatmul.f32.gmra.mxu3 %v6060_v13  ;;  %2947 = vmatmul.f32.gmra.mxu1 %v5952_v19  ;;  %v2648_v45 = vld [vmem:[#allocation5 + $0x758] sm:$0xff] }
 0x32b   : > { %2909 = vmatmul.f32.vlgmr.msra.gmra.mxu2 %v6039_v33  ;;  %3008 = vmatmul.f32.gmra.mxu0 %v5931_v58  ;;  %v2512_v15 = vld [vmem:[#allocation5 + $0x318] sm:$0xff] }
 0x32c   : > { %2971 = vmatpush.msra.mxu3 %v2483_v2  ;;  %3034 = vmatpush.msrb.mxu2 %v2615_v47  ;;  %v2644_v36 = vld [vmem:[#allocation5 + $0x738] sm:$0xff] }
 0x32d   : > { %3130 = vmatpush.msrb.mxu0 %v2552_v12  ;;  %v2508_v31 = vld [vmem:[#allocation5 + $0x2f8] sm:$0xff] }
 0x32e   : > { %2972 = vmatpush.msra.mxu3 %v2479_v56  ;;  %3035 = vmatpush.msrb.mxu2 %v2611_v34  ;;  %v2640_v59 = vld [vmem:[#allocation5 + $0x718] sm:$0xff] }
 0x32f   : > { %3131 = vmatpush.msrb.mxu0 %v2548_v17  ;;  %v2504_v49 = vld [vmem:[#allocation5 + $0x2d8] sm:$0xff]  ;;  %v3247_v17 = vld [vmem:[#allocation7 + $0xf0] sm:$0xff] }
 0x330   : > { %3085 = vmatpush.msrb.mxu3 %v2540_v35  ;;  %3036 = vmatpush.msrb.mxu2 %v2607_v62  ;;  %v2636_v22 = vld [vmem:[#allocation5 + $0x6f8] sm:$0xff] }
 0x331   : > { %3132 = vmatpush.msrb.mxu0 %v2544_v50  ;;  %v2632_v41 = vld [vmem:[#allocation5 + $0x6d8] sm:$0xff]  ;;  %3281 = vmatpush.msra.mxu1 %v3247_v17  ;;  %v3243_v50 = vld [vmem:[#allocation7 + $0xd0] sm:$0xff] }
 0x332   : > { %2851 = vmatmul.f32.gmra.mxu3 %v6085_v40  ;;  %2950 = vmatmul.f32.gmra.mxu1 %v5974_v54  ;;  %v2496_v10 = vld [vmem:[#allocation5 + $0x298] sm:$0xff] }
 0x333   : > { %2912 = vmatmul.f32.gmra.mxu2 %v6073_v63  ;;  %3011 = vmatmul.f32.gmra.mxu0 %v5963_v28  ;;  %v2628_v29 = vld [vmem:[#allocation5 + $0x6b8] sm:$0xff] }
 0x334   : > { %3086 = vmatpush.msrb.mxu3 %v2536_v37  ;;  %3149 = vmatpush.msra.mxu2 %v2668_v39  ;;  %v2492_v42 = vld [vmem:[#allocation5 + $0x278] sm:$0xff]  ;;  %v3246_v39 = vld [vmem:[#allocation7 + $0xe8] sm:$0xff] }
 0x335   : > { %v2624_v27 = vld [vmem:[#allocation5 + $0x698] sm:$0xff] }
 0x336   : > { %3087 = vmatpush.msrb.mxu3 %v2532_v0  ;;  %3150 = vmatpush.msra.mxu2 %v2664_v7  ;;  %v2484_v38 = vld [vmem:[#allocation5 + $0x238] sm:$0xff] }
 0x337   : > { %v2616_v6 = vld [vmem:[#allocation5 + $0x658] sm:$0xff] }
 0x338   : > { %3088 = vmatpush.msrb.mxu3 %v2528_v51  ;;  %3151 = vmatpush.msra.mxu2 %v2660_v43  ;;  %v2480_v5 = vld [vmem:[#allocation5 + $0x218] sm:$0xff]  ;;  %v3241_v51 = vld [vmem:[#allocation7 + $0xc0] sm:$0xff]  ;;  %v3242_v43 = vld [vmem:[#allocation7 + $0xc8] sm:$0xff] }
 0x339   : > { %v2612_v3 = vld [vmem:[#allocation5 + $0x638] sm:$0xff] }
 0x33a   : > { %2854 = vmatmul.f32.gmra.mxu3 %v6109_v53  ;;  %2953 = vmatmul.f32.gmra.mxu1 %v5986_v30  ;;  %v3248_v62 = vld [vmem:[#allocation7 + $0xf8] sm:$0xff] }
 0x33b   : > { %2915 = vmatmul.f32.gmra.mxu2 %v6096_v4  ;;  %3014 = vmatmul.f32.gmra.mxu0 %v5994_v14  ;;  %v3244_v0 = vld [vmem:[#allocation7 + $0xd8] sm:$0xff] }
 0x33c   : > { %3089 = vmatpush.msrb.mxu3 %v2524_v20  ;;  %3152 = vmatpush.msra.mxu2 %v2656_v16  ;;  %v3220_v17 = vld [vmem:[#allocation7 + $0x18] sm:$0xff] }
 0x33d   : > { %3345 = vmatpush.msra.mxu0 %v3248_v62 }
 0x33e   : > { %3090 = vmatpush.msrb.mxu3 %v2520_v52  ;;  %3153 = vmatpush.msra.mxu2 %v2652_v32  ;;  %v3239_v32 = vld [vmem:[#allocation7 + $0xb0] sm:$0xff] }
 0x33f   : > { %3346 = vmatpush.msra.mxu0 %v3246_v39 }
 0x340   : > { %3091 = vmatpush.msrb.mxu3 %v2516_v55  ;;  %3154 = vmatpush.msra.mxu2 %v2648_v45  ;;  %v3240_v55 = vld [vmem:[#allocation7 + $0xb8] sm:$0xff] }
 0x341   : > { %3347 = vmatpush.msra.mxu0 %v3244_v0 }
 0x342   : > { %2857 = vmatmul.f32.gmra.mxu3 %v6118_v25  ;;  %3069 = vmatmul.f32.vlgmr.msrb.gmra.mxu1 %v5876_v48  ;;  %v2500_v48 = vld [vmem:[#allocation5 + $0x2b8] sm:$0xff] }
 0x343   : > { %2918 = vmatmul.f32.gmra.mxu2 %v6125_v8  ;;  %3017 = vmatmul.f32.gmra.mxu0 %v6012_v61 }
 0x344   : > { %3092 = vmatpush.msrb.mxu3 %v2512_v15  ;;  %3155 = vmatpush.msra.mxu2 %v2644_v36  ;;  %v3237_v15 = vld [vmem:[#allocation7 + $0xa0] sm:$0xff]  ;;  %v3238_v36 = vld [vmem:[#allocation7 + $0xa8] sm:$0xff] }
 0x345   : > { %3348 = vmatpush.msra.mxu0 %v3242_v43  ;;  %v3277_v43 = vld [vmem:[#allocation7 + $0x1e0] sm:$0xff] }
 0x346   : > { %3093 = vmatpush.msrb.mxu3 %v2508_v31  ;;  %3156 = vmatpush.msra.mxu2 %v2640_v59  ;;  %v6161_v23 = vpop.f32.mrf.mxu1  ;;  %v3235_v31 = vld [vmem:[#allocation7 + $0x90] sm:$0xff]  ;;  %v3236_v59 = vld [vmem:[#allocation7 + $0x98] sm:$0xff] }
 0x347   : > { %3349 = vmatpush.msra.mxu0 %v3240_v55  ;;  %v3276_v55 = vld [vmem:[#allocation7 + $0x1d8] sm:$0xff] }
 0x348   : > { %3094 = vmatpush.msrb.mxu3 %v2504_v49  ;;  %3157 = vmatpush.msra.mxu2 %v2636_v22 }
 0x349   : > { %3350 = vmatpush.msra.mxu0 %v3238_v36 }
 0x34a   : > { %2973 = vmatmul.f32.vlgmr.msra.gmra.mxu3 %v6027_v9  ;;  %3072 = vmatmul.f32.gmra.mxu1 %v5920_v44  ;;  %v2620_v44 = vld [vmem:[#allocation5 + $0x678] sm:$0xff] }
 0x34b   : > { %2921 = vmatmul.f32.gmra.mxu2 %v6133_v46  ;;  %3133 = vmatmul.f32.vlgmr.msrb.gmra.mxu0 %v5888_v24  ;;  %v2488_v24 = vld [vmem:[#allocation5 + $0x258] sm:$0xff] }
 0x34c   : > { %3095 = vmatpush.msrb.mxu3 %v2500_v48  ;;  %3158 = vmatpush.msra.mxu2 %v2632_v41  ;;  %v3233_v48 = vld [vmem:[#allocation7 + $0x80] sm:$0xff]  ;;  %v3234_v41 = vld [vmem:[#allocation7 + $0x88] sm:$0xff] }
 0x34d   : > { %3351 = vmatpush.msra.mxu0 %v3236_v59 }
 0x34e   : > { %3096 = vmatpush.msrb.mxu3 %v2496_v10  ;;  %3159 = vmatpush.msra.mxu2 %v2628_v29 }
 0x34f   : > { %v6173_v26 = vpop.f32.mrf.mxu1  ;;  %3352 = vmatpush.msra.mxu0 %v3234_v41  ;;  %v3271_v41 = vld [vmem:[#allocation7 + $0x1b0] sm:$0xff] }
 0x350   : > { %3097 = vmatpush.msrb.mxu3 %v2492_v42  ;;  %3160 = vmatpush.msra.mxu2 %v2624_v27 }
 0x352   : > { %2976 = vmatmul.f32.gmra.mxu3 %v6060_v13  ;;  %3075 = vmatmul.f32.gmra.mxu1 %v5952_v19  ;;  %v6167_v19 = vpop.f32.mrf.mxu0 }
 0x353   : > { %3037 = vmatmul.f32.vlgmr.msrb.gmra.mxu2 %v6039_v33  ;;  %3136 = vmatmul.f32.gmra.mxu0 %v5931_v58  ;;  %v2608_v58 = vld [vmem:[#allocation5 + $0x618] sm:$0xff] }
 0x354   : > { %3098 = vmatpush.msrb.mxu3 %v2488_v24  ;;  %3161 = vmatpush.msra.mxu2 %v2620_v44  ;;  %v3231_v24 = vld [vmem:[#allocation7 + $0x70] sm:$0xff]  ;;  %v3232_v44 = vld [vmem:[#allocation7 + $0x78] sm:$0xff] }
 0x355   : > { %3353 = vmatpush.msra.mxu0 %v3232_v44 }
 0x356   : > { %3099 = vmatpush.msrb.mxu3 %v2484_v38  ;;  %3162 = vmatpush.msra.mxu2 %v2616_v6  ;;  %v3229_v6 = vld [vmem:[#allocation7 + $0x60] sm:$0xff] }
 0x358   : > { %3100 = vmatpush.msrb.mxu3 %v2480_v5  ;;  %3163 = vmatpush.msra.mxu2 %v2612_v3  ;;  %v3230_v5 = vld [vmem:[#allocation7 + $0x68] sm:$0xff]  ;;  %v3227_v3 = vld [vmem:[#allocation7 + $0x50] sm:$0xff] }
 0x359   : > { %3354 = vmatpush.msra.mxu0 %v3230_v5 }
 0x35a   : > { %2979 = vmatmul.f32.gmra.mxu3 %v6085_v40  ;;  %3078 = vmatmul.f32.gmra.mxu1 %v5974_v54  ;;  %v6175_v54 = vpop.f32.mrf.mxu0 }
 0x35b   : > { %3040 = vmatmul.f32.gmra.mxu2 %v6073_v63  ;;  %3139 = vmatmul.f32.gmra.mxu0 %v5963_v28  ;;  %v6180_v28 = vpop.f32.mrf.mxu1 }
 0x35c   : > { %3164 = vmatpush.msra.mxu2 %v2608_v58  ;;  %v3228_v58 = vld [vmem:[#allocation7 + $0x58] sm:$0xff] }
 0x35d   : > { %3355 = vmatpush.msra.mxu0 %v3228_v58  ;;  %v3267_v58 = vld [vmem:[#allocation7 + $0x190] sm:$0xff] }
 0x362   : > { %2982 = vmatmul.f32.gmra.mxu3 %v6109_v53  ;;  %3081 = vmatmul.f32.gmra.mxu1 %v5986_v30  ;;  %v6184_v30 = vpop.f32.mrf.mxu0 }
 0x363   : > { %3043 = vmatmul.f32.gmra.mxu2 %v6096_v4  ;;  %3142 = vmatmul.f32.gmra.mxu0 %v5994_v14  ;;  %v2695_v60 = vpop.f32.mrf.mxu1 }
 0x36a   : > { %2985 = vmatmul.f32.gmra.mxu3 %v6118_v25  ;;  %v2759_v14 = vpop.f32.mrf.mxu0 }
 0x36b   : > { %3046 = vmatmul.f32.gmra.mxu2 %v6125_v8  ;;  %3145 = vmatmul.f32.gmra.mxu0 %v6012_v61  ;;  %v2698_v11 = vpop.f32.mrf.mxu1 }
 0x372   : > { %3101 = vmatmul.f32.vlgmr.msrb.gmra.mxu3 %v6027_v9  ;;  %v2762_v9 = vpop.f32.mrf.mxu0 }
 0x373   : > { %3049 = vmatmul.f32.gmra.mxu2 %v6133_v46 }
 0x37a   : > { %3104 = vmatmul.f32.gmra.mxu3 %v6060_v13  ;;  %v2814_v13 = vpop.f32.mrf.mxu1  ;;  %v2878_v57 = vpop.f32.mrf.mxu0 }
 0x37b   : > { %3165 = vmatmul.f32.vlgmr.msra.gmra.mxu2 %v6039_v33 }
 0x37c   : > { %v6188_v1 = vpop.f32.mrf.mxu3 }
 0x37f   : > { %v6190_v18 = vpop.f32.mrf.mxu2 }
 0x382   : > { %3107 = vmatmul.f32.gmra.mxu3 %v6085_v40  ;;  %v2817_v21 = vpop.f32.mrf.mxu1  ;;  %v2881_v12 = vpop.f32.mrf.mxu0 }
 0x383   : > { %3168 = vmatmul.f32.gmra.mxu2 %v6073_v63 }
 0x385   : > { %v6194_v61 = vpop.f32.mrf.mxu3 }
 0x388   : > { %v6198_v2 = vpop.f32.mrf.mxu2 }
 0x38a   : > { %3110 = vmatmul.f32.gmra.mxu3 %v6109_v53  ;;  %v2820_v37 = vpop.f32.mrf.mxu1  ;;  %v2884_v7 = vpop.f32.mrf.mxu0 }
 0x38b   : > { %3171 = vmatmul.f32.gmra.mxu2 %v6096_v4 }
 0x38d   : > { %v6200_v33 = vpop.f32.mrf.mxu3 }
 0x390   : > { %v6204_v63 = vpop.f32.mrf.mxu2 }
 0x392   : > { %3113 = vmatmul.f32.gmra.mxu3 %v6118_v25  ;;  %v2823_v49 = vpop.f32.mrf.mxu1  ;;  %v2887_v10 = vpop.f32.mrf.mxu0 }
 0x393   : > { %3174 = vmatmul.f32.gmra.mxu2 %v6125_v8  ;;  %v3245_v8 = vld [vmem:[#allocation7 + $0xe0] sm:$0xff] }
 0x394   : > { %3282 = vmatpush.msra.mxu1 %v3245_v8 }
 0x395   : > { %v2727_v40 = vpop.f32.mrf.mxu3 }
 0x396   : > { %v2728_v56 = vadd.f32 %v2727_v40, %v2695_v60  ;;  %3283 = vmatpush.msra.mxu1 %v3243_v50 }
 0x398   : > { %v2760_v47 = vadd.f32 %v2759_v14, %v2728_v56  ;;  %3284 = vmatpush.msra.mxu1 %v3241_v51  ;;  %v3224_v56 = vld [vmem:[#allocation7 + $0x38] sm:$0xff] }
 0x399   : > { %v3280_v51 = vld [vmem:[#allocation7 + $0x1f8] sm:$0xff] }
 0x39a   : > { %3285 = vmatpush.msra.mxu1 %v3239_v32  ;;  %v2826_v60 = vpop.f32.mrf.mxu1  ;;  %3377 = vmatpush.msrb.mxu2 %v3280_v51  ;;  %v3275_v32 = vld [vmem:[#allocation7 + $0x1d0] sm:$0xff] }
 0x39b   : > { %3177 = vmatmul.f32.gmra.mxu2 %v6133_v46 }
 0x39c   : > { %3286 = vmatpush.msra.mxu1 %v3237_v15 }
 0x39d   : > { %v2730_v4 = vpop.f32.mrf.mxu3 }
 0x39e   : > { %v2731_v53 = vadd.f32 %v2730_v4, %v2698_v11  ;;  %v2791_v34 = vpop.f32.mrf.mxu2  ;;  %3287 = vmatpush.msra.mxu1 %v3235_v31  ;;  %v3225_v11 = vld [vmem:[#allocation7 + $0x40] sm:$0xff] }
 0x39f   : > { %v6207_v35 = vadd.f32 %v2791_v34, %v2760_v47  ;;  %v2890_v47 = vpop.f32.mrf.mxu0  ;;  %v3221_v4 = vld [vmem:[#allocation7 + $0x20] sm:$0xff]  ;;  %v3219_v34 = vld [vmem:[#allocation7 + $0x10] sm:$0xff] }
 0x3a0   : > { %v2763_v25 = vadd.f32 %v2762_v9, %v2731_v53  ;;  %3288 = vmatpush.msra.mxu1 %v3233_v48  ;;  %v3226_v9 = vld [vmem:[#allocation7 + $0x48] sm:$0xff] }
 0x3a1   : > { %3356 = vmatpush.msra.mxu0 %v3226_v9  ;;  %v3222_v53 = vld [vmem:[#allocation7 + $0x28] sm:$0xff] }
 0x3a2   : > { %3289 = vmatpush.msra.mxu1 %v3231_v24  ;;  %v2942_v8 = vpop.f32.mrf.mxu1  ;;  %v3274_v48 = vld [vmem:[#allocation7 + $0x1c8] sm:$0xff] }
 0x3a3   : > { %3357 = vmatpush.msra.mxu0 %v3224_v56  ;;  %v3266_v9 = vld [vmem:[#allocation7 + $0x188] sm:$0xff]  ;;  %v6227_v56 = vld [vmem:[%s6667_s5] sm:$0x3] }
 0x3a4   : > { %3290 = vmatpush.msra.mxu1 %v3229_v6  ;;  %v2719_v6 = vadd.f32 %v6188_v1, %v6161_v23 }
 0x3a5   : > { %v2846_v46 = vpop.f32.mrf.mxu3  ;;  %3358 = vmatpush.msra.mxu0 %v3222_v53 }
 0x3a6   : > { %v2847_v20 = vadd.f32 %v2846_v46, %v2814_v13  ;;  %v2794_v16 = vpop.f32.mrf.mxu2  ;;  %3291 = vmatpush.msra.mxu1 %v3227_v3  ;;  %v3279_v46 = vld [vmem:[#allocation7 + $0x1f0] sm:$0xff] }
 0x3a7   : > { %v6209_v52 = vadd.f32 %v2794_v16, %v2763_v25  ;;  %3359 = vmatpush.msra.mxu0 %v3220_v17  ;;  %v3218_v25 = vld [vmem:[#allocation7 + $0x8] sm:$0xff]  ;;  %3313 = vmatpush.msra.mxu3 %v3279_v46 }
 0x3a8   : > { %v2879_v45 = vadd.f32 %v2878_v57, %v2847_v20  ;;  %3292 = vmatpush.msra.mxu1 %v3225_v11  ;;  %v3006_v20 = vpop.f32.mrf.mxu0  ;;  %v3278_v16 = vld [vmem:[#allocation7 + $0x1e8] sm:$0xff] }
 0x3a9   : > { %3360 = vmatpush.msra.mxu0 %v3218_v25  ;;  %3314 = vmatpush.msra.mxu3 %v3277_v43  ;;  %v3262_v25 = vld [vmem:[#allocation7 + $0x168] sm:$0xff] }
 0x3aa   : > { %3378 = vmatpush.msrb.mxu2 %v3278_v16  ;;  %v2945_v59 = vpop.f32.mrf.mxu1  ;;  %v3258_v46 = vld [vmem:[#allocation7 + $0x148] sm:$0xff]  ;;  %v3255_v16 = vld [vmem:[#allocation7 + $0x130] sm:$0xff] }
 0x3ab   : > { %3315 = vmatpush.msra.mxu3 %v3275_v32  ;;  %v3256_v32 = vld [vmem:[#allocation7 + $0x138] sm:$0xff] }
 0x3ac   : > { %3379 = vmatpush.msrb.mxu2 %v3276_v55 }
 0x3ad   : > { %v2849_v22 = vpop.f32.mrf.mxu3 }
 0x3ae   : > { %v2850_v29 = vadd.f32 %v2849_v22, %v2817_v21  ;;  %v2910_v42 = vpop.f32.mrf.mxu2  ;;  %v3223_v21 = vld [vmem:[#allocation7 + $0x30] sm:$0xff]  ;;  %v3273_v22 = vld [vmem:[#allocation7 + $0x1c0] sm:$0xff]  ;;  %3380 = vmatpush.msrb.mxu2 %v3274_v48 }
 0x3af   : > { %v6211_v27 = vadd.f32 %v2910_v42, %v2879_v45  ;;  %3293 = vmatpush.msra.mxu1 %v3223_v21  ;;  %3316 = vmatpush.msra.mxu3 %v3273_v22  ;;  %v3270_v42 = vld [vmem:[#allocation7 + $0x1a8] sm:$0xff]  ;;  %v3264_v21 = vld [vmem:[#allocation7 + $0x178] sm:$0xff] }
 0x3b0   : > { %v2882_v38 = vadd.f32 %v2881_v12, %v2850_v29  ;;  %v3269_v29 = vld [vmem:[#allocation7 + $0x1a0] sm:$0xff]  ;;  %v3009_v24 = vpop.f32.mrf.mxu0  ;;  %v3254_v22 = vld [vmem:[#allocation7 + $0x128] sm:$0xff] }
 0x3b1   : > { %3294 = vmatpush.msra.mxu1 %v3221_v4  ;;  %3317 = vmatpush.msra.mxu3 %v3271_v41 }
 0x3b2   : > { %v2948_v11 = vpop.f32.mrf.mxu1 }
 0x3b3   : > { %3295 = vmatpush.msra.mxu1 %v3219_v34  ;;  %3318 = vmatpush.msra.mxu3 %v3269_v29  ;;  %v6233_v34 = vperm.slane %v6227_v56, 0 }
 0x3b5   : > { %v2852_v14 = vpop.f32.mrf.mxu3  ;;  %3319 = vmatpush.msra.mxu3 %v3267_v58 }
 0x3b6   : > { %v2853_v13 = vadd.f32 %v2852_v14, %v2820_v37  ;;  %v2913_v57 = vpop.f32.mrf.mxu2  ;;  %v3217_v37 = vld [vmem:[#allocation7] sm:$0xff] }
 0x3b7   : > { %v6213_v40 = vadd.f32 %v2913_v57, %v2882_v38  ;;  %3296 = vmatpush.msra.mxu1 %v3217_v37  ;;  %v3265_v14 = vld [vmem:[#allocation7 + $0x180] sm:$0xff]  ;;  %v3263_v57 = vld [vmem:[#allocation7 + $0x170] sm:$0xff] }
 0x3b8   : > { %v2885_v12 = vadd.f32 %v2884_v7, %v2853_v13  ;;  %v2751_v13 = vadd.f32 %v6167_v19, %v2719_v6  ;;  %3320 = vmatpush.msra.mxu3 %v3265_v14  ;;  %v2722_v19 = vadd.f32 %v6194_v61, %v6173_v26  ;;  %v3261_v37 = vld [vmem:[#allocation7 + $0x160] sm:$0xff] }
 0x3ba   : > { %3321 = vmatpush.msra.mxu3 %v3263_v57  ;;  %v2783_v4 = vadd.f32 %v6190_v18, %v2751_v13  ;;  %v3257_v18 = vld [vmem:[#allocation7 + $0x140] sm:$0xff]  ;;  %v2951_v51 = vpop.f32.mrf.mxu1 }
 0x3bc   : > { %3322 = vmatpush.msra.mxu3 %v3261_v37 }
 0x3bd   : > { %v2855_v62 = vpop.f32.mrf.mxu3 }
 0x3be   : > { %v2856_v39 = vadd.f32 %v2855_v62, %v2823_v49  ;;  %v2916_v50 = vpop.f32.mrf.mxu2 }
 0x3bf   : > { %v6215_v0 = vadd.f32 %v2916_v50, %v2885_v12  ;;  %v2754_v50 = vadd.f32 %v6175_v54, %v2722_v19  ;;  %v2725_v54 = vadd.f32 %v6200_v33, %v6180_v28 }
 0x3c0   : > { %v2888_v7 = vadd.f32 %v2887_v10, %v2856_v39  ;;  %v3272_v10 = vld [vmem:[#allocation7 + $0x1b8] sm:$0xff] }
 0x3c1   : > { %3381 = vmatpush.msrb.mxu2 %v3272_v10  ;;  %v3260_v39 = vld [vmem:[#allocation7 + $0x158] sm:$0xff]  ;;  %v2786_v55 = vadd.f32 %v6198_v2, %v2754_v50  ;;  %v2757_v48 = vadd.f32 %v6184_v30, %v2725_v54  ;;  %v3251_v2 = vld [vmem:[#allocation7 + $0x110] sm:$0xff] }
 0x3c2   : > { %v3252_v10 = vld [vmem:[#allocation7 + $0x118] sm:$0xff] }
 0x3c3   : > { %3382 = vmatpush.msrb.mxu2 %v3270_v42  ;;  %v3249_v42 = vld [vmem:[#allocation7 + $0x100] sm:$0xff]  ;;  %v2789_v6 = vadd.f32 %v6204_v63, %v2757_v48 }
 0x3c5   : > { %v2858_v45 = vpop.f32.mrf.mxu3 }
 0x3c6   : > { %v2859_v15 = vadd.f32 %v2858_v45, %v2826_v60  ;;  %v2919_v36 = vpop.f32.mrf.mxu2  ;;  %v3268_v60 = vld [vmem:[#allocation7 + $0x198] sm:$0xff] }
 0x3c7   : > { %v6217_v31 = vadd.f32 %v2919_v36, %v2888_v7  ;;  %3383 = vmatpush.msrb.mxu2 %v3268_v60 }
 0x3c8   : > { %v2891_v49 = vadd.f32 %v2890_v47, %v2859_v15  ;;  %v3012_v47 = vpop.f32.mrf.mxu0 }
 0x3c9   : > { %3384 = vmatpush.msrb.mxu2 %v3266_v9 }
 0x3cb   : > { %3385 = vmatpush.msrb.mxu2 %v3264_v21 }
 0x3cd   : > { %v2974_v44 = vpop.f32.mrf.mxu3  ;;  %3386 = vmatpush.msrb.mxu2 %v3262_v25 }
 0x3ce   : > { %v2922_v38 = vpop.f32.mrf.mxu2  ;;  %v2975_v3 = vadd.f32 %v2974_v44, %v2942_v8  ;;  %v3259_v8 = vld [vmem:[#allocation7 + $0x150] sm:$0xff]  ;;  %v2954_v44 = vpop.f32.mrf.mxu1 }
 0x3cf   : > { %v6221_v5 = vadd.f32 %v2922_v38, %v2891_v49  ;;  %3323 = vmatpush.msra.mxu3 %v3259_v8  ;;  %3387 = vmatpush.msrb.mxu2 %v3260_v39  ;;  %v3253_v49 = vld [vmem:[#allocation7 + $0x120] sm:$0xff] }
 0x3d0   : > { %v3007_v1 = vadd.f32 %v3006_v20, %v2975_v3  ;;  %v3015_v15 = vpop.f32.mrf.mxu0 }
 0x3d1   : > { %3324 = vmatpush.msra.mxu3 %v3257_v18  ;;  %3388 = vmatpush.msrb.mxu2 %v3258_v46 }
 0x3d3   : > { %3325 = vmatpush.msra.mxu3 %v3255_v16  ;;  %3389 = vmatpush.msrb.mxu2 %v3256_v32 }
 0x3d5   : > { %v2977_v23 = vpop.f32.mrf.mxu3  ;;  %3326 = vmatpush.msra.mxu3 %v3253_v49  ;;  %3390 = vmatpush.msrb.mxu2 %v3254_v22 }
 0x3d6   : > { %v3038_v12 = vpop.f32.mrf.mxu2  ;;  %v2978_v17 = vadd.f32 %v2977_v23, %v2945_v59  ;;  %v3070_v23 = vpop.f32.mrf.mxu1 }
 0x3d7   : > { %v3039_v53 = vadd.f32 %v3038_v12, %v3007_v1  ;;  %3327 = vmatpush.msra.mxu3 %v3251_v2  ;;  %3391 = vmatpush.msrb.mxu2 %v3252_v10 }
 0x3d8   : > { %v3010_v43 = vadd.f32 %v3009_v24, %v2978_v17  ;;  %v3250_v24 = vld [vmem:[#allocation7 + $0x108] sm:$0xff]  ;;  %v3018_v60 = vpop.f32.mrf.mxu0 }
 0x3d9   : > { %v3181_v62 = vmax.f32 %v2783_v4, %v3039_v53  ;;  %3328 = vmatpush.msra.mxu3 %v3249_v42  ;;  %3392 = vmatpush.msrb.mxu2 %v3250_v24 }
 0x3db   : > { %v3197_v7 = vadd.f32 %v6233_v34, %v3181_v62 }
 0x3dd   : > { %v3207_v26 = vmax.f32 %v3197_v7, 0.0  ;;  %v2980_v61 = vpop.f32.mrf.mxu3 }
 0x3de   : > { %v3041_v20 = vpop.f32.mrf.mxu2  ;;  %v2981_v36 = vadd.f32 %v2980_v61, %v2948_v11  ;;  %v3073_v8 = vpop.f32.mrf.mxu1 }
 0x3df   : > { %v3042_v45 = vadd.f32 %v3041_v20, %v3010_v43  ;;  %3297 = vmatmul.f32.vlgmr.msra.gmra.mxu1 %v3207_v26  ;;  %3361 = vmatmul.f32.vlgmr.msra.gmra.mxu0 %v3207_v26  ;;  %v3194_v26 = vperm.slane %v6227_v56, 1 }
 0x3e0   : > { %v3013_v33 = vadd.f32 %v3012_v47, %v2981_v36  ;;  %v3134_v12 = vpop.f32.mrf.mxu0 }
 0x3e1   : > { %v3183_v59 = vmax.f32 %v2786_v55, %v3042_v45 }
 0x3e3   : > { %v3199_v41 = vadd.f32 %v6233_v34, %v3183_v59 }
 0x3e5   : > { %v2983_v28 = vpop.f32.mrf.mxu3  ;;  %v3209_v29 = vmax.f32 %v3199_v41, 0.0 }
 0x3e6   : > { %v3044_v38 = vpop.f32.mrf.mxu2  ;;  %v2984_v30 = vadd.f32 %v2983_v28, %v2951_v51  ;;  %v3076_v16 = vpop.f32.mrf.mxu1 }
 0x3e7   : > { %v3045_v3 = vadd.f32 %v3044_v38, %v3013_v33  ;;  %3300 = vmatmul.f32.gmra.mxu1 %v3209_v29  ;;  %3364 = vmatmul.f32.gmra.mxu0 %v3209_v29 }
 0x3e8   : > { %v3016_v9 = vadd.f32 %v3015_v15, %v2984_v30 }
 0x3e9   : > { %v3185_v58 = vmax.f32 %v2789_v6, %v3045_v3 }
 0x3eb   : > { %v3201_v14 = vadd.f32 %v6233_v34, %v3185_v58 }
 0x3ed   : > { %v2986_v11 = vpop.f32.mrf.mxu3  ;;  %v3211_v13 = vmax.f32 %v3201_v14, 0.0 }
 0x3ee   : > { %v3047_v57 = vpop.f32.mrf.mxu2  ;;  %v2987_v1 = vadd.f32 %v2986_v11, %v2954_v44  ;;  %v3079_v48 = vpop.f32.mrf.mxu1 }
 0x3ef   : > { %v3048_v21 = vadd.f32 %v3047_v57, %v3016_v9  ;;  %3303 = vmatmul.f32.gmra.mxu1 %v3211_v13  ;;  %3367 = vmatmul.f32.gmra.mxu0 %v3211_v13 }
 0x3f0   : > { %v3019_v19 = vadd.f32 %v3018_v60, %v2987_v1  ;;  %v3533_v1 = vld [vmem:[%s6669_s7 + $0x58] sm:$0xff] }
 0x3f1   : > { %v3187_v47 = vmax.f32 %v6207_v35, %v3048_v21  ;;  %v3137_v35 = vpop.f32.mrf.mxu0  ;;  %v3537_v21 = vld [vmem:[%s6669_s7 + $0x78] sm:$0xff] }
 0x3f2   : > { %3606 = vmatpush.msrb.mxu1 %v3537_v21 }
 0x3f3   : > { %v3203_v63 = vadd.f32 %v6233_v34, %v3187_v47  ;;  %v3532_v47 = vld [vmem:[%s6669_s7 + $0x50] sm:$0xff] }
 0x3f5   : > { %v3102_v4 = vpop.f32.mrf.mxu3  ;;  %v3213_v53 = vmax.f32 %v3203_v63, 0.0  ;;  %v3531_v63 = vld [vmem:[%s6669_s7 + $0x48] sm:$0xff] }
 0x3f6   : > { %v3050_v17 = vpop.f32.mrf.mxu2  ;;  %v3103_v37 = vadd.f32 %v3102_v4, %v3070_v23  ;;  %v3535_v23 = vld [vmem:[%s6669_s7 + $0x68] sm:$0xff]  ;;  %v3529_v4 = vld [vmem:[%s6669_s7 + $0x38] sm:$0xff] }
 0x3f7   : > { %v3051_v62 = vadd.f32 %v3050_v17, %v3019_v19  ;;  %3306 = vmatmul.f32.gmra.mxu1 %v3213_v53  ;;  %3370 = vmatmul.f32.gmra.mxu0 %v3213_v53  ;;  %v3528_v19 = vld [vmem:[%s6669_s7 + $0x30] sm:$0xff]  ;;  %v3527_v53 = vld [vmem:[%s6669_s7 + $0x28] sm:$0xff]  ;;  %v3553_v17 = vld [vmem:[%s6669_s7 + $0xf8] sm:$0xff] }
 0x3f8   : > { %v3135_v7 = vadd.f32 %v3134_v12, %v3103_v37  ;;  %v3530_v12 = vld [vmem:[%s6669_s7 + $0x40] sm:$0xff]  ;;  %v3585_v37 = vld [vmem:[%s6669_s7 + $0x1f8] sm:$0xff]  ;;  %3626 = vmatpush.msrb.mxu3 %v3553_v17  ;;  %v3591_v17 = vld [vmem:[%s6669_s7 + $0x228] sm:$0xff] }
 0x3f9   : > { %v3189_v25 = vmax.f32 %v6209_v52, %v3051_v62  ;;  %v3140_v45 = vpop.f32.mrf.mxu0  ;;  %v3552_v62 = vld [vmem:[%s6669_s7 + $0xf0] sm:$0xff]  ;;  %3666 = vmatpush.msra.mxu2 %v3585_v37  ;;  %v3555_v37 = vld [vmem:[%s6669_s7 + $0x108] sm:$0xff] }
 0x3fa   : > { %3627 = vmatpush.msrb.mxu3 %v3552_v62  ;;  %v3538_v62 = vld [vmem:[%s6669_s7 + $0x80] sm:$0xff] }
 0x3fb   : > { %v3205_v39 = vadd.f32 %v6233_v34, %v3189_v25  ;;  %v3584_v25 = vld [vmem:[%s6669_s7 + $0x1f0] sm:$0xff] }
 0x3fc   : > { %3667 = vmatpush.msra.mxu2 %v3584_v25  ;;  %v3571_v25 = vld [vmem:[%s6669_s7 + $0x188] sm:$0xff] }
 0x3fd   : > { %v3105_v50 = vpop.f32.mrf.mxu3  ;;  %v3215_v18 = vmax.f32 %v3205_v39, 0.0  ;;  %v3551_v39 = vld [vmem:[%s6669_s7 + $0xe8] sm:$0xff] }
 0x3fe   : > { %v3166_v46 = vpop.f32.mrf.mxu2  ;;  %v3106_v61 = vadd.f32 %v3105_v50, %v3073_v8  ;;  %v3526_v8 = vld [vmem:[%s6669_s7 + $0x20] sm:$0xff]  ;;  %v3525_v50 = vld [vmem:[%s6669_s7 + $0x18] sm:$0xff]  ;;  %3628 = vmatpush.msrb.mxu3 %v3551_v39 }
 0x3ff   : > { %v3167_v51 = vadd.f32 %v3166_v46, %v3135_v7  ;;  %3309 = vmatmul.f32.gmra.mxu1 %v3215_v18  ;;  %3373 = vmatmul.f32.gmra.mxu0 %v3215_v18  ;;  %v3569_v7 = vld [vmem:[%s6669_s7 + $0x178] sm:$0xff]  ;;  %v3524_v18 = vld [vmem:[%s6669_s7 + $0x10] sm:$0xff]  ;;  %v3523_v46 = vld [vmem:[%s6669_s7 + $0x8] sm:$0xff] }
 0x400   : > { %v3138_v55 = vadd.f32 %v3137_v35, %v3106_v61  ;;  %3646 = vmatpush.msrb.mxu0 %v3569_v7  ;;  %v3568_v35 = vld [vmem:[%s6669_s7 + $0x170] sm:$0xff]  ;;  %v3549_v61 = vld [vmem:[%s6669_s7 + $0xd8] sm:$0xff]  ;;  %v3554_v7 = vld [vmem:[%s6669_s7 + $0x100] sm:$0xff] }
 0x401   : > { %v3182_v43 = vmax.f32 %v6211_v27, %v3167_v51  ;;  %v3143_v28 = vpop.f32.mrf.mxu0  ;;  %v3550_v51 = vld [vmem:[%s6669_s7 + $0xe0] sm:$0xff] }
 0x402   : > { %3647 = vmatpush.msrb.mxu0 %v3568_v35  ;;  %3629 = vmatpush.msrb.mxu3 %v3550_v51  ;;  %v3589_v35 = vld [vmem:[%s6669_s7 + $0x218] sm:$0xff] }
 0x403   : > { %v3198_v20 = vadd.f32 %v3194_v26, %v3182_v43  ;;  %v3582_v43 = vld [vmem:[%s6669_s7 + $0x1e0] sm:$0xff] }
 0x404   : > { %3630 = vmatpush.msrb.mxu3 %v3549_v61 }
 0x405   : > { %v3208_v32 = vmax.f32 %v3198_v20, 0.0  ;;  %v3108_v52 = vpop.f32.mrf.mxu3  ;;  %v3567_v20 = vld [vmem:[%s6669_s7 + $0x168] sm:$0xff] }
 0x406   : > { %v3169_v54 = vpop.f32.mrf.mxu2  ;;  %v3109_v15 = vadd.f32 %v3108_v52, %v3076_v16  ;;  %v3548_v16 = vld [vmem:[%s6669_s7 + $0xd0] sm:$0xff]  ;;  %3648 = vmatpush.msrb.mxu0 %v3567_v20  ;;  %v3522_v52 = vld [vmem:[%s6669_s7] sm:$0xff] }
 0x407   : > { %v3170_v34 = vadd.f32 %v3169_v54, %v3138_v55  ;;  %3329 = vmatmul.f32.vlgmr.msra.gmra.mxu3 %v3208_v32  ;;  %3393 = vmatmul.f32.vlgmr.msrb.gmra.mxu2 %v3208_v32  ;;  %v3581_v32 = vld [vmem:[%s6669_s7 + $0x1d8] sm:$0xff]  ;;  %v3566_v55 = vld [vmem:[%s6669_s7 + $0x160] sm:$0xff] }
 0x408   : > { %v3141_v49 = vadd.f32 %v3140_v45, %v3109_v15  ;;  %v3601_v54 = vld [vmem:[%s6669_s7 + $0x278] sm:$0xff]  ;;  %3649 = vmatpush.msrb.mxu0 %v3566_v55  ;;  %3631 = vmatpush.msrb.mxu3 %v3548_v16  ;;  %v3600_v15 = vld [vmem:[%s6669_s7 + $0x270] sm:$0xff] }
 0x409   : > { %v3184_v36 = vmax.f32 %v6213_v40, %v3170_v34  ;;  %v3082_v40 = vpop.f32.mrf.mxu1  ;;  %v3146_v58 = vpop.f32.mrf.mxu0  ;;  %v3547_v34 = vld [vmem:[%s6669_s7 + $0xc8] sm:$0xff]  ;;  %v3565_v45 = vld [vmem:[%s6669_s7 + $0x158] sm:$0xff] }
 0x40a   : > { %3650 = vmatpush.msrb.mxu0 %v3565_v45  ;;  %3632 = vmatpush.msrb.mxu3 %v3547_v34  ;;  %v3586_v34 = vld [vmem:[%s6669_s7 + $0x200] sm:$0xff]  ;;  %v3721_v45 = vld [vmem:[%s6671_s9 + $0x70] sm:$0xff] }
 0x40b   : > { %v3200_v59 = vadd.f32 %v3194_v26, %v3184_v36  ;;  %v3580_v36 = vld [vmem:[%s6669_s7 + $0x1d0] sm:$0xff] }
 0x40d   : > { %v3111_v56 = vpop.f32.mrf.mxu3  ;;  %v3210_v22 = vmax.f32 %v3200_v59, 0.0  ;;  %v3564_v59 = vld [vmem:[%s6669_s7 + $0x150] sm:$0xff] }
 0x40e   : > { %v3172_v41 = vpop.f32.mrf.mxu2  ;;  %v3112_v2 = vadd.f32 %v3111_v56, %v3079_v48  ;;  %v3599_v56 = vld [vmem:[%s6669_s7 + $0x268] sm:$0xff]  ;;  %v3546_v48 = vld [vmem:[%s6669_s7 + $0xc0] sm:$0xff]  ;;  %3651 = vmatpush.msrb.mxu0 %v3564_v59 }
 0x40f   : > { %v3173_v27 = vadd.f32 %v3172_v41, %v3141_v49  ;;  %3332 = vmatmul.f32.gmra.mxu3 %v3210_v22  ;;  %3396 = vmatmul.f32.gmra.mxu2 %v3210_v22  ;;  %v3579_v41 = vld [vmem:[%s6669_s7 + $0x1c8] sm:$0xff] }
 0x410   : > { %v3144_v29 = vadd.f32 %v3143_v28, %v3112_v2  ;;  %3633 = vmatpush.msrb.mxu3 %v3546_v48  ;;  %v3578_v2 = vld [vmem:[%s6669_s7 + $0x1c0] sm:$0xff]  ;;  %v3544_v28 = vld [vmem:[%s6669_s7 + $0xb0] sm:$0xff] }
 0x411   : > { %v3186_v10 = vmax.f32 %v6215_v0, %v3173_v27  ;;  %v3545_v27 = vld [vmem:[%s6669_s7 + $0xb8] sm:$0xff] }
 0x412   : > { %3634 = vmatpush.msrb.mxu3 %v3545_v27 }
 0x413   : > { %v3202_v33 = vadd.f32 %v3194_v26, %v3186_v10  ;;  %v3563_v10 = vld [vmem:[%s6669_s7 + $0x148] sm:$0xff] }
 0x414   : > { %3652 = vmatpush.msrb.mxu0 %v3563_v10  ;;  %3635 = vmatpush.msrb.mxu3 %v3544_v28  ;;  %v3718_v28 = vld [vmem:[%s6671_s9 + $0x58] sm:$0xff] }
 0x415   : > { %v3212_v42 = vmax.f32 %v3202_v33, 0.0  ;;  %v3114_v24 = vpop.f32.mrf.mxu3  ;;  %v3598_v33 = vld [vmem:[%s6669_s7 + $0x260] sm:$0xff] }
 0x416   : > { %v3175_v44 = vpop.f32.mrf.mxu2  ;;  %v3115_v6 = vadd.f32 %v3114_v24, %v3082_v40  ;;  %v3577_v24 = vld [vmem:[%s6669_s7 + $0x1b8] sm:$0xff]  ;;  %v3576_v40 = vld [vmem:[%s6669_s7 + $0x1b0] sm:$0xff] }
 0x417   : > { %v3176_v38 = vadd.f32 %v3175_v44, %v3144_v29  ;;  %3335 = vmatmul.f32.gmra.mxu3 %v3212_v42  ;;  %3399 = vmatmul.f32.gmra.mxu2 %v3212_v42  ;;  %v3562_v29 = vld [vmem:[%s6669_s7 + $0x140] sm:$0xff]  ;;  %v3597_v42 = vld [vmem:[%s6669_s7 + $0x258] sm:$0xff]  ;;  %v3543_v44 = vld [vmem:[%s6669_s7 + $0xa8] sm:$0xff] }
 0x418   : > { %v3147_v60 = vadd.f32 %v3146_v58, %v3115_v6  ;;  %3653 = vmatpush.msrb.mxu0 %v3562_v29  ;;  %v3596_v6 = vld [vmem:[%s6669_s7 + $0x250] sm:$0xff]  ;;  %v3575_v58 = vld [vmem:[%s6669_s7 + $0x1a8] sm:$0xff]  ;;  %3636 = vmatpush.msrb.mxu3 %v3543_v44 }
 0x419   : > { %v3188_v3 = vmax.f32 %v6217_v31, %v3176_v38  ;;  %v3536_v31 = vld [vmem:[%s6669_s7 + $0x70] sm:$0xff]  ;;  %v3561_v38 = vld [vmem:[%s6669_s7 + $0x138] sm:$0xff] }
 0x41a   : > { %3607 = vmatpush.msrb.mxu1 %v3536_v31  ;;  %3654 = vmatpush.msrb.mxu0 %v3561_v38  ;;  %v3574_v31 = vld [vmem:[%s6669_s7 + $0x1a0] sm:$0xff] }
 0x41b   : > { %v3204_v30 = vadd.f32 %v3194_v26, %v3188_v3  ;;  %v3542_v3 = vld [vmem:[%s6669_s7 + $0xa0] sm:$0xff] }
 0x41c   : > { %3608 = vmatpush.msrb.mxu1 %v3535_v23  ;;  %3637 = vmatpush.msrb.mxu3 %v3542_v3  ;;  %v3558_v23 = vld [vmem:[%s6669_s7 + $0x120] sm:$0xff] }
 0x41d   : > { %v3214_v14 = vmax.f32 %v3204_v30, 0.0  ;;  %v3560_v30 = vld [vmem:[%s6669_s7 + $0x130] sm:$0xff] }
 0x41e   : > { %v3178_v11 = vpop.f32.mrf.mxu2  ;;  %3655 = vmatpush.msrb.mxu0 %v3560_v30 }
 0x41f   : > { %v3179_v9 = vadd.f32 %v3178_v11, %v3147_v60  ;;  %3338 = vmatmul.f32.gmra.mxu3 %v3214_v14  ;;  %3402 = vmatmul.f32.gmra.mxu2 %v3214_v14  ;;  %v3595_v60 = vld [vmem:[%s6669_s7 + $0x248] sm:$0xff]  ;;  %v3541_v11 = vld [vmem:[%s6669_s7 + $0x98] sm:$0xff] }
 0x420   : > { %v3559_v14 = vld [vmem:[%s6669_s7 + $0x128] sm:$0xff]  ;;  %3638 = vmatpush.msrb.mxu3 %v3541_v11 }
 0x421   : > { %v3190_v0 = vmax.f32 %v6221_v5, %v3179_v9  ;;  %v3534_v5 = vld [vmem:[%s6669_s7 + $0x60] sm:$0xff]  ;;  %3656 = vmatpush.msrb.mxu0 %v3559_v14  ;;  %v3716_v11 = vld [vmem:[%s6671_s9 + $0x48] sm:$0xff] }
 0x422   : > { %3609 = vmatpush.msrb.mxu1 %v3534_v5  ;;  %v3593_v5 = vld [vmem:[%s6669_s7 + $0x238] sm:$0xff] }
 0x423   : > { %v3206_v13 = vadd.f32 %v3194_v26, %v3190_v0  ;;  %v3583_v26 = vld [vmem:[%s6669_s7 + $0x1e8] sm:$0xff]  ;;  %3657 = vmatpush.msrb.mxu0 %v3558_v23 }
 0x424   : > { %3610 = vmatpush.msrb.mxu1 %v3533_v1  ;;  %3668 = vmatpush.msra.mxu2 %v3583_v26  ;;  %v3540_v1 = vld [vmem:[%s6669_s7 + $0x90] sm:$0xff] }
 0x425   : > { %v3216_v57 = vmax.f32 %v3206_v13, 0.0  ;;  %v3594_v13 = vld [vmem:[%s6669_s7 + $0x240] sm:$0xff]  ;;  %3639 = vmatpush.msrb.mxu3 %v3540_v1 }
 0x426   : > { %3611 = vmatpush.msrb.mxu1 %v3532_v47  ;;  %3669 = vmatpush.msra.mxu2 %v3582_v43  ;;  %v3573_v47 = vld [vmem:[%s6669_s7 + $0x198] sm:$0xff]  ;;  %v3588_v43 = vld [vmem:[%s6669_s7 + $0x210] sm:$0xff] }
 0x427   : > { %3341 = vmatmul.f32.gmra.mxu3 %v3216_v57  ;;  %3405 = vmatmul.f32.gmra.mxu2 %v3216_v57 }
 0x428   : > { %3612 = vmatpush.msrb.mxu1 %v3531_v63  ;;  %3670 = vmatpush.msra.mxu2 %v3581_v32  ;;  %v3557_v63 = vld [vmem:[%s6669_s7 + $0x118] sm:$0xff]  ;;  %v3587_v32 = vld [vmem:[%s6669_s7 + $0x208] sm:$0xff] }
 0x429   : > { %3658 = vmatpush.msrb.mxu0 %v3557_v63 }
 0x42a   : > { %3613 = vmatpush.msrb.mxu1 %v3530_v12  ;;  %3671 = vmatpush.msra.mxu2 %v3580_v36  ;;  %v3592_v12 = vld [vmem:[%s6669_s7 + $0x230] sm:$0xff] }
 0x42c   : > { %3614 = vmatpush.msrb.mxu1 %v3529_v4  ;;  %3672 = vmatpush.msra.mxu2 %v3579_v41  ;;  %v3539_v4 = vld [vmem:[%s6669_s7 + $0x88] sm:$0xff] }
 0x42d   : > { %3640 = vmatpush.msrb.mxu3 %v3539_v4 }
 0x42e   : > { %3615 = vmatpush.msrb.mxu1 %v3528_v19  ;;  %3673 = vmatpush.msra.mxu2 %v3578_v2  ;;  %v3556_v19 = vld [vmem:[%s6669_s7 + $0x110] sm:$0xff] }
 0x42f   : > { %3659 = vmatpush.msrb.mxu0 %v3556_v19  ;;  %3641 = vmatpush.msrb.mxu3 %v3538_v62 }
 0x430   : > { %3616 = vmatpush.msrb.mxu1 %v3527_v53  ;;  %3674 = vmatpush.msra.mxu2 %v3577_v24  ;;  %v3572_v53 = vld [vmem:[%s6669_s7 + $0x190] sm:$0xff] }
 0x431   : > { %3660 = vmatpush.msrb.mxu0 %v3555_v37  ;;  %3731 = vmatpush.msra.mxu3 %v3721_v45 }
 0x432   : > { %3617 = vmatpush.msrb.mxu1 %v3526_v8  ;;  %3675 = vmatpush.msra.mxu2 %v3576_v40 }
 0x433   : > { %3661 = vmatpush.msrb.mxu0 %v3554_v7 }
 0x434   : > { %3618 = vmatpush.msrb.mxu1 %v3525_v50  ;;  %3676 = vmatpush.msra.mxu2 %v3575_v58  ;;  %v3590_v50 = vld [vmem:[%s6669_s7 + $0x220] sm:$0xff] }
 0x436   : > { %3619 = vmatpush.msrb.mxu1 %v3524_v18  ;;  %3677 = vmatpush.msra.mxu2 %v3574_v31  ;;  %v3570_v18 = vld [vmem:[%s6669_s7 + $0x180] sm:$0xff] }
 0x438   : > { %3620 = vmatpush.msrb.mxu1 %v3523_v46  ;;  %3678 = vmatpush.msra.mxu2 %v3573_v47 }
 0x43a   : > { %3621 = vmatpush.msrb.mxu1 %v3522_v52  ;;  %3679 = vmatpush.msra.mxu2 %v3572_v53 }
 0x43c   : > { %3686 = vmatpush.msra.mxu1 %v3601_v54  ;;  %3680 = vmatpush.msra.mxu2 %v3571_v25 }
 0x43e   : > { %3687 = vmatpush.msra.mxu1 %v3600_v15  ;;  %3681 = vmatpush.msra.mxu2 %v3570_v18 }
 0x440   : > { %3688 = vmatpush.msra.mxu1 %v3599_v56  ;;  %v3720_v56 = vld [vmem:[%s6671_s9 + $0x68] sm:$0xff] }
 0x441   : > { %3732 = vmatpush.msra.mxu3 %v3720_v56 }
 0x442   : > { %3689 = vmatpush.msra.mxu1 %v3598_v33 }
 0x444   : > { %3690 = vmatpush.msra.mxu1 %v3597_v42  ;;  %v3717_v42 = vld [vmem:[%s6671_s9 + $0x50] sm:$0xff] }
 0x446   : > { %3691 = vmatpush.msra.mxu1 %v3596_v6 }
 0x448   : > { %3692 = vmatpush.msra.mxu1 %v3595_v60 }
 0x44a   : > { %3693 = vmatpush.msra.mxu1 %v3594_v13 }
 0x44c   : > { %3694 = vmatpush.msra.mxu1 %v3593_v5 }
 0x44e   : > { %3695 = vmatpush.msra.mxu1 %v3592_v12 }
 0x450   : > { %3696 = vmatpush.msra.mxu1 %v3591_v17 }
 0x452   : > { %3697 = vmatpush.msra.mxu1 %v3590_v50 }
 0x454   : > { %3698 = vmatpush.msra.mxu1 %v3589_v35 }
 0x456   : > { %3699 = vmatpush.msra.mxu1 %v3588_v43 }
 0x458   : > { %3700 = vmatpush.msra.mxu1 %v3587_v32 }
 0x45a   : > { %3701 = vmatpush.msra.mxu1 %v3586_v34 }
 0x45c   : > { %v6368_v49 = vpop.f32.mrf.mxu1  ;;  %v6370_v22 = vpop.f32.mrf.mxu0 }
 0x464   : > { %v3301_v57 = vpop.f32.mrf.mxu1  ;;  %v3365_v21 = vpop.f32.mrf.mxu0 }
 0x46c   : > { %v3304_v46 = vpop.f32.mrf.mxu1  ;;  %v3368_v51 = vpop.f32.mrf.mxu0 }
 0x474   : > { %v3307_v27 = vpop.f32.mrf.mxu1  ;;  %v3371_v2 = vpop.f32.mrf.mxu0 }
 0x47c   : > { %v3310_v62 = vpop.f32.mrf.mxu1  ;;  %v3374_v37 = vpop.f32.mrf.mxu0 }
 0x48a   : > { %v3330_v9 = vpop.f32.mrf.mxu3  ;;  %v3394_v0 = vpop.f32.mrf.mxu2 }
 0x48b   : > { %v3331_v26 = vadd.f32 %v3330_v9, %v6368_v49  ;;  %v3395_v61 = vadd.f32 %v3394_v0, %v6370_v22  ;;  %v3719_v22 = vld [vmem:[%s6671_s9 + $0x60] sm:$0xff] }
 0x48c   : > { %3733 = vmatpush.msra.mxu3 %v3719_v22 }
 0x48d   : > { %v3409_v52 = vmax.f32 %v3331_v26, %v3395_v61 }
 0x48e   : > { %3734 = vmatpush.msra.mxu3 %v3718_v28 }
 0x48f   : > { %v3415_v48 = vrot.slane %v3409_v52, 1  ;;  %v3417_v41 = vrot.slane %v3409_v52, 2  ;;  %v3421_v24 = vrot.slane %v3409_v52, 4  ;;  %v3419_v13 = vrot.slane %v3409_v52, 3 }
 0x490   : > { %3735 = vmatpush.msra.mxu3 %v3717_v42 }
 0x491   : > { %v3455_v44 = vrot.slane %v3415_v48, 4  ;;  %v3456_v38 = vrot.slane %v3417_v41, 4  ;;  %v3487_v23 = vsel %vm2400_vm8, %v3409_v52, %v3421_v24 }
 0x492   : > { %v3333_v8 = vpop.f32.mrf.mxu3  ;;  %v3397_v39 = vpop.f32.mrf.mxu2  ;;  %3736 = vmatpush.msra.mxu3 %v3716_v11  ;;  %v3715_v11 = vld [vmem:[%s6671_s9 + $0x40] sm:$0xff] }
 0x493   : > { %v3334_v20 = vadd.f32 %v3333_v8, %v3301_v57  ;;  %v3398_v16 = vadd.f32 %v3397_v39, %v3365_v21  ;;  %v3488_v1 = vsel %vm2400_vm8, %v3415_v48, %v3455_v44  ;;  %v3489_v12 = vsel %vm2400_vm8, %v3417_v41, %v3456_v38 }
 0x494   : > { %3737 = vmatpush.msra.mxu3 %v3715_v11 }
 0x495   : > { %v3410_v15 = vmax.f32 %v3334_v20, %v3398_v16 }
 0x497   : > { %v3424_v10 = vrot.slane %v3410_v15, 3  ;;  %v3425_v33 = vrot.slane %v3410_v15, 4  ;;  %v3426_v9 = vrot.slane %v3410_v15, 1  ;;  %v3428_v0 = vrot.slane %v3410_v15, 2 }
 0x498   : > { %v3492_v19 = vsel %vm591_vm4, %v3487_v23, %v3410_v15  ;;  %v3708_v23 = vld [vmem:[%s6671_s9 + $0x8] sm:$0xff] }
 0x499   : > { %v3457_v30 = vrot.slane %v3424_v10, 4  ;;  %v3458_v57 = vrot.slane %v3425_v33, 4  ;;  %v3493_v53 = vsel %vm591_vm4, %v3488_v1, %v3426_v9  ;;  %v3494_v17 = vsel %vm591_vm4, %v3489_v12, %v3428_v0  ;;  %v3714_v9 = vld [vmem:[%s6671_s9 + $0x38] sm:$0xff]  ;;  %v3713_v0 = vld [vmem:[%s6671_s9 + $0x30] sm:$0xff] }
 0x49a   : > { %v3336_v55 = vpop.f32.mrf.mxu3  ;;  %v3400_v54 = vpop.f32.mrf.mxu2  ;;  %v3497_v43 = vsel %vm2338_vm7, %v3492_v19, %v3425_v33  ;;  %3738 = vmatpush.msra.mxu3 %v3714_v9  ;;  %v3761_v1 = vld [vmem:[%s6673_s11 + $0x50] sm:$0xf]  ;;  %v3758_v12 = vld [vmem:[%s6673_s11 + $0x38] sm:$0xff]  ;;  %v3756_v19 = vld [vmem:[%s6673_s11 + $0x28] sm:$0xff] }
 0x49b   : > { %v3337_v36 = vadd.f32 %v3336_v55, %v3304_v46  ;;  %v3401_v59 = vadd.f32 %v3400_v54, %v3368_v51  ;;  %v3490_v4 = vsel %vm2400_vm8, %v3419_v13, %v3457_v30  ;;  %v3491_v50 = vsel %vm2400_vm8, %v3421_v24, %v3458_v57  ;;  %v3712_v13 = vld [vmem:[%s6671_s9 + $0x28] sm:$0xff]  ;;  %v3711_v57 = vld [vmem:[%s6671_s9 + $0x20] sm:$0xff]  ;;  %3981 = vmatpush.msk.msra.mxu0 %vm588_vm3, %v3761_v1 }
 0x49c   : > { %v3495_v51 = vsel %vm591_vm4, %v3490_v4, %v3424_v10  ;;  %v3496_v55 = vsel %vm591_vm4, %v3491_v50, %v3425_v33  ;;  %3739 = vmatpush.msra.mxu3 %v3713_v0  ;;  %v3757_v4 = vld [vmem:[%s6673_s11 + $0x30] sm:$0xff] }
 0x49d   : > { %v6506_v49 = vmax.f32 %v3337_v36, %v3401_v59 }
 0x49e   : > { %3740 = vmatpush.msra.mxu3 %v3712_v13 }
 0x49f   : > { %v3433_v29 = vrot.slane %v6506_v49, 1  ;;  %v3434_v40 = vrot.slane %v6506_v49, 2  ;;  %v3435_v58 = vrot.slane %v6506_v49, 3  ;;  %v3502_v16 = vsel %vm588_vm3, %v3497_v43, %v6506_v49  ;;  %v3752_v43 = vld [vmem:[%s6673_s11 + $0x8] sm:$0xff] }
 0x4a0   : > { %v3501_v56 = vsel %vm2338_vm7, %v3496_v55, %v6506_v49  ;;  %3741 = vmatpush.msra.mxu3 %v3711_v57 }
 0x4a1   : > { %v3463_v21 = vrot.slane %v3433_v29, 4  ;;  %v3464_v5 = vrot.slane %v3434_v40, 4  ;;  %v3465_v47 = vrot.slane %v3435_v58, 4 }
 0x4a2   : > { %v3339_v6 = vpop.f32.mrf.mxu3  ;;  %v3403_v3 = vpop.f32.mrf.mxu2 }
 0x4a3   : > { %v3340_v60 = vadd.f32 %v3339_v6, %v3307_v27  ;;  %v3404_v14 = vadd.f32 %v3403_v3, %v3371_v2  ;;  %v3498_v39 = vsel %vm2338_vm7, %v3493_v53, %v3463_v21  ;;  %v3499_v46 = vsel %vm2338_vm7, %v3494_v17, %v3464_v5  ;;  %v3710_v21 = vld [vmem:[%s6671_s9 + $0x18] sm:$0xff]  ;;  %v3707_v5 = vld [vmem:[%s6671_s9] sm:$0xff] }
 0x4a4   : > { %v3500_v20 = vsel %vm2338_vm7, %v3495_v51, %v3465_v47  ;;  %v3503_v32 = vsel %vm588_vm3, %v3498_v39, %v3433_v29  ;;  %v3504_v15 = vsel %vm588_vm3, %v3499_v46, %v3434_v40  ;;  %3742 = vmatpush.msra.mxu3 %v3710_v21  ;;  %v3760_v47 = vld [vmem:[%s6673_s11 + $0x48] sm:$0xff]  ;;  %v3755_v53 = vld [vmem:[%s6673_s11 + $0x20] sm:$0xff]  ;;  %v3754_v17 = vld [vmem:[%s6673_s11 + $0x18] sm:$0xff] }
 0x4a5   : > { %v3412_v31 = vmax.f32 %v3340_v60, %v3404_v14  ;;  %v3505_v59 = vsel %vm588_vm3, %v3500_v20, %v3435_v58  ;;  %3779 = vmatpush.msra.mxu0 %v3760_v47  ;;  %v3751_v20 = vld [vmem:[%s6673_s11] sm:$0xff] }
 0x4a7   : > { %v3443_v63 = vrot.slane %v3412_v31, 1  ;;  %v3441_v25 = vrot.slane %v3412_v31, 4  ;;  %v3977_v35 = vrot.slane %v3412_v31, 6  ;;  %v3978_v52 = vrot.slane %v3412_v31, 7 }
 0x4a9   : > { %v3471_v8 = vrot.slane %v3443_v63, 4  ;;  %v3507_v34 = vsel %vm2383_vm6, %v3502_v16, %v3441_v25  ;;  %v3509_v36 = vsel %vm2383_vm6, %v3504_v15, %v3977_v35  ;;  %v3510_v28 = vsel %vm2383_vm6, %v3505_v59, %v3978_v52  ;;  %v4081_v16 = vld [vmem:[%s6672_s10] ss:$0 sm:$0xff] }
 0x4aa   : > { %v3342_v7 = vpop.f32.mrf.mxu3  ;;  %v3406_v18 = vpop.f32.mrf.mxu2  ;;  %v3512_v2 = vsel %vm585_vm1, %v3507_v34, %v3412_v31  ;;  %v3474_v33 = vrot.slane %v3441_v25, 4  ;;  %v3506_v40 = vsel %vm588_vm3, %v3501_v56, %v3441_v25  ;;  %v3709_v31 = vld [vmem:[%s6671_s9 + $0x10] sm:$0xff] }
 0x4ab   : > { %v3343_v26 = vadd.f32 %v3342_v7, %v3310_v62  ;;  %v3407_v61 = vadd.f32 %v3406_v18, %v3374_v37  ;;  %v3508_v45 = vsel %vm2383_vm6, %v3503_v32, %v3471_v8  ;;  %3743 = vmatpush.msra.mxu3 %v3709_v31  ;;  %v4080_v62 = vld [vmem:[%s6670_s8] ss:$0 sm:$0xff] }
 0x4ac   : > { %v3513_v10 = vsel %vm585_vm1, %v3508_v45, %v3443_v63  ;;  %v3511_v58 = vsel %vm2383_vm6, %v3506_v40, %v3474_v33  ;;  %v3759_v63 = vld [vmem:[%s6673_s11 + $0x40] sm:$0xff] }
 0x4ad   : > { %v3413_v54 = vmax.f32 %v3343_v26, %v3407_v61  ;;  %3744 = vmatpush.msra.mxu3 %v3708_v23  ;;  %3780 = vmatpush.msra.mxu0 %v3759_v63  ;;  %v3753_v61 = vld [vmem:[%s6673_s11 + $0x10] sm:$0xff] }
 0x4af   : > { %v3448_v22 = vrot.slane %v3413_v54, 2  ;;  %v3450_v48 = vrot.slane %v3413_v54, 3  ;;  %v3452_v41 = vrot.slane %v3413_v54, 4  ;;  %v3979_v27 = vrot.slane %v3413_v54, 5  ;;  %3745 = vmatpush.msra.mxu3 %v3707_v5  ;;  %3781 = vmatpush.msra.mxu0 %v3758_v12  ;;  %v4082_v54 = vld [vmem:[%s6714_s18] ss:$0 sm:$0xff] }
 0x4b1   : > { %v3517_v29 = vsel %vm2265_vm5, %v3512_v2, %v3452_v41  ;;  %v3518_v42 = vsel %vm2265_vm5, %v3513_v10, %v3979_v27  ;;  %v3480_v24 = vrot.slane %v3448_v22, 4  ;;  %v3514_v44 = vsel %vm585_vm1, %v3509_v36, %v3448_v22  ;;  %3782 = vmatpush.msra.mxu0 %v3757_v4 }
 0x4b2   : > { %3622 = vmatmul.f32.vlgmr.msrb.gmra.mxu1 %v3517_v29  ;;  %3642 = vmatmul.f32.vlgmr.msrb.gmra.mxu3 %v3518_v42  ;;  %v3481_v49 = vrot.slane %v3450_v48, 4  ;;  %v3515_v38 = vsel %vm585_vm1, %v3510_v28, %v3450_v48  ;;  %v3482_v30 = vrot.slane %v3452_v41, 4  ;;  %v3516_v60 = vsel %vm585_vm1, %v3511_v58, %v3452_v41 }
 0x4b3   : > { %v3519_v6 = vsel %vm2265_vm5, %v3514_v44, %v3480_v24  ;;  %3783 = vmatpush.msra.mxu0 %v3756_v19 }
 0x4b4   : > { %3662 = vmatmul.f32.vlgmr.msrb.gmra.mxu0 %v3519_v6  ;;  %v3520_v3 = vsel %vm2265_vm5, %v3515_v38, %v3481_v49  ;;  %v3521_v14 = vsel %vm2265_vm5, %v3516_v60, %v3482_v30 }
 0x4b5   : > { %3682 = vmatmul.f32.vlgmr.msra.gmra.mxu2 %v3520_v3  ;;  %3784 = vmatpush.msra.mxu0 %v3755_v53 }
 0x4b7   : > { %3785 = vmatpush.msra.mxu0 %v3754_v17 }
 0x4b9   : > { %3786 = vmatpush.msra.mxu0 %v3753_v61 }
 0x4ba   : > { %3702 = vmatmul.f32.vlgmr.msra.gmra.mxu1 %v3521_v14 }
 0x4bb   : > { %3787 = vmatpush.msra.mxu0 %v3752_v43 }
 0x4bd   : > { %3788 = vmatpush.msra.mxu0 %v3751_v20 }
 0x52f   : > { %v3623_v37 = vpop.f32.mrf.mxu1 }
 0x530   : > { %v3624_v25 = vadd.f32 %v4080_v62, %v3623_v37 }
 0x531   : > { %v3663_v50 = vpop.f32.mrf.mxu0 }
 0x535   : > { %v3643_v8 = vpop.f32.mrf.mxu3 }
 0x536   : > { %v3644_v39 = vadd.f32 %v3643_v8, %v3624_v25 }
 0x537   : > { %v3703_v46 = vpop.f32.mrf.mxu1 }
 0x538   : > { %v3664_v7 = vadd.f32 %v3663_v50, %v3644_v39  ;;  %v3683_v18 = vpop.f32.mrf.mxu2 }
 0x53a   : > { %v3684_v35 = vadd.f32 %v3683_v18, %v3664_v7 }
 0x53c   : > { %v3704_v51 = vadd.f32 %v3703_v46, %v3684_v35 }
 0x53e   : > { %v3706_v26 = vmax.f32 %v3704_v51, 0.0 }
 0x540   : > { %3980 = vmatmul.msk.f32.vlgmr.msra.gmra.mxu3 %vm3726_vm9, %v3706_v26 }
 0x5c3   : > { %v3747_v32 = vpop.f32.mrf.mxu3 }
 0x5c4   : > { %v3748_v52 = vadd.f32 %v4081_v16, %v3747_v32 }
 0x5c6   : > { %v3750_v55 = vmax.f32 %v3748_v52, 0.0 }
 0x5c8   : > { %3982 = vmatmul.msk.f32.vlgmr.msra.gmra.mxu0 %vm3766_vm10, %v3750_v55 }
 0x645   : > { %v3790_v34 = vpop.f32.mrf.mxu0 }
 0x646   : > { %v3791_v45 = vadd.f32 %v4082_v54, %v3790_v34 }
 0x648   : > { %3794 = vst.msk [vmem:[%s484_s20] sm:$0xff] %vm3793_vm11, %v3791_v45 }
 0x649   : > { %4200 = shalt.err (!%p4197_p8)
}
 0x64a   : > { %4015 = dma.vmem_to_hbm [thread:$0]  (%p4363_p5), %s3809_s23, 128, %s3811_s30, %s3796_s15  }
 0x64b PF: > { %s6716_s1 = sld [smem:[#allocation14_spill]] }
 0x64c   : > { %s6717_s25 = sld [smem:[#allocation12_spill]] }
 0x651   : > { %p4037_p9 = scmp.ge.s32.totalorder %s6716_s1, 2 }
 0x652   : > { %s3822_s28 = sand.u32 1, %s6717_s25  }
 0x653   : > { %p4028_p10 = pnand %p4037_p9, %p4367_p6  ;;  %s3823_s14 = scalar_lea.sflag [#allocation4], %s3822_s28 }
 0x655   : > { %p4029_p11 = pneg %p4028_p10 }
 0x657   : > { %4226 = dma.done.wait (%p4029_p11), %s3823_s14, 128  }
 0x658   : > { %4228 = vsyncadd (%p4029_p11), %s3823_s14, 4294967168  ;;  %s6719_s28 = sld [smem:[#allocation15_spill]]  ;;  %s6722_s25 = smov %s4235_s26 }
 0x659   : > { %s6720_s29 = sld [smem:[#allocation13_spill]] }
 0x65a   : > { %s6721_s27 = sld [smem:[#allocation16_spill]] }
 0x65e   : > { %p25_p12 = scmp.ge.s32.totalorder %s6719_s28, 4  }
 0x65f   : > { %s6723_s26 = smov %s6720_s29 }
 0x660   :  { %27 = sbr.rel (!%p25_p12) target bundleno = 9 (0x9), region = 127 }
 0x665   :  { %3829 = vsyncpa [#allocation3], 1 }
 0x666   :  { %3831 = vsyncpa [#allocation3 + $0x1], 1 }
 0x667   :  { %3832 = vsyncpa [#allocation6], 1 }
 0x668   :  { %3833 = vsyncpa [#allocation4], 1 }
 0x669   :  { %3835 = vsyncpa [#allocation4 + $0x1], 1 }

</bundles_post_ra>
